<compile_context>
chip_gen: v5e
topology: v5e:2x2
jax: 0.10.0
libtpu: 0.0.40
codegen_flags: <defaults>
</compile_context>

<pallas_src>
import functools

import jax
import jax.numpy as jnp
from jax.experimental import pallas as pl
from jax.experimental.pallas import tpu as pltpu

EPS = 1e-5
LANE = 128
VMEM_LIMIT = 32 * 1024 * 1024


def _round_up(x, m):
    return (x + m - 1) // m * m


def _pad_last(a, target):
    pad = target - a.shape[-1]
    if pad == 0:
        return a
    return jnp.pad(a, [(0, 0)] * (a.ndim - 1) + [(0, pad)])


def _window_rows(x, th):
    """(N, H, W, C) -> (N*R, th+2, W+2, C): zero-padded, overlapping row tiles."""
    n, h, w, c = x.shape
    r = h // th
    xp = jnp.pad(x, ((0, 0), (1, 1), (1, 1), (0, 0)))
    tiles = [xp[:, i * th:i * th + th + 2] for i in range(r)]
    return jnp.stack(tiles, axis=1).reshape(n * r, th + 2, w + 2, c)


# --------------------------------------------------------------------------------------
# Kernels
# --------------------------------------------------------------------------------------
def _conv3x3_relu_stats_kernel(*refs, th, w_out, h_valid, r_tiles, apply_in_affine):
    """One spatial row-tile of one image.

    out = relu(conv3x3(in) + b)  (9 shifted bf16 MXU matmuls, f32 accumulation),
    plus per-tile per-channel (sum, sum_sq) partials for the following BatchNorm.

    If apply_in_affine: the input tile is first mapped through a per-channel affine
    (x * scale + shift) on valid (non-halo) pixels -- this is the *previous* stage's
    BatchNorm folded into this kernel (halo padding must stay exactly zero).
    """
    if apply_in_affine:
        xw_ref, w_ref, b_ref, sc_ref, sh_ref, out_ref, st_ref = refs
    else:
        xw_ref, w_ref, b_ref, out_ref, st_ref = refs

    thp, wp = th + 2, w_out + 2
    c_out = w_ref.shape[-1]

    xt = xw_ref[0]                                        # (th+2, W+2, C_in)  bf16
    if apply_in_affine:
        r = pl.program_id(0) % r_tiles
        row = r * th + jax.lax.broadcasted_iota(jnp.int32, (thp, wp), 0)
        col = jax.lax.broadcasted_iota(jnp.int32, (thp, wp), 1)
        valid = (row >= 1) & (row <= h_valid) & (col >= 1) & (col <= w_out)
        a_in = (xt.astype(jnp.float32) * sc_ref[...]
                + sh_ref[...] * valid.astype(jnp.float32)[:, :, None])
        xt = a_in.astype(jnp.bfloat16)                    # bf16 MXU operand

    c_in = xt.shape[-1]
    acc = jnp.zeros((th * w_out, c_out), jnp.float32)
    for dw in range(3):
        # flatten the dw-shifted slab once; dh windows are then contiguous row slices
        xs = xt[:, dw:dw + w_out, :].reshape(thp * w_out, c_in)
        for dh in range(3):
            win = xs[dh * w_out:(dh + th) * w_out, :]
            acc = acc + jnp.dot(win, w_ref[3 * dh + dw],
                                preferred_element_type=jnp.float32)

    a = jnp.maximum(acc + b_ref[...], 0.0)                # f32 elementwise (v5e-safe)
    out_ref[...] = a.reshape(out_ref.shape).astype(out_ref.dtype)
    st_ref[...] = jnp.concatenate(
        [jnp.sum(a, axis=0, keepdims=True),
         jnp.sum(a * a, axis=0, keepdims=True)], axis=0).reshape(st_ref.shape)


def _bn_residual_proj_kernel(h_ref, sc_ref, sh_ref, x_ref, wr_ref, br_ref, o_ref):
    """BN2 affine + residual 1x1 conv (c_in != c_out)."""
    bn = h_ref[...].astype(jnp.float32) * sc_ref[...] + sh_ref[...]
    res = jnp.dot(x_ref[...], wr_ref[...], preferred_element_type=jnp.float32) + br_ref[...]
    o_ref[...] = bn + res


def _bn_residual_id_kernel(h_ref, sc_ref, sh_ref, x_ref, o_ref):
    """BN2 affine + identity residual (c_in == c_out): no pointless eye-matmul."""
    o_ref[...] = h_ref[...].astype(jnp.float32) * sc_ref[...] + sh_ref[...] + x_ref[...]


# --------------------------------------------------------------------------------------
# Wrapper
# --------------------------------------------------------------------------------------
def _conv_stage(x_nhwc, w9, bias, scale_in, shift_in, th, c_out_p):
    """conv3x3 + bias + ReLU stage (optionally preceded by the previous BN affine).

    Returns: h (N*H, W, c_out_p) bf16, and per-channel sum / sum_sq over all N*H*W pixels.
    """
    n, h, w, c_in = x_nhwc.shape
    r = h // th
    xw = _window_rows(x_nhwc, th).astype(jnp.bfloat16)    # (N*R, th+2, W+2, C_in)

    apply_affine = scale_in is not None
    kern = functools.partial(_conv3x3_relu_stats_kernel, th=th, w_out=w,
                             h_valid=h, r_tiles=r, apply_in_affine=apply_affine)

    in_specs = [
        pl.BlockSpec((1, th + 2, w + 2, c_in), lambda g: (g, 0, 0, 0)),
        pl.BlockSpec((9, c_in, c_out_p), lambda g: (0, 0, 0)),   # resident weights
        pl.BlockSpec((1, c_out_p), lambda g: (0, 0)),            # resident bias
    ]
    args = [xw, w9, bias]
    if apply_affine:
        in_specs += [pl.BlockSpec((1, c_in), lambda g: (0, 0)),
                     pl.BlockSpec((1, c_in), lambda g: (0, 0))]
        args += [scale_in, shift_in]

    h_out, st = pl.pallas_call(
        kern,
        grid=(n * r,),
        in_specs=in_specs,
        out_specs=(
            pl.BlockSpec((th, w, c_out_p), lambda g: (g, 0, 0)),
            pl.BlockSpec((1, 2, c_out_p), lambda g: (g, 0, 0)),
        ),
        out_shape=(
            jax.ShapeDtypeStruct((n * h, w, c_out_p), jnp.bfloat16),
            jax.ShapeDtypeStruct((n * r, 2, c_out_p), jnp.float32),
        ),
        compiler_params=pltpu.CompilerParams(
            dimension_semantics=("parallel",),
            vmem_limit_bytes=VMEM_LIMIT),
    )(*args)

    s = jnp.sum(st[:, 0, :], axis=0)
    q = jnp.sum(st[:, 1, :], axis=0)
    return h_out, s, q


def _bn_scale_shift(s, q, m, gamma_p, beta_p):
    """Training-mode BatchNorm: batch mean, biased variance -> per-channel affine."""
    mean = s / m
    var = jnp.maximum(q / m - mean * mean, 0.0)
    inv = jax.lax.rsqrt(var + EPS)
    scale = gamma_p * inv                                 # (1, Cp)
    shift = beta_p - mean * scale                         # (1, Cp)
    return scale.astype(jnp.float32), shift.astype(jnp.float32)


@jax.jit
def res_block(x_nchw, params):
    x = jnp.transpose(x_nchw, (0, 2, 3, 1)).astype(jnp.float32)   # NHWC
    n, h, w, c_in = x.shape
    m = n * h * w
    c_mid = params["w1"].shape[-1]
    c_out = params["w2"].shape[-1]
    c_mid_p = _round_up(c_mid, LANE)
    c_out_p = _round_up(c_out, LANE)

    # Row-tile; for production shapes size this up to the VMEM budget (~512-2048 rows).
    th = 8 if h % 8 == 0 else h

    # ---- stage 1: conv3x3(c_in -> c_mid) + ReLU; emit BN1 statistics ----
    w1 = _pad_last(params["w1"].reshape(9, c_in, c_mid), c_mid_p).astype(jnp.bfloat16)
    b1 = _pad_last(params["b1"], c_mid_p)
    h1, s1, q1 = _conv_stage(x, w1, b1, None, None, th, c_mid_p)
    sc1, sh1 = _bn_scale_shift(s1, q1, m, _pad_last(params["g1"], c_mid_p),
                               _pad_last(params["bt1"], c_mid_p))

    # ---- stage 2: BN1 affine (in-kernel) -> conv3x3(c_mid -> c_out) + ReLU; BN2 stats ----
    w2 = jnp.pad(params["w2"].reshape(9, c_mid, c_out),
                 ((0, 0), (0, c_mid_p - c_mid), (0, c_out_p - c_out))).astype(jnp.bfloat16)
    b2 = _pad_last(params["b2"], c_out_p)
    h1_img = h1.reshape(n, h, w, c_mid_p)
    h2, s2, q2 = _conv_stage(h1_img, w2, b2, sc1, sh1, th, c_out_p)
    sc2, sh2 = _bn_scale_shift(s2, q2, m, _pad_last(params["g2"], c_out_p),
                               _pad_last(params["bt2"], c_out_p))

    # ---- stage 3: BN2 affine + residual (1x1 conv or identity), fused ----
    h2_flat = h2.reshape(m, c_out_p)
    tm = m
    for cand in (4096, 2048, 1024, 512, 256, 128, 64, 32, 16, 8):
        if m % cand == 0:
            tm = cand
            break
    cparams = pltpu.CompilerParams(dimension_semantics=("parallel",),
                                   vmem_limit_bytes=VMEM_LIMIT)

    if "wr" in params:                                   # projection residual
        xr = x.reshape(m, c_in).astype(jnp.bfloat16)
        wr = _pad_last(params["wr"], c_out_p).astype(jnp.bfloat16)
        br = _pad_last(params["br"], c_out_p)
        out = pl.pallas_call(
            _bn_residual_proj_kernel,
            grid=(m // tm,),
            in_specs=[
                pl.BlockSpec((tm, c_out_p), lambda i: (i, 0)),
                pl.BlockSpec((1, c_out_p), lambda i: (0, 0)),
                pl.BlockSpec((1, c_out_p), lambda i: (0, 0)),
                pl.BlockSpec((tm, c_in), lambda i: (i, 0)),
                pl.BlockSpec((c_in, c_out_p), lambda i: (0, 0)),
                pl.BlockSpec((1, c_out_p), lambda i: (0, 0)),
            ],
            out_specs=pl.BlockSpec((tm, c_out_p), lambda i: (i, 0)),
            out_shape=jax.ShapeDtypeStruct((m, c_out_p), jnp.float32),
            compiler_params=cparams,
        )(h2_flat, sc2, sh2, xr, wr, br)
    else:                                                # identity residual
        xr = _pad_last(x.reshape(m, c_in), c_out_p)
        out = pl.pallas_call(
            _bn_residual_id_kernel,
            grid=(m // tm,),
            in_specs=[
                pl.BlockSpec((tm, c_out_p), lambda i: (i, 0)),
                pl.BlockSpec((1, c_out_p), lambda i: (0, 0)),
                pl.BlockSpec((1, c_out_p), lambda i: (0, 0)),
                pl.BlockSpec((tm, c_out_p), lambda i: (i, 0)),
            ],
            out_specs=pl.BlockSpec((tm, c_out_p), lambda i: (i, 0)),
            out_shape=jax.ShapeDtypeStruct((m, c_out_p), jnp.float32),
            compiler_params=cparams,
        )(h2_flat, sc2, sh2, xr)

    out = out.reshape(n, h, w, c_out_p)[..., :c_out]
    return jnp.transpose(out, (0, 3, 1, 2))              # back to NCHW


# --------------------------------------------------------------------------------------
# Params, pure-JAX reference, test
# --------------------------------------------------------------------------------------
def init_params(key, c_in, c_mid, c_out):
    ks = jax.random.split(key, 10)
    params = {
        "w1": 0.1 * jax.random.normal(ks[0], (3, 3, c_in, c_mid), jnp.float32),
        "b1": 0.05 * jax.random.normal(ks[1], (1, c_mid), jnp.float32),
        "g1": 1.0 + 0.1 * jax.random.normal(ks[2], (1, c_mid), jnp.float32),
        "bt1": 0.1 * jax.random.normal(ks[3], (1, c_mid), jnp.float32),
        "w2": 0.1 * jax.random.normal(ks[4], (3, 3, c_mid, c_out), jnp.float32),
        "b2": 0.05 * jax.random.normal(ks[5], (1, c_out), jnp.float32),
        "g2": 1.0 + 0.1 * jax.random.normal(ks[6], (1, c_out), jnp.float32),
        "bt2": 0.1 * jax.random.normal(ks[7], (1, c_out), jnp.float32),
    }
    if c_in != c_out:  # nn.Conv2d(c_in, c_out, 1); else nn.Identity()
        params["wr"] = 0.1 * jax.random.normal(ks[8], (c_in, c_out), jnp.float32)
        params["br"] = 0.05 * jax.random.normal(ks[9], (1, c_out), jnp.float32)
    return params


def _reference(x_nchw, params):
    """Pure-JAX f32 reference of the PyTorch forward (training-mode BN)."""
    x = jnp.transpose(x_nchw, (0, 2, 3, 1)).astype(jnp.float32)
    dn = ("NHWC", "HWIO", "NHWC")

    def bn(a, g, b):
        mean = jnp.mean(a, axis=(0, 1, 2), keepdims=True)
        var = jnp.mean((a - mean) ** 2, axis=(0, 1, 2), keepdims=True)
        return (a - mean) * jax.lax.rsqrt(var + EPS) * g.reshape(1, 1, 1, -1) + b.reshape(1, 1, 1, -1)

    a = jax.lax.conv_general_dilated(x, params["w1"], (1, 1), "SAME", dimension_numbers=dn)
    a = jnp.maximum(a + params["b1"].reshape(1, 1, 1, -1), 0.0)
    a = bn(a, params["g1"], params["bt1"])
    a = jax.lax.conv_general_dilated(a, params["w2"], (1, 1), "SAME", dimension_numbers=dn)
    a = jnp.maximum(a + params["b2"].reshape(1, 1, 1, -1), 0.0)
    a = bn(a, params["g2"], params["bt2"])
    if "wr" in params:
        resid = jnp.einsum("nhwc,cd->nhwd", x, params["wr"]) + params["br"].reshape(1, 1, 1, -1)
    else:
        resid = x
    return jnp.transpose(a + resid, (0, 3, 1, 2))


if __name__ == "__main__":
    key = jax.random.PRNGKey(0)
    k1, k2, k3, k4 = jax.random.split(key, 4)

    def _check(c_in, c_mid, c_out, kx, kp):
        x = jax.random.normal(kx, (2, c_in, 16, 16), jnp.float32)   # NCHW like PyTorch
        params = init_params(kp, c_in, c_mid, c_out)
        y = jax.block_until_ready(res_block(x, params))
        y_ref = _reference(x, params)
        assert y.shape == (2, c_out, 16, 16)
        # bf16 MXU operands through two convs + BN -> compare to the f32 reference loosely
        assert jnp.allclose(y, y_ref, atol=5e-2, rtol=5e-2)
        assert jnp.linalg.norm(y - y_ref) / jnp.linalg.norm(y_ref) < 3e-2

    _check(4, 8, 8, k1, k2)   # projection residual path (c_in != c_out)
    _check(8, 8, 8, k3, k4)   # identity residual path   (c_in == c_out)

    print("KERNEL_OK")
</pallas_src>

<mosaic_0001>
module attributes {stable_mosaic.version = 11 : i64} {
  func.func @_conv3x3_relu_stats_kernel(%arg0: i32, %arg1: memref<1x10x18x4xbf16, #tpu.memory_space<vmem>>, %arg2: memref<9x4x128xbf16, #tpu.memory_space<vmem>>, %arg3: memref<1x128xf32, #tpu.memory_space<vmem>>, %arg4: memref<8x16x128xbf16, #tpu.memory_space<vmem>>, %arg5: memref<1x2x128xf32, #tpu.memory_space<vmem>>) attributes {dimension_semantics = [#tpu.dimension_semantics<parallel>], iteration_bounds = array<i64: 4>, scalar_prefetch = 0 : i64, scratch_operands = 0 : i64, tpu.core_type = #tpu.core_type<tc>, window_params = [{transform_indices = @transform_0, window_bounds = array<i64: 1, 10, 18, 4>}, {pipeline_mode = #tpu.pipeline_mode<synchronous>, transform_indices = @transform_1, window_bounds = array<i64: 9, 4, 128>}, {pipeline_mode = #tpu.pipeline_mode<synchronous>, transform_indices = @transform_2, window_bounds = array<i64: 1, 128>}, {transform_indices = @transform_3, window_bounds = array<i64: 8, 16, 128>}, {transform_indices = @transform_4, window_bounds = array<i64: 1, 2, 128>}]} {
    %c0 = arith.constant 0 : index
    %c0_0 = arith.constant 0 : index
    %c0_1 = arith.constant 0 : index
    %c0_2 = arith.constant 0 : index
    %0 = vector.load %arg1[%c0, %c0_0, %c0_1, %c0_2] : memref<1x10x18x4xbf16, #tpu.memory_space<vmem>>, vector<1x10x18x4xbf16>
    %1 = vector.shape_cast %0 : vector<1x10x18x4xbf16> to vector<10x18x4xbf16>
    %cst = arith.constant 0.000000e+00 : f32
    %2 = vector.broadcast %cst : f32 to vector<128x128xf32>
    %3 = vector.extract_strided_slice %1 {offsets = [0, 0, 0], sizes = [10, 16, 4], strides = [1, 1, 1]} : vector<10x18x4xbf16> to vector<10x16x4xbf16>
    %4 = vector.shape_cast %3 : vector<10x16x4xbf16> to vector<160x4xbf16>
    %5 = vector.extract_strided_slice %4 {offsets = [0, 0], sizes = [128, 4], strides = [1, 1]} : vector<160x4xbf16> to vector<128x4xbf16>
    %c0_3 = arith.constant 0 : index
    %c0_4 = arith.constant 0 : index
    %c0_5 = arith.constant 0 : index
    %6 = vector.load %arg2[%c0_3, %c0_4, %c0_5] : memref<9x4x128xbf16, #tpu.memory_space<vmem>>, vector<1x4x128xbf16>
    %7 = vector.shape_cast %6 : vector<1x4x128xbf16> to vector<4x128xbf16>
    %cst_6 = arith.constant dense<0.000000e+00> : vector<128x128xf32>
    %8 = tpu.matmul %5, %7, %cst_6 {dimension_numbers = #tpu.dot_dimension_numbers<[1], [0], [0], [1], [0, 0, 1, 1], [], []>} : vector<128x4xbf16>, vector<4x128xbf16>, vector<128x128xf32> -> vector<128x128xf32>
    %9 = arith.addf %2, %8 : vector<128x128xf32>
    %10 = vector.extract_strided_slice %4 {offsets = [16, 0], sizes = [128, 4], strides = [1, 1]} : vector<160x4xbf16> to vector<128x4xbf16>
    %c3 = arith.constant 3 : index
    %c0_7 = arith.constant 0 : index
    %c0_8 = arith.constant 0 : index
    %11 = vector.load %arg2[%c3, %c0_7, %c0_8] : memref<9x4x128xbf16, #tpu.memory_space<vmem>>, vector<1x4x128xbf16>
    %12 = vector.shape_cast %11 : vector<1x4x128xbf16> to vector<4x128xbf16>
    %cst_9 = arith.constant dense<0.000000e+00> : vector<128x128xf32>
    %13 = tpu.matmul %10, %12, %cst_9 {dimension_numbers = #tpu.dot_dimension_numbers<[1], [0], [0], [1], [0, 0, 1, 1], [], []>} : vector<128x4xbf16>, vector<4x128xbf16>, vector<128x128xf32> -> vector<128x128xf32>
    %14 = arith.addf %9, %13 : vector<128x128xf32>
    %15 = vector.extract_strided_slice %4 {offsets = [32, 0], sizes = [128, 4], strides = [1, 1]} : vector<160x4xbf16> to vector<128x4xbf16>
    %c6 = arith.constant 6 : index
    %c0_10 = arith.constant 0 : index
    %c0_11 = arith.constant 0 : index
    %16 = vector.load %arg2[%c6, %c0_10, %c0_11] : memref<9x4x128xbf16, #tpu.memory_space<vmem>>, vector<1x4x128xbf16>
    %17 = vector.shape_cast %16 : vector<1x4x128xbf16> to vector<4x128xbf16>
    %cst_12 = arith.constant dense<0.000000e+00> : vector<128x128xf32>
    %18 = tpu.matmul %15, %17, %cst_12 {dimension_numbers = #tpu.dot_dimension_numbers<[1], [0], [0], [1], [0, 0, 1, 1], [], []>} : vector<128x4xbf16>, vector<4x128xbf16>, vector<128x128xf32> -> vector<128x128xf32>
    %19 = arith.addf %14, %18 : vector<128x128xf32>
    %20 = vector.extract_strided_slice %1 {offsets = [0, 1, 0], sizes = [10, 16, 4], strides = [1, 1, 1]} : vector<10x18x4xbf16> to vector<10x16x4xbf16>
    %21 = vector.shape_cast %20 : vector<10x16x4xbf16> to vector<160x4xbf16>
    %22 = vector.extract_strided_slice %21 {offsets = [0, 0], sizes = [128, 4], strides = [1, 1]} : vector<160x4xbf16> to vector<128x4xbf16>
    %c1 = arith.constant 1 : index
    %c0_13 = arith.constant 0 : index
    %c0_14 = arith.constant 0 : index
    %23 = vector.load %arg2[%c1, %c0_13, %c0_14] : memref<9x4x128xbf16, #tpu.memory_space<vmem>>, vector<1x4x128xbf16>
    %24 = vector.shape_cast %23 : vector<1x4x128xbf16> to vector<4x128xbf16>
    %cst_15 = arith.constant dense<0.000000e+00> : vector<128x128xf32>
    %25 = tpu.matmul %22, %24, %cst_15 {dimension_numbers = #tpu.dot_dimension_numbers<[1], [0], [0], [1], [0, 0, 1, 1], [], []>} : vector<128x4xbf16>, vector<4x128xbf16>, vector<128x128xf32> -> vector<128x128xf32>
    %26 = arith.addf %19, %25 : vector<128x128xf32>
    %27 = vector.extract_strided_slice %21 {offsets = [16, 0], sizes = [128, 4], strides = [1, 1]} : vector<160x4xbf16> to vector<128x4xbf16>
    %c4 = arith.constant 4 : index
    %c0_16 = arith.constant 0 : index
    %c0_17 = arith.constant 0 : index
    %28 = vector.load %arg2[%c4, %c0_16, %c0_17] : memref<9x4x128xbf16, #tpu.memory_space<vmem>>, vector<1x4x128xbf16>
    %29 = vector.shape_cast %28 : vector<1x4x128xbf16> to vector<4x128xbf16>
    %cst_18 = arith.constant dense<0.000000e+00> : vector<128x128xf32>
    %30 = tpu.matmul %27, %29, %cst_18 {dimension_numbers = #tpu.dot_dimension_numbers<[1], [0], [0], [1], [0, 0, 1, 1], [], []>} : vector<128x4xbf16>, vector<4x128xbf16>, vector<128x128xf32> -> vector<128x128xf32>
    %31 = arith.addf %26, %30 : vector<128x128xf32>
    %32 = vector.extract_strided_slice %21 {offsets = [32, 0], sizes = [128, 4], strides = [1, 1]} : vector<160x4xbf16> to vector<128x4xbf16>
    %c7 = arith.constant 7 : index
    %c0_19 = arith.constant 0 : index
    %c0_20 = arith.constant 0 : index
    %33 = vector.load %arg2[%c7, %c0_19, %c0_20] : memref<9x4x128xbf16, #tpu.memory_space<vmem>>, vector<1x4x128xbf16>
    %34 = vector.shape_cast %33 : vector<1x4x128xbf16> to vector<4x128xbf16>
    %cst_21 = arith.constant dense<0.000000e+00> : vector<128x128xf32>
    %35 = tpu.matmul %32, %34, %cst_21 {dimension_numbers = #tpu.dot_dimension_numbers<[1], [0], [0], [1], [0, 0, 1, 1], [], []>} : vector<128x4xbf16>, vector<4x128xbf16>, vector<128x128xf32> -> vector<128x128xf32>
    %36 = arith.addf %31, %35 : vector<128x128xf32>
    %37 = vector.extract_strided_slice %1 {offsets = [0, 2, 0], sizes = [10, 16, 4], strides = [1, 1, 1]} : vector<10x18x4xbf16> to vector<10x16x4xbf16>
    %38 = vector.shape_cast %37 : vector<10x16x4xbf16> to vector<160x4xbf16>
    %39 = vector.extract_strided_slice %38 {offsets = [0, 0], sizes = [128, 4], strides = [1, 1]} : vector<160x4xbf16> to vector<128x4xbf16>
    %c2 = arith.constant 2 : index
    %c0_22 = arith.constant 0 : index
    %c0_23 = arith.constant 0 : index
    %40 = vector.load %arg2[%c2, %c0_22, %c0_23] : memref<9x4x128xbf16, #tpu.memory_space<vmem>>, vector<1x4x128xbf16>
    %41 = vector.shape_cast %40 : vector<1x4x128xbf16> to vector<4x128xbf16>
    %cst_24 = arith.constant dense<0.000000e+00> : vector<128x128xf32>
    %42 = tpu.matmul %39, %41, %cst_24 {dimension_numbers = #tpu.dot_dimension_numbers<[1], [0], [0], [1], [0, 0, 1, 1], [], []>} : vector<128x4xbf16>, vector<4x128xbf16>, vector<128x128xf32> -> vector<128x128xf32>
    %43 = arith.addf %36, %42 : vector<128x128xf32>
    %44 = vector.extract_strided_slice %38 {offsets = [16, 0], sizes = [128, 4], strides = [1, 1]} : vector<160x4xbf16> to vector<128x4xbf16>
    %c5 = arith.constant 5 : index
    %c0_25 = arith.constant 0 : index
    %c0_26 = arith.constant 0 : index
    %45 = vector.load %arg2[%c5, %c0_25, %c0_26] : memref<9x4x128xbf16, #tpu.memory_space<vmem>>, vector<1x4x128xbf16>
    %46 = vector.shape_cast %45 : vector<1x4x128xbf16> to vector<4x128xbf16>
    %cst_27 = arith.constant dense<0.000000e+00> : vector<128x128xf32>
    %47 = tpu.matmul %44, %46, %cst_27 {dimension_numbers = #tpu.dot_dimension_numbers<[1], [0], [0], [1], [0, 0, 1, 1], [], []>} : vector<128x4xbf16>, vector<4x128xbf16>, vector<128x128xf32> -> vector<128x128xf32>
    %48 = arith.addf %43, %47 : vector<128x128xf32>
    %49 = vector.extract_strided_slice %38 {offsets = [32, 0], sizes = [128, 4], strides = [1, 1]} : vector<160x4xbf16> to vector<128x4xbf16>
    %c8 = arith.constant 8 : index
    %c0_28 = arith.constant 0 : index
    %c0_29 = arith.constant 0 : index
    %50 = vector.load %arg2[%c8, %c0_28, %c0_29] : memref<9x4x128xbf16, #tpu.memory_space<vmem>>, vector<1x4x128xbf16>
    %51 = vector.shape_cast %50 : vector<1x4x128xbf16> to vector<4x128xbf16>
    %cst_30 = arith.constant dense<0.000000e+00> : vector<128x128xf32>
    %52 = tpu.matmul %49, %51, %cst_30 {dimension_numbers = #tpu.dot_dimension_numbers<[1], [0], [0], [1], [0, 0, 1, 1], [], []>} : vector<128x4xbf16>, vector<4x128xbf16>, vector<128x128xf32> -> vector<128x128xf32>
    %53 = arith.addf %48, %52 : vector<128x128xf32>
    %c0_31 = arith.constant 0 : index
    %c0_32 = arith.constant 0 : index
    %54 = vector.load %arg3[%c0_31, %c0_32] : memref<1x128xf32, #tpu.memory_space<vmem>>, vector<1x128xf32>
    %55 = vector.broadcast %54 : vector<1x128xf32> to vector<128x128xf32>
    %56 = arith.addf %53, %55 : vector<128x128xf32>
    %cst_33 = arith.constant 0.000000e+00 : f32
    %57 = vector.broadcast %cst_33 : f32 to vector<128x128xf32>
    %58 = arith.maximumf %56, %57 : vector<128x128xf32>
    %59 = vector.shape_cast %58 : vector<128x128xf32> to vector<8x16x128xf32>
    %60 = arith.truncf %59 : vector<8x16x128xf32> to vector<8x16x128xbf16>
    %c0_34 = arith.constant 0 : index
    %c0_35 = arith.constant 0 : index
    %c0_36 = arith.constant 0 : index
    %61 = vector.load %arg4[%c0_34, %c0_35, %c0_36] : memref<8x16x128xbf16, #tpu.memory_space<vmem>>, vector<8x16x128xbf16>
    tpu.vector_store %arg4[%c0_34, %c0_35, %c0_36], %60 {strides = array<i32>} : memref<8x16x128xbf16, #tpu.memory_space<vmem>>, vector<8x16x128xbf16>,
    %cst_37 = arith.constant dense<0.000000e+00> : vector<128xf32>
    %62 = vector.multi_reduction <add>, %58, %cst_37 [0] : vector<128x128xf32> to vector<128xf32>
    %63 = vector.shape_cast %62 : vector<128xf32> to vector<1x128xf32>
    %64 = arith.mulf %58, %58 : vector<128x128xf32>
    %cst_38 = arith.constant dense<0.000000e+00> : vector<128xf32>
    %65 = vector.multi_reduction <add>, %64, %cst_38 [0] : vector<128x128xf32> to vector<128xf32>
    %66 = vector.shape_cast %65 : vector<128xf32> to vector<1x128xf32>
    %67 = tpu.concatenate %63, %66 in 0 : vector<1x128xf32>, vector<1x128xf32> -> vector<2x128xf32>
    %68 = vector.shape_cast %67 : vector<2x128xf32> to vector<1x2x128xf32>
    %c0_39 = arith.constant 0 : index
    %c0_40 = arith.constant 0 : index
    %c0_41 = arith.constant 0 : index
    %69 = vector.load %arg5[%c0_39, %c0_40, %c0_41] : memref<1x2x128xf32, #tpu.memory_space<vmem>>, vector<1x2x128xf32>
    tpu.vector_store %arg5[%c0_39, %c0_40, %c0_41], %68 {strides = array<i32>} : memref<1x2x128xf32, #tpu.memory_space<vmem>>, vector<1x2x128xf32>,
    return
  }
  func.func @transform_0(%arg0: i32) -> (i32, i32, i32, i32) {
    %c0_i32 = arith.constant 0 : i32
    %c0_i32_0 = arith.constant 0 : i32
    %c0_i32_1 = arith.constant 0 : i32
    %c0_i32_2 = arith.constant 0 : i32
    return %arg0, %c0_i32, %c0_i32_0, %c0_i32_1 : i32, i32, i32, i32
  }
  func.func @transform_1(%arg0: i32) -> (i32, i32, i32) {
    %c0_i32 = arith.constant 0 : i32
    %c0_i32_0 = arith.constant 0 : i32
    %c0_i32_1 = arith.constant 0 : i32
    %c0_i32_2 = arith.constant 0 : i32
    return %c0_i32, %c0_i32_0, %c0_i32_1 : i32, i32, i32
  }
  func.func @transform_2(%arg0: i32) -> (i32, i32) {
    %c0_i32 = arith.constant 0 : i32
    %c0_i32_0 = arith.constant 0 : i32
    %c0_i32_1 = arith.constant 0 : i32
    return %c0_i32, %c0_i32_0 : i32, i32
  }
  func.func @transform_3(%arg0: i32) -> (i32, i32, i32) {
    %c0_i32 = arith.constant 0 : i32
    %c0_i32_0 = arith.constant 0 : i32
    %c0_i32_1 = arith.constant 0 : i32
    return %arg0, %c0_i32, %c0_i32_0 : i32, i32, i32
  }
  func.func @transform_4(%arg0: i32) -> (i32, i32, i32) {
    %c0_i32 = arith.constant 0 : i32
    %c0_i32_0 = arith.constant 0 : i32
    %c0_i32_1 = arith.constant 0 : i32
    return %arg0, %c0_i32, %c0_i32_0 : i32, i32, i32
  }
}

module attributes {stable_mosaic.version = 11 : i64} {
  func.func @_bn_residual_proj_kernel(%arg0: i32, %arg1: memref<512x128xbf16, #tpu.memory_space<vmem>>, %arg2: memref<1x128xf32, #tpu.memory_space<vmem>>, %arg3: memref<1x128xf32, #tpu.memory_space<vmem>>, %arg4: memref<512x4xbf16, #tpu.memory_space<vmem>>, %arg5: memref<4x128xbf16, #tpu.memory_space<vmem>>, %arg6: memref<1x128xf32, #tpu.memory_space<vmem>>, %arg7: memref<512x128xf32, #tpu.memory_space<vmem>>) attributes {dimension_semantics = [#tpu.dimension_semantics<parallel>], iteration_bounds = array<i64: 1>, scalar_prefetch = 0 : i64, scratch_operands = 0 : i64, tpu.core_type = #tpu.core_type<tc>, window_params = [{transform_indices = @transform_0, window_bounds = array<i64: 512, 128>}, {pipeline_mode = #tpu.pipeline_mode<synchronous>, transform_indices = @transform_1, window_bounds = array<i64: 1, 128>}, {pipeline_mode = #tpu.pipeline_mode<synchronous>, transform_indices = @transform_2, window_bounds = array<i64: 1, 128>}, {transform_indices = @transform_3, window_bounds = array<i64: 512, 4>}, {pipeline_mode = #tpu.pipeline_mode<synchronous>, transform_indices = @transform_4, window_bounds = array<i64: 4, 128>}, {pipeline_mode = #tpu.pipeline_mode<synchronous>, transform_indices = @transform_5, window_bounds = array<i64: 1, 128>}, {transform_indices = @transform_6, window_bounds = array<i64: 512, 128>}]} {
    %c0 = arith.constant 0 : index
    %c0_0 = arith.constant 0 : index
    %0 = vector.load %arg1[%c0, %c0_0] : memref<512x128xbf16, #tpu.memory_space<vmem>>, vector<512x128xbf16>
    %1 = arith.extf %0 : vector<512x128xbf16> to vector<512x128xf32>
    %c0_1 = arith.constant 0 : index
    %c0_2 = arith.constant 0 : index
    %2 = vector.load %arg2[%c0_1, %c0_2] : memref<1x128xf32, #tpu.memory_space<vmem>>, vector<1x128xf32>
    %3 = vector.broadcast %2 : vector<1x128xf32> to vector<512x128xf32>
    %4 = arith.mulf %1, %3 : vector<512x128xf32>
    %c0_3 = arith.constant 0 : index
    %c0_4 = arith.constant 0 : index
    %5 = vector.load %arg3[%c0_3, %c0_4] : memref<1x128xf32, #tpu.memory_space<vmem>>, vector<1x128xf32>
    %6 = vector.broadcast %5 : vector<1x128xf32> to vector<512x128xf32>
    %7 = arith.addf %4, %6 : vector<512x128xf32>
    %c0_5 = arith.constant 0 : index
    %c0_6 = arith.constant 0 : index
    %8 = vector.load %arg4[%c0_5, %c0_6] : memref<512x4xbf16, #tpu.memory_space<vmem>>, vector<512x4xbf16>
    %c0_7 = arith.constant 0 : index
    %c0_8 = arith.constant 0 : index
    %9 = vector.load %arg5[%c0_7, %c0_8] : memref<4x128xbf16, #tpu.memory_space<vmem>>, vector<4x128xbf16>
    %cst = arith.constant dense<0.000000e+00> : vector<512x128xf32>
    %10 = tpu.matmul %8, %9, %cst {dimension_numbers = #tpu.dot_dimension_numbers<[1], [0], [0], [1], [0, 0, 1, 1], [], []>} : vector<512x4xbf16>, vector<4x128xbf16>, vector<512x128xf32> -> vector<512x128xf32>
    %c0_9 = arith.constant 0 : index
    %c0_10 = arith.constant 0 : index
    %11 = vector.load %arg6[%c0_9, %c0_10] : memref<1x128xf32, #tpu.memory_space<vmem>>, vector<1x128xf32>
    %12 = vector.broadcast %11 : vector<1x128xf32> to vector<512x128xf32>
    %13 = arith.addf %10, %12 : vector<512x128xf32>
    %14 = arith.addf %7, %13 : vector<512x128xf32>
    %c0_11 = arith.constant 0 : index
    %c0_12 = arith.constant 0 : index
    %15 = vector.load %arg7[%c0_11, %c0_12] : memref<512x128xf32, #tpu.memory_space<vmem>>, vector<512x128xf32>
    tpu.vector_store %arg7[%c0_11, %c0_12], %14 {strides = array<i32>} : memref<512x128xf32, #tpu.memory_space<vmem>>, vector<512x128xf32>,
    return
  }
  func.func @transform_0(%arg0: i32) -> (i32, i32) {
    %c0_i32 = arith.constant 0 : i32
    %c0_i32_0 = arith.constant 0 : i32
    return %arg0, %c0_i32 : i32, i32
  }
  func.func @transform_1(%arg0: i32) -> (i32, i32) {
    %c0_i32 = arith.constant 0 : i32
    %c0_i32_0 = arith.constant 0 : i32
    %c0_i32_1 = arith.constant 0 : i32
    return %c0_i32, %c0_i32_0 : i32, i32
  }
  func.func @transform_2(%arg0: i32) -> (i32, i32) {
    %c0_i32 = arith.constant 0 : i32
    %c0_i32_0 = arith.constant 0 : i32
    %c0_i32_1 = arith.constant 0 : i32
    return %c0_i32, %c0_i32_0 : i32, i32
  }
  func.func @transform_3(%arg0: i32) -> (i32, i32) {
    %c0_i32 = arith.constant 0 : i32
    %c0_i32_0 = arith.constant 0 : i32
    return %arg0, %c0_i32 : i32, i32
  }
  func.func @transform_4(%arg0: i32) -> (i32, i32) {
    %c0_i32 = arith.constant 0 : i32
    %c0_i32_0 = arith.constant 0 : i32
    %c0_i32_1 = arith.constant 0 : i32
    return %c0_i32, %c0_i32_0 : i32, i32
  }
  func.func @transform_5(%arg0: i32) -> (i32, i32) {
    %c0_i32 = arith.constant 0 : i32
    %c0_i32_0 = arith.constant 0 : i32
    %c0_i32_1 = arith.constant 0 : i32
    return %c0_i32, %c0_i32_0 : i32, i32
  }
  func.func @transform_6(%arg0: i32) -> (i32, i32) {
    %c0_i32 = arith.constant 0 : i32
    %c0_i32_0 = arith.constant 0 : i32
    return %arg0, %c0_i32 : i32, i32
  }
}

module attributes {stable_mosaic.version = 11 : i64} {
  func.func @_conv3x3_relu_stats_kernel(%arg0: i32, %arg1: memref<1x10x18x128xbf16, #tpu.memory_space<vmem>>, %arg2: memref<9x128x128xbf16, #tpu.memory_space<vmem>>, %arg3: memref<1x128xf32, #tpu.memory_space<vmem>>, %arg4: memref<1x128xf32, #tpu.memory_space<vmem>>, %arg5: memref<1x128xf32, #tpu.memory_space<vmem>>, %arg6: memref<8x16x128xbf16, #tpu.memory_space<vmem>>, %arg7: memref<1x2x128xf32, #tpu.memory_space<vmem>>) attributes {dimension_semantics = [#tpu.dimension_semantics<parallel>], iteration_bounds = array<i64: 4>, scalar_prefetch = 0 : i64, scratch_operands = 0 : i64, tpu.core_type = #tpu.core_type<tc>, window_params = [{transform_indices = @transform_0, window_bounds = array<i64: 1, 10, 18, 128>}, {pipeline_mode = #tpu.pipeline_mode<synchronous>, transform_indices = @transform_1, window_bounds = array<i64: 9, 128, 128>}, {pipeline_mode = #tpu.pipeline_mode<synchronous>, transform_indices = @transform_2, window_bounds = array<i64: 1, 128>}, {pipeline_mode = #tpu.pipeline_mode<synchronous>, transform_indices = @transform_3, window_bounds = array<i64: 1, 128>}, {pipeline_mode = #tpu.pipeline_mode<synchronous>, transform_indices = @transform_4, window_bounds = array<i64: 1, 128>}, {transform_indices = @transform_5, window_bounds = array<i64: 8, 16, 128>}, {transform_indices = @transform_6, window_bounds = array<i64: 1, 2, 128>}]} {
    %c0 = arith.constant 0 : index
    %c0_0 = arith.constant 0 : index
    %c0_1 = arith.constant 0 : index
    %c0_2 = arith.constant 0 : index
    %0 = vector.load %arg1[%c0, %c0_0, %c0_1, %c0_2] : memref<1x10x18x128xbf16, #tpu.memory_space<vmem>>, vector<1x10x18x128xbf16>
    %1 = vector.shape_cast %0 : vector<1x10x18x128xbf16> to vector<10x18x128xbf16>
    %c2_i32 = arith.constant 2 : i32
    %c0_i32 = arith.constant 0 : i32
    %2 = arith.cmpi eq, %c2_i32, %c0_i32 : i32
    %c1_i32 = arith.constant 1 : i32
    %3 = arith.select %2, %c1_i32, %c2_i32 : i32
    %4 = arith.remsi %arg0, %3 : i32
    %c0_i32_3 = arith.constant 0 : i32
    %5 = arith.cmpi ne, %4, %c0_i32_3 : i32
    %c0_i32_4 = arith.constant 0 : i32
    %6 = arith.cmpi slt, %4, %c0_i32_4 : i32
    %c0_i32_5 = arith.constant 0 : i32
    %7 = arith.cmpi slt, %3, %c0_i32_5 : i32
    %8 = arith.xori %6, %7 : i1
    %9 = arith.andi %8, %5 : i1
    %10 = arith.addi %4, %3 : i32
    %11 = arith.select %9, %10, %4 : i32
    %c8_i32 = arith.constant 8 : i32
    %12 = arith.muli %11, %c8_i32 : i32
    %13 = tpu.iota {dimensions = array<i32: 0>} : vector<10x18xi32>
    %14 = vector.broadcast %12 : i32 to vector<10x18xi32>
    %15 = arith.addi %14, %13 : vector<10x18xi32>
    %16 = tpu.iota {dimensions = array<i32: 1>} : vector<10x18xi32>
    %c1_i32_6 = arith.constant 1 : i32
    %17 = vector.broadcast %c1_i32_6 : i32 to vector<10x18xi32>
    %18 = arith.cmpi sge, %15, %17 : vector<10x18xi32>
    %c16_i32 = arith.constant 16 : i32
    %19 = vector.broadcast %c16_i32 : i32 to vector<10x18xi32>
    %20 = arith.cmpi sle, %15, %19 : vector<10x18xi32>
    %21 = arith.andi %18, %20 : vector<10x18xi1>
    %c1_i32_7 = arith.constant 1 : i32
    %22 = vector.broadcast %c1_i32_7 : i32 to vector<10x18xi32>
    %23 = arith.cmpi sge, %16, %22 : vector<10x18xi32>
    %24 = arith.andi %21, %23 : vector<10x18xi1>
    %c16_i32_8 = arith.constant 16 : i32
    %25 = vector.broadcast %c16_i32_8 : i32 to vector<10x18xi32>
    %26 = arith.cmpi sle, %16, %25 : vector<10x18xi32>
    %27 = arith.andi %24, %26 : vector<10x18xi1>
    %28 = arith.extf %1 : vector<10x18x128xbf16> to vector<10x18x128xf32>
    %c0_9 = arith.constant 0 : index
    %c0_10 = arith.constant 0 : index
    %29 = vector.load %arg4[%c0_9, %c0_10] : memref<1x128xf32, #tpu.memory_space<vmem>>, vector<1x128xf32>
    %30 = vector.shape_cast %29 : vector<1x128xf32> to vector<1x1x128xf32>
    %31 = vector.broadcast %30 : vector<1x1x128xf32> to vector<10x18x128xf32>
    %32 = arith.mulf %28, %31 : vector<10x18x128xf32>
    %c0_11 = arith.constant 0 : index
    %c0_12 = arith.constant 0 : index
    %33 = vector.load %arg5[%c0_11, %c0_12] : memref<1x128xf32, #tpu.memory_space<vmem>>, vector<1x128xf32>
    %34 = arith.extui %27 : vector<10x18xi1> to vector<10x18xi32>
    %35 = arith.sitofp %34 : vector<10x18xi32> to vector<10x18xf32>
    %36 = vector.shape_cast %35 : vector<10x18xf32> to vector<10x18x1xf32>
    %37 = vector.shape_cast %33 : vector<1x128xf32> to vector<1x1x128xf32>
    %38 = vector.broadcast %37 : vector<1x1x128xf32> to vector<10x18x128xf32>
    %39 = vector.broadcast %36 : vector<10x18x1xf32> to vector<10x18x128xf32>
    %40 = arith.mulf %38, %39 : vector<10x18x128xf32>
    %41 = arith.addf %32, %40 : vector<10x18x128xf32>
    %42 = arith.truncf %41 : vector<10x18x128xf32> to vector<10x18x128xbf16>
    %cst = arith.constant 0.000000e+00 : f32
    %43 = vector.broadcast %cst : f32 to vector<128x128xf32>
    %44 = vector.extract_strided_slice %42 {offsets = [0, 0, 0], sizes = [10, 16, 128], strides = [1, 1, 1]} : vector<10x18x128xbf16> to vector<10x16x128xbf16>
    %45 = vector.shape_cast %44 : vector<10x16x128xbf16> to vector<160x128xbf16>
    %46 = vector.extract_strided_slice %45 {offsets = [0, 0], sizes = [128, 128], strides = [1, 1]} : vector<160x128xbf16> to vector<128x128xbf16>
    %c0_13 = arith.constant 0 : index
    %c0_14 = arith.constant 0 : index
    %c0_15 = arith.constant 0 : index
    %47 = vector.load %arg2[%c0_13, %c0_14, %c0_15] : memref<9x128x128xbf16, #tpu.memory_space<vmem>>, vector<1x128x128xbf16>
    %48 = vector.shape_cast %47 : vector<1x128x128xbf16> to vector<128x128xbf16>
    %cst_16 = arith.constant dense<0.000000e+00> : vector<128x128xf32>
    %49 = tpu.matmul %46, %48, %cst_16 {dimension_numbers = #tpu.dot_dimension_numbers<[1], [0], [0], [1], [0, 0, 1, 1], [], []>} : vector<128x128xbf16>, vector<128x128xbf16>, vector<128x128xf32> -> vector<128x128xf32>
    %50 = arith.addf %43, %49 : vector<128x128xf32>
    %51 = vector.extract_strided_slice %45 {offsets = [16, 0], sizes = [128, 128], strides = [1, 1]} : vector<160x128xbf16> to vector<128x128xbf16>
    %c3 = arith.constant 3 : index
    %c0_17 = arith.constant 0 : index
    %c0_18 = arith.constant 0 : index
    %52 = vector.load %arg2[%c3, %c0_17, %c0_18] : memref<9x128x128xbf16, #tpu.memory_space<vmem>>, vector<1x128x128xbf16>
    %53 = vector.shape_cast %52 : vector<1x128x128xbf16> to vector<128x128xbf16>
    %cst_19 = arith.constant dense<0.000000e+00> : vector<128x128xf32>
    %54 = tpu.matmul %51, %53, %cst_19 {dimension_numbers = #tpu.dot_dimension_numbers<[1], [0], [0], [1], [0, 0, 1, 1], [], []>} : vector<128x128xbf16>, vector<128x128xbf16>, vector<128x128xf32> -> vector<128x128xf32>
    %55 = arith.addf %50, %54 : vector<128x128xf32>
    %56 = vector.extract_strided_slice %45 {offsets = [32, 0], sizes = [128, 128], strides = [1, 1]} : vector<160x128xbf16> to vector<128x128xbf16>
    %c6 = arith.constant 6 : index
    %c0_20 = arith.constant 0 : index
    %c0_21 = arith.constant 0 : index
    %57 = vector.load %arg2[%c6, %c0_20, %c0_21] : memref<9x128x128xbf16, #tpu.memory_space<vmem>>, vector<1x128x128xbf16>
    %58 = vector.shape_cast %57 : vector<1x128x128xbf16> to vector<128x128xbf16>
    %cst_22 = arith.constant dense<0.000000e+00> : vector<128x128xf32>
    %59 = tpu.matmul %56, %58, %cst_22 {dimension_numbers = #tpu.dot_dimension_numbers<[1], [0], [0], [1], [0, 0, 1, 1], [], []>} : vector<128x128xbf16>, vector<128x128xbf16>, vector<128x128xf32> -> vector<128x128xf32>
    %60 = arith.addf %55, %59 : vector<128x128xf32>
    %61 = vector.extract_strided_slice %42 {offsets = [0, 1, 0], sizes = [10, 16, 128], strides = [1, 1, 1]} : vector<10x18x128xbf16> to vector<10x16x128xbf16>
    %62 = vector.shape_cast %61 : vector<10x16x128xbf16> to vector<160x128xbf16>
    %63 = vector.extract_strided_slice %62 {offsets = [0, 0], sizes = [128, 128], strides = [1, 1]} : vector<160x128xbf16> to vector<128x128xbf16>
    %c1 = arith.constant 1 : index
    %c0_23 = arith.constant 0 : index
    %c0_24 = arith.constant 0 : index
    %64 = vector.load %arg2[%c1, %c0_23, %c0_24] : memref<9x128x128xbf16, #tpu.memory_space<vmem>>, vector<1x128x128xbf16>
    %65 = vector.shape_cast %64 : vector<1x128x128xbf16> to vector<128x128xbf16>
    %cst_25 = arith.constant dense<0.000000e+00> : vector<128x128xf32>
    %66 = tpu.matmul %63, %65, %cst_25 {dimension_numbers = #tpu.dot_dimension_numbers<[1], [0], [0], [1], [0, 0, 1, 1], [], []>} : vector<128x128xbf16>, vector<128x128xbf16>, vector<128x128xf32> -> vector<128x128xf32>
    %67 = arith.addf %60, %66 : vector<128x128xf32>
    %68 = vector.extract_strided_slice %62 {offsets = [16, 0], sizes = [128, 128], strides = [1, 1]} : vector<160x128xbf16> to vector<128x128xbf16>
    %c4 = arith.constant 4 : index
    %c0_26 = arith.constant 0 : index
    %c0_27 = arith.constant 0 : index
    %69 = vector.load %arg2[%c4, %c0_26, %c0_27] : memref<9x128x128xbf16, #tpu.memory_space<vmem>>, vector<1x128x128xbf16>
    %70 = vector.shape_cast %69 : vector<1x128x128xbf16> to vector<128x128xbf16>
    %cst_28 = arith.constant dense<0.000000e+00> : vector<128x128xf32>
    %71 = tpu.matmul %68, %70, %cst_28 {dimension_numbers = #tpu.dot_dimension_numbers<[1], [0], [0], [1], [0, 0, 1, 1], [], []>} : vector<128x128xbf16>, vector<128x128xbf16>, vector<128x128xf32> -> vector<128x128xf32>
    %72 = arith.addf %67, %71 : vector<128x128xf32>
    %73 = vector.extract_strided_slice %62 {offsets = [32, 0], sizes = [128, 128], strides = [1, 1]} : vector<160x128xbf16> to vector<128x128xbf16>
    %c7 = arith.constant 7 : index
    %c0_29 = arith.constant 0 : index
    %c0_30 = arith.constant 0 : index
    %74 = vector.load %arg2[%c7, %c0_29, %c0_30] : memref<9x128x128xbf16, #tpu.memory_space<vmem>>, vector<1x128x128xbf16>
    %75 = vector.shape_cast %74 : vector<1x128x128xbf16> to vector<128x128xbf16>
    %cst_31 = arith.constant dense<0.000000e+00> : vector<128x128xf32>
    %76 = tpu.matmul %73, %75, %cst_31 {dimension_numbers = #tpu.dot_dimension_numbers<[1], [0], [0], [1], [0, 0, 1, 1], [], []>} : vector<128x128xbf16>, vector<128x128xbf16>, vector<128x128xf32> -> vector<128x128xf32>
    %77 = arith.addf %72, %76 : vector<128x128xf32>
    %78 = vector.extract_strided_slice %42 {offsets = [0, 2, 0], sizes = [10, 16, 128], strides = [1, 1, 1]} : vector<10x18x128xbf16> to vector<10x16x128xbf16>
    %79 = vector.shape_cast %78 : vector<10x16x128xbf16> to vector<160x128xbf16>
    %80 = vector.extract_strided_slice %79 {offsets = [0, 0], sizes = [128, 128], strides = [1, 1]} : vector<160x128xbf16> to vector<128x128xbf16>
    %c2 = arith.constant 2 : index
    %c0_32 = arith.constant 0 : index
    %c0_33 = arith.constant 0 : index
    %81 = vector.load %arg2[%c2, %c0_32, %c0_33] : memref<9x128x128xbf16, #tpu.memory_space<vmem>>, vector<1x128x128xbf16>
    %82 = vector.shape_cast %81 : vector<1x128x128xbf16> to vector<128x128xbf16>
    %cst_34 = arith.constant dense<0.000000e+00> : vector<128x128xf32>
    %83 = tpu.matmul %80, %82, %cst_34 {dimension_numbers = #tpu.dot_dimension_numbers<[1], [0], [0], [1], [0, 0, 1, 1], [], []>} : vector<128x128xbf16>, vector<128x128xbf16>, vector<128x128xf32> -> vector<128x128xf32>
    %84 = arith.addf %77, %83 : vector<128x128xf32>
    %85 = vector.extract_strided_slice %79 {offsets = [16, 0], sizes = [128, 128], strides = [1, 1]} : vector<160x128xbf16> to vector<128x128xbf16>
    %c5 = arith.constant 5 : index
    %c0_35 = arith.constant 0 : index
    %c0_36 = arith.constant 0 : index
    %86 = vector.load %arg2[%c5, %c0_35, %c0_36] : memref<9x128x128xbf16, #tpu.memory_space<vmem>>, vector<1x128x128xbf16>
    %87 = vector.shape_cast %86 : vector<1x128x128xbf16> to vector<128x128xbf16>
    %cst_37 = arith.constant dense<0.000000e+00> : vector<128x128xf32>
    %88 = tpu.matmul %85, %87, %cst_37 {dimension_numbers = #tpu.dot_dimension_numbers<[1], [0], [0], [1], [0, 0, 1, 1], [], []>} : vector<128x128xbf16>, vector<128x128xbf16>, vector<128x128xf32> -> vector<128x128xf32>
    %89 = arith.addf %84, %88 : vector<128x128xf32>
    %90 = vector.extract_strided_slice %79 {offsets = [32, 0], sizes = [128, 128], strides = [1, 1]} : vector<160x128xbf16> to vector<128x128xbf16>
    %c8 = arith.constant 8 : index
    %c0_38 = arith.constant 0 : index
    %c0_39 = arith.constant 0 : index
    %91 = vector.load %arg2[%c8, %c0_38, %c0_39] : memref<9x128x128xbf16, #tpu.memory_space<vmem>>, vector<1x128x128xbf16>
    %92 = vector.shape_cast %91 : vector<1x128x128xbf16> to vector<128x128xbf16>
    %cst_40 = arith.constant dense<0.000000e+00> : vector<128x128xf32>
    %93 = tpu.matmul %90, %92, %cst_40 {dimension_numbers = #tpu.dot_dimension_numbers<[1], [0], [0], [1], [0, 0, 1, 1], [], []>} : vector<128x128xbf16>, vector<128x128xbf16>, vector<128x128xf32> -> vector<128x128xf32>
    %94 = arith.addf %89, %93 : vector<128x128xf32>
    %c0_41 = arith.constant 0 : index
    %c0_42 = arith.constant 0 : index
    %95 = vector.load %arg3[%c0_41, %c0_42] : memref<1x128xf32, #tpu.memory_space<vmem>>, vector<1x128xf32>
    %96 = vector.broadcast %95 : vector<1x128xf32> to vector<128x128xf32>
    %97 = arith.addf %94, %96 : vector<128x128xf32>
    %cst_43 = arith.constant 0.000000e+00 : f32
    %98 = vector.broadcast %cst_43 : f32 to vector<128x128xf32>
    %99 = arith.maximumf %97, %98 : vector<128x128xf32>
    %100 = vector.shape_cast %99 : vector<128x128xf32> to vector<8x16x128xf32>
    %101 = arith.truncf %100 : vector<8x16x128xf32> to vector<8x16x128xbf16>
    %c0_44 = arith.constant 0 : index
    %c0_45 = arith.constant 0 : index
    %c0_46 = arith.constant 0 : index
    %102 = vector.load %arg6[%c0_44, %c0_45, %c0_46] : memref<8x16x128xbf16, #tpu.memory_space<vmem>>, vector<8x16x128xbf16>
    tpu.vector_store %arg6[%c0_44, %c0_45, %c0_46], %101 {strides = array<i32>} : memref<8x16x128xbf16, #tpu.memory_space<vmem>>, vector<8x16x128xbf16>,
    %cst_47 = arith.constant dense<0.000000e+00> : vector<128xf32>
    %103 = vector.multi_reduction <add>, %99, %cst_47 [0] : vector<128x128xf32> to vector<128xf32>
    %104 = vector.shape_cast %103 : vector<128xf32> to vector<1x128xf32>
    %105 = arith.mulf %99, %99 : vector<128x128xf32>
    %cst_48 = arith.constant dense<0.000000e+00> : vector<128xf32>
    %106 = vector.multi_reduction <add>, %105, %cst_48 [0] : vector<128x128xf32> to vector<128xf32>
    %107 = vector.shape_cast %106 : vector<128xf32> to vector<1x128xf32>
    %108 = tpu.concatenate %104, %107 in 0 : vector<1x128xf32>, vector<1x128xf32> -> vector<2x128xf32>
    %109 = vector.shape_cast %108 : vector<2x128xf32> to vector<1x2x128xf32>
    %c0_49 = arith.constant 0 : index
    %c0_50 = arith.constant 0 : index
    %c0_51 = arith.constant 0 : index
    %110 = vector.load %arg7[%c0_49, %c0_50, %c0_51] : memref<1x2x128xf32, #tpu.memory_space<vmem>>, vector<1x2x128xf32>
    tpu.vector_store %arg7[%c0_49, %c0_50, %c0_51], %109 {strides = array<i32>} : memref<1x2x128xf32, #tpu.memory_space<vmem>>, vector<1x2x128xf32>,
    return
  }
  func.func @transform_0(%arg0: i32) -> (i32, i32, i32, i32) {
    %c0_i32 = arith.constant 0 : i32
    %c0_i32_0 = arith.constant 0 : i32
    %c0_i32_1 = arith.constant 0 : i32
    %c0_i32_2 = arith.constant 0 : i32
    return %arg0, %c0_i32, %c0_i32_0, %c0_i32_1 : i32, i32, i32, i32
  }
  func.func @transform_1(%arg0: i32) -> (i32, i32, i32) {
    %c0_i32 = arith.constant 0 : i32
    %c0_i32_0 = arith.constant 0 : i32
    %c0_i32_1 = arith.constant 0 : i32
    %c0_i32_2 = arith.constant 0 : i32
    return %c0_i32, %c0_i32_0, %c0_i32_1 : i32, i32, i32
  }
  func.func @transform_2(%arg0: i32) -> (i32, i32) {
    %c0_i32 = arith.constant 0 : i32
    %c0_i32_0 = arith.constant 0 : i32
    %c0_i32_1 = arith.constant 0 : i32
    return %c0_i32, %c0_i32_0 : i32, i32
  }
  func.func @transform_3(%arg0: i32) -> (i32, i32) {
    %c0_i32 = arith.constant 0 : i32
    %c0_i32_0 = arith.constant 0 : i32
    %c0_i32_1 = arith.constant 0 : i32
    return %c0_i32, %c0_i32_0 : i32, i32
  }
  func.func @transform_4(%arg0: i32) -> (i32, i32) {
    %c0_i32 = arith.constant 0 : i32
    %c0_i32_0 = arith.constant 0 : i32
    %c0_i32_1 = arith.constant 0 : i32
    return %c0_i32, %c0_i32_0 : i32, i32
  }
  func.func @transform_5(%arg0: i32) -> (i32, i32, i32) {
    %c0_i32 = arith.constant 0 : i32
    %c0_i32_0 = arith.constant 0 : i32
    %c0_i32_1 = arith.constant 0 : i32
    return %arg0, %c0_i32, %c0_i32_0 : i32, i32, i32
  }
  func.func @transform_6(%arg0: i32) -> (i32, i32, i32) {
    %c0_i32 = arith.constant 0 : i32
    %c0_i32_0 = arith.constant 0 : i32
    %c0_i32_1 = arith.constant 0 : i32
    return %arg0, %c0_i32, %c0_i32_0 : i32, i32, i32
  }
}

</mosaic_0001>

<bundles_post_ra>
// kernel: res_block.3
= control target key start
LH: loop header
LB: loop body
LE: loop exit
PB: predicated region body
PF: predicated region fallthrough
CT: control target
= control target key end

     0   :  { %s1832_s15 = smov 0   ;;  %s2442_s0 = inlined_call_operand.vmem [shape: bf16[4,10,18,4], index: 0, kind: input, shape index: {}]   ;;  %s2443_s1 = inlined_call_operand.vmem [shape: bf16[9,4,128], index: 1, kind: input, shape index: {}]   ;;  %s2444_s2 = inlined_call_operand.vmem [shape: f32[1,128], index: 2, kind: input, shape index: {}]   ;;  %s2445_s3 = inlined_call_operand.vmem [shape: bf16[32,16,128], index: 3, kind: output, shape index: {0}]   ;;  %s2446_s4 = inlined_call_operand.vmem [shape: f32[4,2,128], index: 4, kind: output, shape index: {1}]  }
   0x1 LB: > { %s1838_s16 = sadd.s32 4294967295, %s1805_s15   ;;  %p1590_p0 = scmp.ge.s32.totalorder %s1805_s15, 1  ;;  %s1805_s15 = sphi %s1832_s15, %s15_s15  }
   0x2   : > { %p165_p1 = scmp.lt.s32.totalorder %s1805_s15, 5 }
   0x4   : > { %p166_p2 = pnand %p1590_p0, %p165_p1 }
   0x5   : > { %p196_p3 = scmp.lt.s32.totalorder (!%p166_p2), %s1838_s16, 3  ;;  %s1592_s14 = sshll.u32 (!%p166_p2), %s1838_s16, 3 }
   0x6   : > { %169 = sbr.rel (%p166_p2) target bundleno = 459 (0x1cb), region = 32  ;;  %p202_p4 = scmp.lt.s32.totalorder (!%p166_p2), %s1592_s14, 31 }
   0xb   : > { %v1596_v0 = vld [vmem:[%s2443_s1 + $0x6] sm:$0x3]  ;;  %vm311_vm0 = vcmask 1041408   ;;  %v1649_v2 = vld [vmem:[%s2443_s1 + $0xc] sm:$0x3]  ;;  %s1854_s23 = scalar_select %p196_p3, %s1838_s16, 3 }
   0xc   : > { %v313_v1 = vsel %vm311_vm0, %v1596_v0, 0  ;;  %v1662_v3 = vld [vmem:[%s2443_s1 + $0x2] sm:$0x3]  ;;  %v435_v4 = vsel %vm311_vm0, %v1649_v2, 0  ;;  %v243_v6 = vld [vmem:[%s2443_s1] sm:$0x3] }
   0xd   : > { %1786 = vmatpush.bf16.msra.mxu1 %v313_v1  ;;  %1787 = vmatpush.bf16.msra.mxu2 %v313_v1  ;;  %v796_v5 = vsel %vm311_vm0, %v1662_v3, 0  ;;  %v373_v7 = vsel %vm311_vm0, %v243_v6, 0  ;;  %v1671_v8 = vld [vmem:[%s2443_s1 + $0x8] sm:$0x3]  ;;  %s1789_s28 = smul.u32 120, %s1854_s23  ;;  %vm286_vm1 = vcmask 31744  }
   0xe   : > { %1788 = vmatpush.bf16.msra.mxu3 %v313_v1  ;;  %322 = vmatpush.bf16.msra.mxu0 %v313_v1  ;;  %v872_v9 = vsel %vm311_vm0, %v1671_v8, 0  ;;  %v1699_v16 = vld [vmem:[%s2443_s1 + $0x4] sm:$0x3]  ;;  %v1708_v28 = vld [vmem:[%s2443_s1 + $0xa] sm:$0x3]  ;;  %vm1025_vm5 = vcmask 1042432  }
   0xf   : > { %s1870_s5 = scalar_lea.vmem %s2442_s0, %s1789_s28  ;;  %v1149_v17 = vsel %vm311_vm0, %v1699_v16, 0  ;;  %v1680_v29 = vld [vmem:[%s2443_s1 + $0xe] sm:$0x3]  ;;  %v1717_v30 = vld [vmem:[%s2443_s1 + $0x10] sm:$0x3]  ;;  %v1225_v35 = vsel %vm311_vm0, %v1708_v28, 0 }
  0x10   : > { %v1873_v10 = vld [vmem:[%s1870_s5 + $0x24] sm:$0xff]  ;;  %v1876_v11 = vld [vmem:[%s1870_s5 + $0x3c] sm:$0xff]  ;;  %v1879_v12 = vld [vmem:[%s1870_s5 + $0x54] sm:$0xff]  ;;  %v948_v36 = vsel %vm311_vm0, %v1680_v29, 0  ;;  %v1301_v37 = vsel %vm311_vm0, %v1717_v30, 0  ;;  %vm1026_vm6 = vcmask 1046532  }
  0x11   : > { %444 = vmatpush.bf16.msrb.mxu2 %v435_v4  ;;  %382 = vmatpush.bf16.msrb.mxu1 %v373_v7  ;;  %v1882_v13 = vld [vmem:[%s1870_s5 + $0xc] sm:$0xff]  ;;  %v1893_v14 = vld [vmem:[%s1870_s5] sm:$0xf]  ;;  %v1896_v15 = vld [vmem:[%s1870_s5 + $0x4] sm:$0xf]  ;;  %s2452_s14 = smov (!%p202_p4, %s1592_s14), 31 }
  0x12   : > { %805 = vmatpush.bf16.msrb.mxu3 %v796_v5  ;;  %881 = vmatpush.bf16.msrb.mxu0 %v872_v9  ;;  %v1903_v18 = vld [vmem:[%s1870_s5 + $0xc] sm:$0xf]  ;;  %v506_v19 = vshrl.u32 %v1893_v14, 16  ;;  %v509_v20 = vshll.u32 %v1893_v14, 16  ;;  %v515_v21 = vshll.u32 %v1896_v15, 16  ;;  %v519_v23 = vshrl.u32 %v1896_v15, 16  ;;  %vm2151_vm7 = vmor %vm1025_vm5, %vm1026_vm6 }
  0x13   : > { %1631 = vmatmul.msk.bf16.vlgmr.msra.gmra.mxu1 %vm286_vm1, %v1873_v10  ;;  %1633 = vmatmul.msk.bf16.vlgmr.msra.gmra.mxu2 %vm286_vm1, %v1876_v11  ;;  %v1909_v22 = vld [vmem:[%s1870_s5 + $0x10] sm:$0xf]  ;;  %v530_v24 = vshrl.u32 %v1903_v18, 16  ;;  %v533_v25 = vshll.u32 %v1903_v18, 16  ;;  %v1929_v38 = vld [vmem:[%s1870_s5 + $0x8] sm:$0x1] }
  0x14   : > { %1635 = vmatmul.msk.bf16.vlgmr.msra.gmra.mxu3 %vm286_vm1, %v1879_v12  ;;  %1629 = vmatmul.msk.bf16.vlgmr.msra.gmra.mxu0 %vm286_vm1, %v1882_v13  ;;  %v539_v26 = vshll.u32 %v1909_v22, 16  ;;  %v543_v27 = vshrl.u32 %v1909_v22, 16  ;;  %v508_v31 = vrot.slane %v506_v19, 4  ;;  %v511_v32 = vrot.slane %v509_v20, 5  ;;  %v1932_v43 = vld [vmem:[%s1870_s5 + $0x14] sm:$0x1] }
  0x15   : > { %1158 = vmatpush.bf16.msra.mxu2 %v1149_v17  ;;  %v517_v33 = vrot.slane %v515_v21, 5  ;;  %v521_v34 = vrot.slane %v519_v23, 4  ;;  %v532_v39 = vrot.slane %v530_v24, 4  ;;  %v535_v40 = vrot.slane %v533_v25, 5  ;;  %957 = vmatpush.bf16.msra.mxu1 %v948_v36  ;;  %v1935_v44 = vld [vmem:[%s1870_s5 + $0x30] sm:$0xff]  ;;  %v1938_v45 = vld [vmem:[%s1870_s5 + $0x48] sm:$0xff] }
  0x16   : > { %v541_v41 = vrot.slane %v539_v26, 5  ;;  %v545_v42 = vrot.slane %v543_v27, 4  ;;  %1234 = vmatpush.bf16.msra.mxu3 %v1225_v35  ;;  %1310 = vmatpush.bf16.msra.mxu0 %v1301_v37  ;;  %v1941_v46 = vld [vmem:[%s1870_s5 + $0x60] sm:$0xff]  ;;  %v1944_v47 = vld [vmem:[%s1870_s5 + $0x18] sm:$0xff]  ;;  %v512_v48 = vor.u32 %v511_v32, %v508_v31  ;;  %v525_v49 = vshll.u32 %v1929_v38, 16  ;;  %s1728_s16 = sshll.u32 %s2452_s14, 3 }
  0x17   : > { %v522_v50 = vor.u32 %v521_v34, %v517_v33  ;;  %v536_v51 = vor.u32 %v535_v40, %v532_v39  ;;  %v549_v53 = vshll.u32 %v1932_v43, 16  ;;  %vm502_vm2 = vsmask.f32 3328  ;;  %v1957_v56 = vld [vmem:[%s1870_s5 + $0x18] sm:$0xf]  ;;  %v1729_v24 = vld [vmem:[%s1870_s5] sm:$0xff]  ;;  %s2398_s21 = scalar_lea.vmem %s2445_s3, %s1728_s16 }
  0x18   : > { %v546_v52 = vor.u32 %v545_v42, %v541_v41  ;;  %vm503_vm3 = vsmask.f32 7440  ;;  %v513_v54 = vrot.slane %v512_v48, 4  ;;  %v527_v55 = vrot.slane %v525_v49, 5  ;;  %v1960_v57 = vld [vmem:[%s1870_s5 + $0x1c] sm:$0xf] }
  0x19   : > { %v523_v58 = vrot.slane %v522_v50, 4  ;;  %v537_v59 = vrot.slane %v536_v51, 4  ;;  %v551_v61 = vrot.slane %v549_v53, 5  ;;  %vm1962_vm4 = vmor %vm502_vm2, %vm503_vm3  ;;  %v554_v63 = vshrl.u32 %v1957_v56, 16  ;;  %v1979_v23 = vld [vmem:[%s1870_s5 + $0x20] sm:$0x1] }
  0x1a   : > { %v547_v60 = vrot.slane %v546_v52, 4  ;;  %v557_v0 = vshll.u32 %v1957_v56, 16  ;;  %v563_v1 = vshll.u32 %v1960_v57, 16  ;;  %v567_v2 = vshrl.u32 %v1960_v57, 16  ;;  %v1992_v34 = vld [vmem:[%s1870_s5 + $0x28] sm:$0xf] }
  0x1b   : > { %v518_v3 = vsel %vm1962_vm4, %v513_v54, %v517_v33  ;;  %v528_v4 = vsel %vm1962_vm4, %v523_v58, %v527_v55  ;;  %v542_v5 = vsel %vm1962_vm4, %v537_v59, %v541_v41  ;;  %v556_v7 = vrot.slane %v554_v63, 4  ;;  %v1989_v33 = vld [vmem:[%s1870_s5 + $0x24] sm:$0xf]  ;;  %v2003_v53 = vld [vmem:[%s1870_s5 + $0x2c] sm:$0x1]  ;;  %s1595_s22 = sshll.u32 %s1854_s23, 1 }
  0x1c   : > { %v552_v6 = vsel %vm1962_vm4, %v547_v60, %v551_v61  ;;  %v559_v8 = vrot.slane %v557_v0, 5  ;;  %v565_v9 = vrot.slane %v563_v1, 5  ;;  %v569_v16 = vrot.slane %v567_v2, 4  ;;  %v2016_v0 = vld [vmem:[%s1870_s5 + $0x30] sm:$0xf]  ;;  %s211_s26 = scalar_lea.vmem %s2446_s4, %s1595_s22 }
  0x1d   : > { %v747_v17 = vunpack.c.l.b16 %v518_v3  ;;  %v748_v19 = vunpack.c.l.b16 %v528_v4  ;;  %v749_v20 = vunpack.c.l.b16 %v542_v5  ;;  %v750_v21 = vunpack.c.l.b16 %v552_v6  ;;  %v2019_v1 = vld [vmem:[%s1870_s5 + $0x34] sm:$0xf] }
  0x1e   : > { %v560_v25 = vor.u32 %v559_v8, %v556_v7  ;;  %v570_v26 = vor.u32 %v569_v16, %v565_v9  ;;  %v573_v27 = vshll.u32 %v1979_v23, 16  ;;  %v578_v37 = vshrl.u32 %v1989_v33, 16 }
  0x1f   : > { %v763_v28 = vpack.c.b16 %v748_v19, %v747_v17  ;;  %v764_v29 = vpack.c.b16 %v750_v21, %v749_v20  ;;  %v581_v39 = vshll.u32 %v1989_v33, 16  ;;  %v587_v40 = vshll.u32 %v1992_v34, 16  ;;  %v2030_v20 = vld [vmem:[%s1870_s5 + $0x38] sm:$0x1] }
  0x20   : > { %v561_v30 = vrot.slane %v560_v25, 4  ;;  %v571_v31 = vrot.slane %v570_v26, 4  ;;  %v575_v32 = vrot.slane %v573_v27, 5  ;;  %v591_v41 = vshrl.u32 %v1992_v34, 16  ;;  %v2044_v27 = vld [vmem:[%s1870_s5 + $0x3c] sm:$0xf] }
  0x21   : > { %v580_v49 = vrot.slane %v578_v37, 4  ;;  %v583_v50 = vrot.slane %v581_v39, 5  ;;  %v589_v51 = vrot.slane %v587_v40, 5  ;;  %v597_v59 = vshll.u32 %v2003_v53, 16 }
  0x22   : > { %v566_v35 = vsel %vm1962_vm4, %v561_v30, %v565_v9  ;;  %v576_v36 = vsel %vm1962_vm4, %v571_v31, %v575_v32  ;;  %v593_v52 = vrot.slane %v591_v41, 4  ;;  %v602_v3 = vshrl.u32 %v2016_v0, 16 }
  0x23   : > { %1632 = vmatmul.msk.bf16.gmra.mxu1 %vm286_vm1, %v1935_v44  ;;  %1634 = vmatmul.msk.bf16.gmra.mxu2 %vm286_vm1, %v1938_v45  ;;  %v751_v42 = vunpack.c.l.b16 %v566_v35  ;;  %v752_v48 = vunpack.c.l.b16 %v576_v36  ;;  %v584_v55 = vor.u32 %v583_v50, %v580_v49  ;;  %v599_v63 = vrot.slane %v597_v59, 5 }
  0x24   : > { %1636 = vmatmul.msk.bf16.gmra.mxu3 %vm286_vm1, %v1941_v46  ;;  %1630 = vmatmul.msk.bf16.gmra.mxu0 %vm286_vm1, %v1944_v47  ;;  %v594_v58 = vor.u32 %v593_v52, %v589_v51  ;;  %v605_v4 = vshll.u32 %v2016_v0, 16  ;;  %v611_v5 = vshll.u32 %v2019_v1, 16  ;;  %v615_v6 = vshrl.u32 %v2019_v1, 16 }
  0x25   : > { %v2005_v54 = vpack.c.b16 %v752_v48, %v751_v42  ;;  %v585_v60 = vrot.slane %v584_v55, 4  ;;  %v604_v9 = vrot.slane %v602_v3, 4  ;;  %v621_v26 = vshll.u32 %v2030_v20, 16 }
  0x26   : > { %v595_v61 = vrot.slane %v594_v58, 4  ;;  %v607_v16 = vrot.slane %v605_v4, 5  ;;  %v613_v17 = vrot.slane %v611_v5, 5  ;;  %v617_v19 = vrot.slane %v615_v6, 4 }
  0x27   : > { %v590_v2 = vsel %vm1962_vm4, %v585_v60, %v589_v51  ;;  %v623_v31 = vrot.slane %v621_v26, 5  ;;  %v626_v32 = vshrl.u32 %v2044_v27, 16  ;;  %v2058_v51 = vld [vmem:[%s1870_s5 + $0x44] sm:$0x1]  ;;  %vm1494_vm8 = vcmask 1040384  }
  0x28   : > { %v753_v7 = vunpack.c.l.b16 %v590_v2  ;;  %v618_v25 = vor.u32 %v617_v19, %v613_v17  ;;  %v645_v58 = vshll.u32 %v2058_v51, 16  ;;  %v2072_v2 = vld [vmem:[%s1870_s5 + $0x48] sm:$0xf] }
  0x29   : > { %v628_v40 = vrot.slane %v626_v32, 4  ;;  %v650_v4 = vshrl.u32 %v2072_v2, 16  ;;  %v653_v5 = vshll.u32 %v2072_v2, 16 }
  0x2a   : > { %v619_v30 = vrot.slane %v618_v25, 4  ;;  %v2086_v25 = vld [vmem:[%s1870_s5 + $0x50] sm:$0x1] }
  0x2c   : > { %v624_v39 = vsel %vm1962_vm4, %v619_v30, %v623_v31  ;;  %v669_v31 = vshll.u32 %v2086_v25, 16 }
  0x2d   : > { %v756_v50 = vunpack.c.l.b16 %v624_v39 }
  0x33   : > { %1641 = vmatmul.msk.bf16.vlgmr.msrb.gmra.mxu1 %vm286_vm1, %v1729_v24  ;;  %1654 = vmatmul.msk.bf16.vlgmr.msrb.gmra.mxu2 %vm286_vm1, %v1944_v47  ;;  %v608_v24 = vor.u32 %v607_v16, %v604_v9  ;;  %v652_v16 = vrot.slane %v650_v4, 4 }
  0x34   : > { %1663 = vmatmul.msk.bf16.vlgmr.msrb.gmra.mxu3 %vm286_vm1, %v763_v28  ;;  %1672 = vmatmul.msk.bf16.vlgmr.msrb.gmra.mxu0 %vm286_vm1, %v764_v29  ;;  %v2047_v28 = vld [vmem:[%s1870_s5 + $0x40] sm:$0xf] }
  0x35   : > { %v635_v35 = vshll.u32 %v2047_v28, 16  ;;  %v639_v36 = vshrl.u32 %v2047_v28, 16 }
  0x37   : > { %v637_v42 = vrot.slane %v635_v35, 5  ;;  %v641_v48 = vrot.slane %v639_v36, 4  ;;  %v671_v35 = vrot.slane %v669_v31, 5  ;;  %v2100_v36 = vld [vmem:[%s1870_s5 + $0x54] sm:$0xf]  ;;  %v1691_v31 = vrot.slane %v1957_v56, 9 }
  0x39   : > { %v642_v55 = vor.u32 %v641_v48, %v637_v42 }
  0x43   : > { %1642 = vmatmul.msk.bf16.gmra.mxu1 %vm286_vm1, %v1882_v13  ;;  %1655 = vmatmul.msk.bf16.gmra.mxu2 %vm286_vm1, %v1873_v10  ;;  %v600_v13 = vsel %vm1962_vm4, %v595_v61, %v599_v63  ;;  %v643_v61 = vrot.slane %v642_v55, 4  ;;  %v647_v63 = vrot.slane %v645_v58, 5 }
  0x44   : > { %1664 = vmatmul.msk.bf16.gmra.mxu3 %vm286_vm1, %v764_v29  ;;  %1673 = vmatmul.msk.bf16.gmra.mxu0 %vm286_vm1, %v2005_v54  ;;  %v754_v8 = vunpack.c.l.b16 %v600_v13  ;;  %v609_v29 = vrot.slane %v608_v24, 4  ;;  %v2075_v13 = vld [vmem:[%s1870_s5 + $0x4c] sm:$0xf] }
  0x45   : > { %v648_v3 = vsel %vm1962_vm4, %v643_v61, %v647_v63  ;;  %v659_v6 = vshll.u32 %v2075_v13, 16  ;;  %v2114_v61 = vld [vmem:[%s1870_s5 + $0x5c] sm:$0x1] }
  0x46   : > { %v2032_v21 = vpack.c.b16 %v754_v8, %v753_v7  ;;  %v614_v37 = vsel %vm1962_vm4, %v609_v29, %v613_v17  ;;  %v663_v7 = vshrl.u32 %v2075_v13, 16  ;;  %v758_v9 = vunpack.c.l.b16 %v648_v3 }
  0x47   : > { %v755_v49 = vunpack.c.l.b16 %v614_v37  ;;  %v655_v17 = vrot.slane %v653_v5, 5  ;;  %v661_v19 = vrot.slane %v659_v6, 5  ;;  %v2103_v37 = vld [vmem:[%s1870_s5 + $0x58] sm:$0xf]  ;;  %v693_v4 = vshll.u32 %v2114_v61, 16 }
  0x48   : > { %v665_v24 = vrot.slane %v663_v7, 4  ;;  %v687_v48 = vshrl.u32 %v2103_v37, 16 }
  0x49   : > { %v2061_v59 = vpack.c.b16 %v756_v50, %v755_v49  ;;  %v656_v29 = vor.u32 %v655_v17, %v652_v16  ;;  %v695_v7 = vrot.slane %v693_v4, 5  ;;  %v1044_v16 = vrot.slane %v1960_v57, 5 }
  0x4a   : > { %v666_v30 = vor.u32 %v665_v24, %v661_v19  ;;  %v1047_v57 = vrot.slane %v1979_v23, 5 }
  0x4b   : > { %v657_v32 = vrot.slane %v656_v29, 4 }
  0x53   : > { %1643 = vmatmul.msk.bf16.gmra.mxu1 %vm286_vm1, %v1944_v47  ;;  %1656 = vmatmul.msk.bf16.gmra.mxu2 %vm286_vm1, %v1935_v44  ;;  %v629_v47 = vshll.u32 %v2044_v27, 16 }
  0x54   : > { %1665 = vmatmul.msk.bf16.gmra.mxu3 %vm286_vm1, %v2005_v54  ;;  %1674 = vmatmul.msk.bf16.gmra.mxu0 %vm286_vm1, %v2032_v21 }
  0x55   : > { %v631_v41 = vrot.slane %v629_v47, 5  ;;  %v667_v47 = vrot.slane %v666_v30, 4 }
  0x57   : > { %v632_v52 = vor.u32 %v631_v41, %v628_v40  ;;  %v672_v39 = vsel %vm1962_vm4, %v667_v47, %v671_v35  ;;  %v674_v40 = vshrl.u32 %v2100_v36, 16  ;;  %v677_v41 = vshll.u32 %v2100_v36, 16 }
  0x58   : > { %v760_v50 = vunpack.c.l.b16 %v672_v39 }
  0x59   : > { %v633_v60 = vrot.slane %v632_v52, 4  ;;  %v676_v52 = vrot.slane %v674_v40, 4  ;;  %v679_v55 = vrot.slane %v677_v41, 5 }
  0x63   : > { %1644 = vmatmul.msk.bf16.gmra.mxu1 %vm286_vm1, %v1873_v10  ;;  %1657 = vmatmul.msk.bf16.gmra.mxu2 %vm286_vm1, %v1876_v11  ;;  %v638_v10 = vsel %vm1962_vm4, %v633_v60, %v637_v42  ;;  %v683_v42 = vshll.u32 %v2103_v37, 16  ;;  %v689_v60 = vrot.slane %v687_v48, 4 }
  0x64   : > { %1666 = vmatmul.msk.bf16.gmra.mxu3 %vm286_vm1, %v2032_v21  ;;  %1675 = vmatmul.msk.bf16.gmra.mxu0 %vm286_vm1, %v2061_v59  ;;  %v757_v8 = vunpack.c.l.b16 %v638_v10  ;;  %v680_v10 = vor.u32 %v679_v55, %v676_v52 }
  0x65   : > { %v685_v58 = vrot.slane %v683_v42, 5  ;;  %v2145_v42 = vld [vmem:[%s1870_s5 + $0x68] sm:$0x1] }
  0x66   : > { %v2088_v26 = vpack.c.b16 %v758_v9, %v757_v8  ;;  %v681_v5 = vrot.slane %v680_v10, 4  ;;  %v2128_v8 = vld [vmem:[%s1870_s5 + $0x60] sm:$0xf]  ;;  %v2131_v9 = vld [vmem:[%s1870_s5 + $0x64] sm:$0xf]  ;;  %v717_v55 = vshll.u32 %v2145_v42, 16 }
  0x67   : > { %v690_v3 = vor.u32 %v689_v60, %v685_v58  ;;  %v701_v17 = vshll.u32 %v2128_v8, 16  ;;  %v707_v29 = vshll.u32 %v2131_v9, 16  ;;  %v711_v30 = vshrl.u32 %v2131_v9, 16 }
  0x69   : > { %v691_v6 = vrot.slane %v690_v3, 4  ;;  %v703_v39 = vrot.slane %v701_v17, 5  ;;  %v709_v40 = vrot.slane %v707_v29, 5  ;;  %v713_v41 = vrot.slane %v711_v30, 4 }
  0x6b   : > { %v696_v24 = vsel %vm1962_vm4, %v691_v6, %v695_v7  ;;  %v714_v52 = vor.u32 %v713_v41, %v709_v40  ;;  %v719_v7 = vrot.slane %v717_v55, 5  ;;  %v1689_v41 = vrot.slane %v1893_v14, 9 }
  0x6c   : > { %v762_v35 = vunpack.c.l.b16 %v696_v24 }
  0x6d   : > { %v715_v6 = vrot.slane %v714_v52, 4 }
  0x73   : > { %1645 = vmatmul.msk.bf16.gmra.mxu1 %vm286_vm1, %v1935_v44  ;;  %1658 = vmatmul.msk.bf16.gmra.mxu2 %vm286_vm1, %v1938_v45  ;;  %v662_v44 = vsel %vm1962_vm4, %v657_v32, %v661_v19  ;;  %v686_v19 = vsel %vm1962_vm4, %v681_v5, %v685_v58  ;;  %v1046_v32 = vrot.slane %v1044_v16, 4  ;;  %v1045_v58 = vsel %vm2151_vm7, %v1691_v31, %v1044_v16 }
  0x74   : > { %1667 = vmatmul.msk.bf16.gmra.mxu3 %vm286_vm1, %v2061_v59  ;;  %1676 = vmatmul.msk.bf16.gmra.mxu0 %vm286_vm1, %v2088_v26  ;;  %v759_v49 = vunpack.c.l.b16 %v662_v44  ;;  %v761_v47 = vunpack.c.l.b16 %v686_v19  ;;  %v1104_v10 = vunpack.c.l.b16 %v1045_v58  ;;  %v720_v19 = vsel %vm1962_vm4, %v715_v6, %v719_v7 }
  0x75   : > { %v1048_v60 = vsel %vm2151_vm7, %v1046_v32, %v1047_v57  ;;  %v866_v29 = vunpack.c.l.b16 %v720_v19  ;;  %v1738_v32 = vld [vmem:[%s1870_s5 + $0x6c] sm:$0xff] }
  0x76   : > { %v2116_v63 = vpack.c.b16 %v760_v50, %v759_v49  ;;  %v2149_v49 = vpack.c.b16 %v762_v35, %v761_v47  ;;  %v1105_v3 = vunpack.c.l.b16 %v1048_v60  ;;  %v1030_v35 = vrot.slane %v1896_v15, 5 }
  0x77   : > { %v1040_v15 = vrot.slane %v1932_v43, 5 }
  0x78   : > { %v2168_v4 = vpack.c.b16 %v1105_v3, %v1104_v10 }
  0x83   : > { %1646 = vmatmul.msk.bf16.gmra.mxu1 %vm286_vm1, %v1876_v11  ;;  %1659 = vmatmul.msk.bf16.gmra.mxu2 %vm286_vm1, %v1879_v12  ;;  %v698_v11 = vshrl.u32 %v2128_v8, 16 }
  0x84   : > { %1668 = vmatmul.msk.bf16.gmra.mxu3 %vm286_vm1, %v2088_v26  ;;  %1677 = vmatmul.msk.bf16.gmra.mxu0 %vm286_vm1, %v2116_v63 }
  0x85   : > { %v700_v44 = vrot.slane %v698_v11, 4 }
  0x87   : > { %v704_v50 = vor.u32 %v703_v39, %v700_v44  ;;  %v1037_v39 = vrot.slane %v1909_v22, 5  ;;  %v1690_v22 = vrot.slane %v1903_v18, 9 }
  0x89   : > { %v705_v5 = vrot.slane %v704_v50, 4  ;;  %v1032_v50 = vrot.slane %v1030_v35, 4  ;;  %v1039_v52 = vrot.slane %v1037_v39, 4  ;;  %v1038_v14 = vsel %vm2151_vm7, %v1690_v22, %v1037_v39 }
  0x8a   : > { %v1692_v39 = vrot.slane %v1989_v33, 9 }
  0x8b   : > { %v1041_v18 = vsel %vm2151_vm7, %v1039_v52, %v1040_v15 }
  0x8c   : > { %v1103_v6 = vunpack.c.l.b16 %v1041_v18 }
  0x90   : > { %v2147_v48 = vpop.f32.mrf.mxu1 }
  0x91   : > { %v324_v23 = vpop.f32.mrf.mxu0 }
  0x93   : > { %1647 = vmatmul.msk.bf16.gmra.mxu1 %vm286_vm1, %v1938_v45  ;;  %1660 = vmatmul.msk.bf16.gmra.mxu2 %vm286_vm1, %v1941_v46  ;;  %v710_v46 = vsel %vm1962_vm4, %v705_v5, %v709_v40  ;;  %v1033_v40 = vrot.slane %v1929_v38, 5  ;;  %v1031_v38 = vsel %vm2151_vm7, %v1689_v41, %v1030_v35  ;;  %v1102_v5 = vunpack.c.l.b16 %v1038_v14 }
  0x94   : > { %1669 = vmatmul.msk.bf16.gmra.mxu3 %vm286_vm1, %v2116_v63  ;;  %1678 = vmatmul.msk.bf16.gmra.mxu0 %vm286_vm1, %v2149_v49  ;;  %v865_v24 = vunpack.c.l.b16 %v710_v46  ;;  %v1100_v43 = vunpack.c.l.b16 %v1031_v38 }
  0x95   : > { %v1034_v60 = vsel %vm2151_vm7, %v1032_v50, %v1033_v40  ;;  %v1051_v40 = vrot.slane %v1992_v34, 5  ;;  %v1054_v50 = vrot.slane %v2003_v53, 5 }
  0x96   : > { %v2170_v16 = vpop.f32.mrf.mxu2  ;;  %v2187_v47 = vpack.c.b16 %v866_v29, %v865_v24  ;;  %v1101_v3 = vunpack.c.l.b16 %v1034_v60  ;;  %v1117_v29 = vpack.c.b16 %v1103_v6, %v1102_v5 }
  0x97   : > { %v2172_v11 = vpop.f32.mrf.mxu3  ;;  %v1053_v41 = vrot.slane %v1051_v40, 4 }
  0x98   : > { %v2174_v45 = vpop.f32.mrf.mxu1  ;;  %v1116_v19 = vpack.c.b16 %v1101_v3, %v1100_v43 }
  0x99   : > { %v326_v17 = vpop.f32.mrf.mxu0  ;;  %v1055_v14 = vsel %vm2151_vm7, %v1053_v41, %v1054_v50 }
  0x9a   : > { %v1107_v33 = vunpack.c.l.b16 %v1055_v14 }
  0x9e   : > { %v2180_v30 = vpop.f32.mrf.mxu2 }
  0x9f   : > { %v2182_v31 = vpop.f32.mrf.mxu3 }
  0xa0   : > { %v2185_v57 = vpop.f32.mrf.mxu1 }
  0xa1   : > { %v329_v44 = vpop.f32.mrf.mxu0 }
  0xa3   : > { %1648 = vmatmul.msk.bf16.gmra.mxu1 %vm286_vm1, %v1879_v12  ;;  %1661 = vmatmul.msk.bf16.gmra.mxu2 %vm286_vm1, %v1738_v32 }
  0xa4   : > { %1670 = vmatmul.msk.bf16.gmra.mxu3 %vm286_vm1, %v2149_v49  ;;  %1679 = vmatmul.msk.bf16.gmra.mxu0 %vm286_vm1, %v2187_v47 }
  0xa6   : > { %v2202_v55 = vpop.f32.mrf.mxu2 }
  0xa7   : > { %v2204_v12 = vpop.f32.mrf.mxu3 }
  0xa8   : > { %v2206_v58 = vpop.f32.mrf.mxu1 }
  0xa9   : > { %v331_v10 = vpop.f32.mrf.mxu0 }
  0xae   : > { %v2216_v7 = vpop.f32.mrf.mxu2 }
  0xaf   : > { %v2218_v46 = vpop.f32.mrf.mxu3 }
  0xb0   : > { %v384_v24 = vpop.f32.mrf.mxu1 }
  0xb1   : > { %v385_v32 = vadd.f32 %v384_v24, %v324_v23  ;;  %v883_v35 = vpop.f32.mrf.mxu0 }
  0xb3   : > { %1681 = vmatmul.msk.bf16.vlgmr.msra.gmra.mxu1 %vm286_vm1, %v2005_v54  ;;  %1700 = vmatmul.msk.bf16.vlgmr.msra.gmra.mxu2 %vm286_vm1, %v1116_v19  ;;  %v1052_v54 = vsel %vm2151_vm7, %v1692_v39, %v1051_v40  ;;  %v1061_v40 = vrot.slane %v2030_v20, 5 }
  0xb4   : > { %1709 = vmatmul.msk.bf16.vlgmr.msra.gmra.mxu3 %vm286_vm1, %v1117_v29  ;;  %1718 = vmatmul.msk.bf16.vlgmr.msra.gmra.mxu0 %vm286_vm1, %v2168_v4  ;;  %v1106_v43 = vunpack.c.l.b16 %v1052_v54 }
  0xb6   : > { %v446_v15 = vpop.f32.mrf.mxu2  ;;  %v2235_v19 = vpack.c.b16 %v1107_v33, %v1106_v43 }
  0xb7   : > { %v486_v23 = vadd.f32 %v446_v15, %v385_v32  ;;  %v807_v22 = vpop.f32.mrf.mxu3  ;;  %v1058_v15 = vrot.slane %v2019_v1, 5 }
  0xb8   : > { %v386_v52 = vpop.f32.mrf.mxu1 }
  0xb9   : > { %v847_v34 = vadd.f32 %v807_v22, %v486_v23  ;;  %v387_v38 = vadd.f32 %v386_v52, %v326_v17  ;;  %v885_v60 = vpop.f32.mrf.mxu0  ;;  %v1060_v39 = vrot.slane %v1058_v15, 4 }
  0xbb   : > { %v2233_v18 = vadd.f32 %v883_v35, %v847_v34  ;;  %v1062_v34 = vsel %vm2151_vm7, %v1060_v39, %v1061_v40 }
  0xbc   : > { %v1109_v20 = vunpack.c.l.b16 %v1062_v34 }
  0xbe   : > { %v448_v3 = vpop.f32.mrf.mxu2 }
  0xbf   : > { %v487_v5 = vadd.f32 %v448_v3, %v387_v38  ;;  %v809_v53 = vpop.f32.mrf.mxu3 }
  0xc0   : > { %v389_v6 = vpop.f32.mrf.mxu1 }
  0xc1   : > { %v848_v24 = vadd.f32 %v809_v53, %v487_v5  ;;  %v390_v32 = vadd.f32 %v389_v6, %v329_v44  ;;  %v888_v17 = vpop.f32.mrf.mxu0  ;;  %v1693_v44 = vrot.slane %v2016_v0, 9  ;;  %v1065_v53 = vrot.slane %v2047_v28, 5 }
  0xc3   : > { %1682 = vmatmul.msk.bf16.gmra.mxu1 %vm286_vm1, %v2032_v21  ;;  %1701 = vmatmul.msk.bf16.gmra.mxu2 %vm286_vm1, %v1117_v29  ;;  %v2241_v35 = vadd.f32 %v885_v60, %v848_v24  ;;  %v1059_v52 = vsel %vm2151_vm7, %v1693_v44, %v1058_v15  ;;  %v1068_v24 = vrot.slane %v2058_v51, 5 }
  0xc4   : > { %1710 = vmatmul.msk.bf16.gmra.mxu3 %vm286_vm1, %v2168_v4  ;;  %1719 = vmatmul.msk.bf16.gmra.mxu0 %vm286_vm1, %v2235_v19  ;;  %v1108_v60 = vunpack.c.l.b16 %v1059_v52 }
  0xc6   : > { %v451_v41 = vpop.f32.mrf.mxu2  ;;  %v2255_v33 = vpack.c.b16 %v1109_v20, %v1108_v60  ;;  %v1072_v60 = vrot.slane %v2075_v13, 5 }
  0xc7   : > { %v488_v1 = vadd.f32 %v451_v41, %v390_v32  ;;  %v812_v50 = vpop.f32.mrf.mxu3  ;;  %v1067_v32 = vrot.slane %v1065_v53, 4 }
  0xc8   : > { %v391_v23 = vpop.f32.mrf.mxu1 }
  0xc9   : > { %v849_v21 = vadd.f32 %v812_v50, %v488_v1  ;;  %v392_v22 = vadd.f32 %v391_v23, %v331_v10  ;;  %v890_v29 = vpop.f32.mrf.mxu0  ;;  %v1069_v41 = vsel %vm2151_vm7, %v1067_v32, %v1068_v24 }
  0xca   : > { %v1111_v50 = vunpack.c.l.b16 %v1069_v41 }
  0xcb   : > { %v2253_v38 = vadd.f32 %v888_v17, %v849_v21 }
  0xce   : > { %v453_v54 = vpop.f32.mrf.mxu2 }
  0xcf   : > { %v489_v0 = vadd.f32 %v453_v54, %v392_v22  ;;  %v814_v14 = vpop.f32.mrf.mxu3  ;;  %v1075_v54 = vrot.slane %v2086_v25, 5 }
  0xd0   : > { %v394_v43 = vpop.f32.mrf.mxu1 }
  0xd1   : > { %v850_v3 = vadd.f32 %v814_v14, %v489_v0  ;;  %v395_v10 = vadd.f32 %v394_v43, %v2147_v48  ;;  %v893_v5 = vpop.f32.mrf.mxu0  ;;  %v1694_v48 = vrot.slane %v2044_v27, 9  ;;  %v1074_v0 = vrot.slane %v1072_v60, 4 }
  0xd3   : > { %1683 = vmatmul.msk.bf16.gmra.mxu1 %vm286_vm1, %v2061_v59  ;;  %1702 = vmatmul.msk.bf16.gmra.mxu2 %vm286_vm1, %v2168_v4  ;;  %v2263_v6 = vadd.f32 %v890_v29, %v850_v3  ;;  %v1066_v39 = vsel %vm2151_vm7, %v1694_v48, %v1065_v53  ;;  %v1076_v53 = vsel %vm2151_vm7, %v1074_v0, %v1075_v54  ;;  %v1086_v54 = vrot.slane %v2131_v9, 5 }
  0xd4   : > { %1711 = vmatmul.msk.bf16.gmra.mxu3 %vm286_vm1, %v2235_v19  ;;  %1720 = vmatmul.msk.bf16.gmra.mxu0 %vm286_vm1, %v2255_v33  ;;  %v1110_v51 = vunpack.c.l.b16 %v1066_v39  ;;  %v1113_v48 = vunpack.c.l.b16 %v1076_v53 }
  0xd6   : > { %v456_v28 = vpop.f32.mrf.mxu2  ;;  %v2278_v29 = vpack.c.b16 %v1111_v50, %v1110_v51 }
  0xd7   : > { %v490_v17 = vadd.f32 %v456_v28, %v395_v10  ;;  %v817_v15 = vpop.f32.mrf.mxu3 }
  0xd8   : > { %v396_v59 = vpop.f32.mrf.mxu1 }
  0xd9   : > { %v851_v40 = vadd.f32 %v817_v15, %v490_v17  ;;  %v397_v4 = vadd.f32 %v396_v59, %v2174_v45  ;;  %v895_v44 = vpop.f32.mrf.mxu0 }
  0xdb   : > { %v2276_v1 = vadd.f32 %v893_v5, %v851_v40 }
  0xde   : > { %v458_v27 = vpop.f32.mrf.mxu2 }
  0xdf   : > { %v491_v23 = vadd.f32 %v458_v27, %v397_v4  ;;  %v819_v21 = vpop.f32.mrf.mxu3 }
  0xe0   : > { %v399_v22 = vpop.f32.mrf.mxu1 }
  0xe1   : > { %v852_v52 = vadd.f32 %v819_v21, %v491_v23  ;;  %v400_v45 = vadd.f32 %v399_v22, %v2185_v57  ;;  %v898_v34 = vpop.f32.mrf.mxu0  ;;  %v1695_v57 = vrot.slane %v2072_v2, 9 }
  0xe3   : > { %1684 = vmatmul.msk.bf16.gmra.mxu1 %vm286_vm1, %v2088_v26  ;;  %1703 = vmatmul.msk.bf16.gmra.mxu2 %vm286_vm1, %v2235_v19  ;;  %v2286_v20 = vadd.f32 %v895_v44, %v852_v52  ;;  %v1073_v5 = vsel %vm2151_vm7, %v1695_v57, %v1072_v60  ;;  %v1082_v44 = vrot.slane %v2114_v61, 5 }
  0xe4   : > { %1712 = vmatmul.msk.bf16.gmra.mxu3 %vm286_vm1, %v2255_v33  ;;  %1721 = vmatmul.msk.bf16.gmra.mxu0 %vm286_vm1, %v2278_v29  ;;  %v1112_v25 = vunpack.c.l.b16 %v1073_v5 }
  0xe6   : > { %v461_v13 = vpop.f32.mrf.mxu2  ;;  %v2301_v15 = vpack.c.b16 %v1113_v48, %v1112_v25 }
  0xe7   : > { %v492_v14 = vadd.f32 %v461_v13, %v400_v45  ;;  %v822_v43 = vpop.f32.mrf.mxu3 }
  0xe8   : > { %v401_v26 = vpop.f32.mrf.mxu1 }
  0xe9   : > { %v853_v3 = vadd.f32 %v822_v43, %v492_v14  ;;  %v402_v19 = vadd.f32 %v401_v26, %v2206_v58  ;;  %v900_v10 = vpop.f32.mrf.mxu0  ;;  %v1079_v58 = vrot.slane %v2103_v37, 5  ;;  %v1696_v37 = vrot.slane %v2100_v36, 9 }
  0xea   : > { %v1089_v43 = vrot.slane %v2145_v42, 5  ;;  %v1088_v26 = vrot.slane %v1086_v54, 4  ;;  %v240_v42 = vld [vmem:[%s1870_s5 + $0x6c] sm:$0xf] }
  0xeb   : > { %v2299_v24 = vadd.f32 %v898_v34, %v853_v3  ;;  %v1081_v41 = vrot.slane %v1079_v58, 4  ;;  %v1080_v21 = vsel %vm2151_vm7, %v1696_v37, %v1079_v58  ;;  %v722_v25 = vshrl.u32 %v240_v42, 16 }
  0xec   : > { %v1114_v61 = vunpack.c.l.b16 %v1080_v21  ;;  %v725_v48 = vshll.u32 %v240_v42, 16 }
  0xed   : > { %v1083_v22 = vsel %vm2151_vm7, %v1081_v41, %v1082_v44  ;;  %v724_v58 = vrot.slane %v722_v25, 4 }
  0xee   : > { %v463_v2 = vpop.f32.mrf.mxu2  ;;  %v1115_v45 = vunpack.c.l.b16 %v1083_v22  ;;  %v727_v44 = vrot.slane %v725_v48, 5 }
  0xef   : > { %v493_v32 = vadd.f32 %v463_v2, %v402_v19  ;;  %v824_v28 = vpop.f32.mrf.mxu3  ;;  %v241_v19 = vld [vmem:[%s1870_s5 + $0x70] sm:$0xf] }
  0xf0   : > { %v404_v17 = vpop.f32.mrf.mxu1  ;;  %v2325_v0 = vpack.c.b16 %v1115_v45, %v1114_v61  ;;  %v731_v2 = vshll.u32 %v241_v19, 16  ;;  %v728_v21 = vor.u32 %v727_v44, %v724_v58 }
  0xf1   : > { %v854_v59 = vadd.f32 %v824_v28, %v493_v32  ;;  %v903_v40 = vpop.f32.mrf.mxu0  ;;  %v405_v39 = vadd.f32 %v404_v17, %v2170_v16  ;;  %v735_v32 = vshrl.u32 %v241_v19, 16 }
  0xf3   : > { %1685 = vmatmul.msk.bf16.gmra.mxu1 %vm286_vm1, %v2116_v63  ;;  %1704 = vmatmul.msk.bf16.gmra.mxu2 %vm286_vm1, %v2255_v33  ;;  %v2308_v4 = vadd.f32 %v900_v10, %v854_v59  ;;  %v737_v37 = vrot.slane %v735_v32, 4 }
  0xf4   : > { %1713 = vmatmul.msk.bf16.gmra.mxu3 %vm286_vm1, %v2278_v29  ;;  %1722 = vmatmul.msk.bf16.gmra.mxu0 %vm286_vm1, %v2301_v15 }
  0xf6   : > { %v466_v51 = vpop.f32.mrf.mxu2 }
  0xf7   : > { %v494_v63 = vadd.f32 %v466_v51, %v405_v39  ;;  %v827_v50 = vpop.f32.mrf.mxu3  ;;  %v733_v39 = vrot.slane %v731_v2, 5  ;;  %v242_v51 = vld [vmem:[%s1870_s5 + $0x74] sm:$0x1] }
  0xf8   : > { %v406_v27 = vpop.f32.mrf.mxu1  ;;  %v741_v61 = vshll.u32 %v242_v51, 16 }
  0xf9   : > { %v855_v33 = vadd.f32 %v827_v50, %v494_v63  ;;  %v905_v23 = vpop.f32.mrf.mxu0  ;;  %v407_v16 = vadd.f32 %v406_v27, %v2180_v30  ;;  %v1697_v30 = vrot.slane %v2128_v8, 9  ;;  %v1090_v8 = vsel %vm2151_vm7, %v1088_v26, %v1089_v43 }
  0xfa   : > { %v1219_v59 = vunpack.c.l.b16 %v1090_v8  ;;  %v738_v22 = vor.u32 %v737_v37, %v733_v39  ;;  %v1096_v43 = vrot.slane %v242_v51, 5 }
  0xfb   : > { %v2321_v52 = vadd.f32 %v903_v40, %v855_v33 }
  0xfe   : > { %v468_v36 = vpop.f32.mrf.mxu2 }
  0xff   : > { %v495_v34 = vadd.f32 %v468_v36, %v407_v16  ;;  %v829_v60 = vpop.f32.mrf.mxu3  ;;  %v1093_v36 = vrot.slane %v241_v19, 5 }
 0x100   : > { %v409_v57 = vpop.f32.mrf.mxu1 }
 0x101   : > { %v856_v13 = vadd.f32 %v829_v60, %v495_v34  ;;  %v908_v14 = vpop.f32.mrf.mxu0  ;;  %v410_v9 = vadd.f32 %v409_v57, %v2202_v55  ;;  %v739_v60 = vrot.slane %v738_v22, 4 }
 0x103   : > { %1686 = vmatmul.msk.bf16.gmra.mxu1 %vm286_vm1, %v2149_v49  ;;  %1705 = vmatmul.msk.bf16.gmra.mxu2 %vm286_vm1, %v2278_v29  ;;  %v2333_v3 = vadd.f32 %v905_v23, %v856_v13  ;;  %v1087_v29 = vsel %vm2151_vm7, %v1697_v30, %v1086_v54  ;;  %v743_v54 = vrot.slane %v741_v61, 5  ;;  %v1698_v13 = vrot.slane %v240_v42, 9 }
 0x104   : > { %1714 = vmatmul.msk.bf16.gmra.mxu3 %vm286_vm1, %v2301_v15  ;;  %1723 = vmatmul.msk.bf16.gmra.mxu0 %vm286_vm1, %v2325_v0  ;;  %v1218_v55 = vunpack.c.l.b16 %v1087_v29 }
 0x105   : > { %v744_v19 = vsel %vm1962_vm4, %v739_v60, %v743_v54 }
 0x106   : > { %v471_v10 = vpop.f32.mrf.mxu2  ;;  %v1220_v23 = vpack.c.b16 %v1219_v59, %v1218_v55  ;;  %v942_v29 = vunpack.c.l.b16 %v744_v19 }
 0x107   : > { %v496_v49 = vadd.f32 %v471_v10, %v410_v9  ;;  %v832_v5 = vpop.f32.mrf.mxu3 }
 0x108   : > { %v411_v53 = vpop.f32.mrf.mxu1 }
 0x109   : > { %v857_v28 = vadd.f32 %v832_v5, %v496_v49  ;;  %v910_v17 = vpop.f32.mrf.mxu0  ;;  %v412_v41 = vadd.f32 %v411_v53, %v2216_v7  ;;  %v729_v7 = vrot.slane %v728_v21, 4  ;;  %v1094_v5 = vsel %vm2151_vm7, %v1698_v13, %v1093_v36 }
 0x10a   : > { %v1294_v53 = vunpack.c.l.b16 %v1094_v5 }
 0x10b   : > { %v2346_v40 = vadd.f32 %v908_v14, %v857_v28  ;;  %v1095_v14 = vrot.slane %v1093_v36, 4 }
 0x10e   : > { %v473_v63 = vpop.f32.mrf.mxu2 }
 0x10f   : > { %v497_v50 = vadd.f32 %v473_v63, %v412_v41  ;;  %v834_v27 = vpop.f32.mrf.mxu3 }
 0x110   : > { %v414_v33 = vpop.f32.mrf.mxu1 }
 0x111   : > { %v858_v45 = vadd.f32 %v834_v27, %v497_v50  ;;  %v913_v16 = vpop.f32.mrf.mxu0  ;;  %v415_v57 = vadd.f32 %v414_v33, %v2172_v11  ;;  %v1097_v11 = vsel %vm2151_vm7, %v1095_v14, %v1096_v43 }
 0x112   : > { %v1295_v25 = vunpack.c.l.b16 %v1097_v11 }
 0x113   : > { %1687 = vmatmul.msk.bf16.gmra.mxu1 %vm286_vm1, %v2187_v47  ;;  %1706 = vmatmul.msk.bf16.gmra.mxu2 %vm286_vm1, %v2301_v15  ;;  %v2354_v34 = vadd.f32 %v910_v17, %v858_v45  ;;  %v734_v15 = vsel %vm1962_vm4, %v729_v7, %v733_v39 }
 0x114   : > { %1715 = vmatmul.msk.bf16.gmra.mxu3 %vm286_vm1, %v2325_v0  ;;  %1724 = vmatmul.msk.bf16.gmra.mxu0 %vm286_vm1, %v1220_v23  ;;  %v941_v42 = vunpack.c.l.b16 %v734_v15  ;;  %v1296_v55 = vpack.c.b16 %v1295_v25, %v1294_v53 }
 0x116   : > { %v476_v30 = vpop.f32.mrf.mxu2  ;;  %v943_v28 = vpack.c.b16 %v942_v29, %v941_v42 }
 0x117   : > { %v498_v47 = vadd.f32 %v476_v30, %v415_v57  ;;  %v837_v26 = vpop.f32.mrf.mxu3 }
 0x118   : > { %v416_v9 = vpop.f32.mrf.mxu1 }
 0x119   : > { %v859_v10 = vadd.f32 %v837_v26, %v498_v47  ;;  %v915_v49 = vpop.f32.mrf.mxu0  ;;  %v417_v48 = vadd.f32 %v416_v9, %v2182_v31 }
 0x11b   : > { %v2368_v8 = vadd.f32 %v913_v16, %v859_v10 }
 0x11e   : > { %v478_v2 = vpop.f32.mrf.mxu2 }
 0x11f   : > { %v499_v32 = vadd.f32 %v478_v2, %v417_v48  ;;  %v839_v62 = vpop.f32.mrf.mxu3 }
 0x120   : > { %v419_v17 = vpop.f32.mrf.mxu1 }
 0x121   : > { %v860_v59 = vadd.f32 %v839_v62, %v499_v32  ;;  %v918_v58 = vpop.f32.mrf.mxu0  ;;  %v420_v31 = vadd.f32 %v419_v17, %v2204_v12 }
 0x123   : > { %1688 = vmatmul.msk.bf16.gmra.mxu1 %vm286_vm1, %v943_v28  ;;  %1707 = vmatmul.msk.bf16.gmra.mxu2 %vm286_vm1, %v2325_v0  ;;  %v2374_v56 = vadd.f32 %v915_v49, %v860_v59 }
 0x124   : > { %1716 = vmatmul.msk.bf16.gmra.mxu3 %vm286_vm1, %v1220_v23  ;;  %1725 = vmatmul.msk.bf16.gmra.mxu0 %vm286_vm1, %v1296_v55 }
 0x126   : > { %v481_v44 = vpop.f32.mrf.mxu2 }
 0x127   : > { %v500_v39 = vadd.f32 %v481_v44, %v420_v31  ;;  %v842_v37 = vpop.f32.mrf.mxu3 }
 0x128   : > { %v421_v41 = vpop.f32.mrf.mxu1 }
 0x129   : > { %v861_v51 = vadd.f32 %v842_v37, %v500_v39  ;;  %v920_v63 = vpop.f32.mrf.mxu0  ;;  %v422_v27 = vadd.f32 %v421_v41, %v2218_v46  ;;  %v2389_v46 = vld [vmem:[%s2444_s2] ss:$0 sm:$0xff] }
 0x12b   : > { %v2379_v50 = vadd.f32 %v918_v58, %v861_v51 }
 0x12e   : > { %v483_v0 = vpop.f32.mrf.mxu2 }
 0x12f   : > { %v501_v33 = vadd.f32 %v483_v0, %v422_v27  ;;  %v844_v21 = vpop.f32.mrf.mxu3 }
 0x130   : > { %v959_v22 = vpop.f32.mrf.mxu1 }
 0x131   : > { %v862_v23 = vadd.f32 %v844_v21, %v501_v33  ;;  %v1312_v61 = vpop.f32.mrf.mxu0  ;;  %v999_v12 = vadd.f32 %v959_v22, %v2233_v18 }
 0x133   : > { %v2382_v45 = vadd.f32 %v920_v63, %v862_v23 }
 0x136   : > { %v1160_v16 = vpop.f32.mrf.mxu2 }
 0x137   : > { %v1200_v36 = vadd.f32 %v1160_v16, %v999_v12  ;;  %v1236_v7 = vpop.f32.mrf.mxu3 }
 0x138   : > { %v961_v60 = vpop.f32.mrf.mxu1 }
 0x139   : > { %v1276_v54 = vadd.f32 %v1236_v7, %v1200_v36  ;;  %v1314_v57 = vpop.f32.mrf.mxu0  ;;  %v1000_v14 = vadd.f32 %v961_v60, %v2241_v35 }
 0x13b   : > { %v1352_v13 = vadd.f32 %v1312_v61, %v1276_v54 }
 0x13d   : > { %v1372_v18 = vadd.f32 %v2389_v46, %v1352_v13 }
 0x13e   : > { %v1162_v43 = vpop.f32.mrf.mxu2 }
 0x13f   : > { %v1201_v30 = vadd.f32 %v1162_v43, %v1000_v14  ;;  %v1238_v47 = vpop.f32.mrf.mxu3  ;;  %v1388_v10 = vmax.f32 %v1372_v18, 0.0 }
 0x140   : > { %v964_v26 = vpop.f32.mrf.mxu1 }
 0x141   : > { %v1277_v9 = vadd.f32 %v1238_v47, %v1201_v30  ;;  %v1317_v15 = vpop.f32.mrf.mxu0  ;;  %v1001_v5 = vadd.f32 %v964_v26, %v2253_v38  ;;  %v1457_v53 = vmul.f32 %v1388_v10, %v1388_v10 }
 0x143   : > { %v1353_v19 = vadd.f32 %v1314_v57, %v1277_v9 }
 0x145   : > { %v1373_v49 = vadd.f32 %v2389_v46, %v1353_v19 }
 0x146   : > { %v1165_v11 = vpop.f32.mrf.mxu2 }
 0x147   : > { %v1389_v42 = vmax.f32 %v1373_v49, 0.0  ;;  %v1202_v35 = vadd.f32 %v1165_v11, %v1001_v5  ;;  %v1241_v29 = vpop.f32.mrf.mxu3 }
 0x148   : > { %v966_v25 = vpop.f32.mrf.mxu1 }
 0x149   : > { %v1742_v48 = vpack.c.bf16 %v1389_v42, %v1388_v10  ;;  %v1436_v2 = vadd.f32 %v1389_v42, %v1388_v10  ;;  %v1458_v32 = vmul.f32 %v1389_v42, %v1389_v42  ;;  %v1278_v62 = vadd.f32 %v1241_v29, %v1202_v35  ;;  %v1319_v28 = vpop.f32.mrf.mxu0 }
 0x14a   : > { %v1002_v59 = vadd.f32 %v966_v25, %v2263_v6 }
 0x14b   : > { %1743 = vst [vmem:[%s2398_s21] sm:$0xff] %v1742_v48   ;;  %v1473_v17 = vadd.f32 %v1458_v32, %v1457_v53  ;;  %v1354_v38 = vadd.f32 %v1317_v15, %v1278_v62 }
 0x14d   : > { %v1374_v55 = vadd.f32 %v2389_v46, %v1354_v38 }
 0x14e   : > { %v1167_v58 = vpop.f32.mrf.mxu2 }
 0x14f   : > { %v1390_v31 = vmax.f32 %v1374_v55, 0.0  ;;  %v1203_v44 = vadd.f32 %v1167_v58, %v1002_v59  ;;  %v1243_v39 = vpop.f32.mrf.mxu3 }
 0x150   : > { %v969_v37 = vpop.f32.mrf.mxu1 }
 0x151   : > { %v1437_v41 = vadd.f32 %v1436_v2, %v1390_v31  ;;  %v1459_v51 = vmul.f32 %v1390_v31, %v1390_v31  ;;  %v1279_v63 = vadd.f32 %v1243_v39, %v1203_v44  ;;  %v1322_v27 = vpop.f32.mrf.mxu0  ;;  %v1003_v22 = vadd.f32 %v969_v37, %v2276_v1 }
 0x153   : > { %v1474_v0 = vadd.f32 %v1473_v17, %v1459_v51  ;;  %v1355_v33 = vadd.f32 %v1319_v28, %v1279_v63 }
 0x155   : > { %v1375_v21 = vadd.f32 %v2389_v46, %v1355_v33 }
 0x156   : > { %v1170_v23 = vpop.f32.mrf.mxu2 }
 0x157   : > { %v1391_v61 = vmax.f32 %v1375_v21, 0.0  ;;  %v1204_v12 = vadd.f32 %v1170_v23, %v1003_v22  ;;  %v1246_v6 = vpop.f32.mrf.mxu3 }
 0x158   : > { %v971_v16 = vpop.f32.mrf.mxu1 }
 0x159   : > { %v1747_v36 = vpack.c.bf16 %v1391_v61, %v1390_v31  ;;  %v1438_v7 = vadd.f32 %v1437_v41, %v1391_v61  ;;  %v1460_v60 = vmul.f32 %v1391_v61, %v1391_v61  ;;  %v1280_v54 = vadd.f32 %v1246_v6, %v1204_v12  ;;  %v1324_v57 = vpop.f32.mrf.mxu0 }
 0x15a   : > { %v1004_v30 = vadd.f32 %v971_v16, %v2286_v20 }
 0x15b   : > { %1779 = vst [vmem:[%s2398_s21 + $0x8] sm:$0xff] %v1747_v36   ;;  %v1475_v13 = vadd.f32 %v1474_v0, %v1460_v60  ;;  %v1356_v14 = vadd.f32 %v1322_v27, %v1280_v54 }
 0x15d   : > { %v1376_v43 = vadd.f32 %v2389_v46, %v1356_v14 }
 0x15e   : > { %v1172_v47 = vpop.f32.mrf.mxu2 }
 0x15f   : > { %v1392_v18 = vmax.f32 %v1376_v43, 0.0  ;;  %v1205_v1 = vadd.f32 %v1172_v47, %v1004_v30  ;;  %v1248_v26 = vpop.f32.mrf.mxu3 }
 0x160   : > { %v974_v9 = vpop.f32.mrf.mxu1 }
 0x161   : > { %v1439_v15 = vadd.f32 %v1438_v7, %v1392_v18  ;;  %v1461_v19 = vmul.f32 %v1392_v18, %v1392_v18  ;;  %v1281_v10 = vadd.f32 %v1248_v26, %v1205_v1  ;;  %v1327_v49 = vpop.f32.mrf.mxu0  ;;  %v1005_v35 = vadd.f32 %v974_v9, %v2299_v24 }
 0x163   : > { %v1476_v5 = vadd.f32 %v1475_v13, %v1461_v19  ;;  %v1357_v11 = vadd.f32 %v1324_v57, %v1281_v10 }
 0x165   : > { %v1377_v42 = vadd.f32 %v2389_v46, %v1357_v11 }
 0x166   : > { %v1175_v29 = vpop.f32.mrf.mxu2 }
 0x167   : > { %v1393_v53 = vmax.f32 %v1377_v42, 0.0  ;;  %v1206_v25 = vadd.f32 %v1175_v29, %v1005_v35  ;;  %v1251_v20 = vpop.f32.mrf.mxu3 }
 0x168   : > { %v976_v48 = vpop.f32.mrf.mxu1 }
 0x169   : > { %v1752_v2 = vpack.c.bf16 %v1393_v53, %v1392_v18  ;;  %v1440_v32 = vadd.f32 %v1439_v15, %v1393_v53  ;;  %v1462_v62 = vmul.f32 %v1393_v53, %v1393_v53  ;;  %v1282_v28 = vadd.f32 %v1251_v20, %v1206_v25  ;;  %v1329_v17 = vpop.f32.mrf.mxu0 }
 0x16a   : > { %v1006_v58 = vadd.f32 %v976_v48, %v2308_v4 }
 0x16b   : > { %1780 = vst [vmem:[%s2398_s21 + $0x10] sm:$0xff] %v1752_v2   ;;  %v1477_v38 = vadd.f32 %v1476_v5, %v1462_v62  ;;  %v1358_v55 = vadd.f32 %v1327_v49, %v1282_v28 }
 0x16d   : > { %v1378_v59 = vadd.f32 %v2389_v46, %v1358_v55 }
 0x16e   : > { %v1177_v31 = vpop.f32.mrf.mxu2 }
 0x16f   : > { %v1394_v44 = vmax.f32 %v1378_v59, 0.0  ;;  %v1207_v24 = vadd.f32 %v1177_v31, %v1006_v58  ;;  %v1253_v39 = vpop.f32.mrf.mxu3 }
 0x170   : > { %v979_v37 = vpop.f32.mrf.mxu1 }
 0x171   : > { %v1441_v41 = vadd.f32 %v1440_v32, %v1394_v44  ;;  %v1463_v51 = vmul.f32 %v1394_v44, %v1394_v44  ;;  %v1283_v63 = vadd.f32 %v1253_v39, %v1207_v24  ;;  %v1332_v27 = vpop.f32.mrf.mxu0  ;;  %v1007_v22 = vadd.f32 %v979_v37, %v2321_v52 }
 0x173   : > { %v1478_v0 = vadd.f32 %v1477_v38, %v1463_v51  ;;  %v1359_v33 = vadd.f32 %v1329_v17, %v1283_v63 }
 0x175   : > { %v1379_v21 = vadd.f32 %v2389_v46, %v1359_v33 }
 0x176   : > { %v1180_v23 = vpop.f32.mrf.mxu2 }
 0x177   : > { %v1395_v61 = vmax.f32 %v1379_v21, 0.0  ;;  %v1208_v12 = vadd.f32 %v1180_v23, %v1007_v22  ;;  %v1256_v4 = vpop.f32.mrf.mxu3 }
 0x178   : > { %v981_v6 = vpop.f32.mrf.mxu1 }
 0x179   : > { %v1757_v16 = vpack.c.bf16 %v1395_v61, %v1394_v44  ;;  %v1442_v36 = vadd.f32 %v1441_v41, %v1395_v61  ;;  %v1464_v7 = vmul.f32 %v1395_v61, %v1395_v61  ;;  %v1284_v60 = vadd.f32 %v1256_v4, %v1208_v12  ;;  %v1334_v54 = vpop.f32.mrf.mxu0 }
 0x17a   : > { %v1008_v43 = vadd.f32 %v981_v6, %v2333_v3 }
 0x17b   : > { %1781 = vst [vmem:[%s2398_s21 + $0x18] sm:$0xff] %v1757_v16   ;;  %v1479_v57 = vadd.f32 %v1478_v0, %v1464_v7  ;;  %v1360_v13 = vadd.f32 %v1332_v27, %v1284_v60 }
 0x17d   : > { %v1380_v14 = vadd.f32 %v2389_v46, %v1360_v13 }
 0x17e   : > { %v1182_v30 = vpop.f32.mrf.mxu2 }
 0x17f   : > { %v1396_v47 = vmax.f32 %v1380_v14, 0.0  ;;  %v1209_v52 = vadd.f32 %v1182_v30, %v1008_v43  ;;  %v1258_v18 = vpop.f32.mrf.mxu3 }
 0x180   : > { %v984_v1 = vpop.f32.mrf.mxu1 }
 0x181   : > { %v1443_v26 = vadd.f32 %v1442_v36, %v1396_v47  ;;  %v1465_v9 = vmul.f32 %v1396_v47, %v1396_v47  ;;  %v1285_v15 = vadd.f32 %v1258_v18, %v1209_v52  ;;  %v1337_v19 = vpop.f32.mrf.mxu0  ;;  %v1009_v11 = vadd.f32 %v984_v1, %v2346_v40 }
 0x183   : > { %v1480_v10 = vadd.f32 %v1479_v57, %v1465_v9  ;;  %v1361_v49 = vadd.f32 %v1334_v54, %v1285_v15 }
 0x185   : > { %v1381_v5 = vadd.f32 %v2389_v46, %v1361_v49 }
 0x186   : > { %v1185_v42 = vpop.f32.mrf.mxu2 }
 0x187   : > { %v1397_v35 = vmax.f32 %v1381_v5, 0.0  ;;  %v1210_v29 = vadd.f32 %v1185_v42, %v1009_v11  ;;  %v1261_v3 = vpop.f32.mrf.mxu3 }
 0x188   : > { %v986_v53 = vpop.f32.mrf.mxu1 }
 0x189   : > { %v1762_v25 = vpack.c.bf16 %v1397_v35, %v1396_v47  ;;  %v1444_v20 = vadd.f32 %v1443_v26, %v1397_v35  ;;  %v1466_v48 = vmul.f32 %v1397_v35, %v1397_v35  ;;  %v1286_v2 = vadd.f32 %v1261_v3, %v1210_v29  ;;  %v1339_v32 = vpop.f32.mrf.mxu0 }
 0x18a   : > { %v1010_v38 = vadd.f32 %v986_v53, %v2354_v34 }
 0x18b   : > { %1782 = vst [vmem:[%s2398_s21 + $0x20] sm:$0xff] %v1762_v25   ;;  %v1481_v62 = vadd.f32 %v1480_v10, %v1466_v48  ;;  %v1362_v28 = vadd.f32 %v1337_v19, %v1286_v2 }
 0x18d   : > { %v1382_v17 = vadd.f32 %v2389_v46, %v1362_v28 }
 0x18e   : > { %v1187_v55 = vpop.f32.mrf.mxu2 }
 0x18f   : > { %v1398_v59 = vmax.f32 %v1382_v17, 0.0  ;;  %v1211_v40 = vadd.f32 %v1187_v55, %v1010_v38  ;;  %v1263_v58 = vpop.f32.mrf.mxu3 }
 0x190   : > { %v989_v31 = vpop.f32.mrf.mxu1 }
 0x191   : > { %v1445_v44 = vadd.f32 %v1444_v20, %v1398_v59  ;;  %v1467_v24 = vmul.f32 %v1398_v59, %v1398_v59  ;;  %v1287_v39 = vadd.f32 %v1263_v58, %v1211_v40  ;;  %v1342_v51 = vpop.f32.mrf.mxu0  ;;  %v1011_v27 = vadd.f32 %v989_v31, %v2368_v8 }
 0x193   : > { %v1482_v37 = vadd.f32 %v1481_v62, %v1467_v24  ;;  %v1363_v41 = vadd.f32 %v1339_v32, %v1287_v39 }
 0x195   : > { %v1383_v63 = vadd.f32 %v2389_v46, %v1363_v41 }
 0x196   : > { %v1190_v0 = vpop.f32.mrf.mxu2 }
 0x197   : > { %v1399_v33 = vmax.f32 %v1383_v63, 0.0  ;;  %v1212_v21 = vadd.f32 %v1190_v0, %v1011_v27  ;;  %v1266_v34 = vpop.f32.mrf.mxu3 }
 0x198   : > { %v991_v22 = vpop.f32.mrf.mxu1 }
 0x199   : > { %v1767_v23 = vpack.c.bf16 %v1399_v33, %v1398_v59  ;;  %v1446_v61 = vadd.f32 %v1445_v44, %v1399_v33  ;;  %v1468_v12 = vmul.f32 %v1399_v33, %v1399_v33  ;;  %v1288_v4 = vadd.f32 %v1266_v34, %v1212_v21  ;;  %v1344_v60 = vpop.f32.mrf.mxu0 }
 0x19a   : > { %v1012_v7 = vadd.f32 %v991_v22, %v2374_v56 }
 0x19b   : > { %1783 = vst [vmem:[%s2398_s21 + $0x28] sm:$0xff] %v1767_v23   ;;  %v1483_v6 = vadd.f32 %v1482_v37, %v1468_v12  ;;  %v1364_v16 = vadd.f32 %v1342_v51, %v1288_v4 }
 0x19d   : > { %v1384_v36 = vadd.f32 %v2389_v46, %v1364_v16 }
 0x19e   : > { %v1192_v54 = vpop.f32.mrf.mxu2 }
 0x19f   : > { %v1400_v57 = vmax.f32 %v1384_v36, 0.0  ;;  %v1213_v8 = vadd.f32 %v1192_v54, %v1012_v7  ;;  %v1268_v13 = vpop.f32.mrf.mxu3 }
 0x1a0   : > { %v994_v14 = vpop.f32.mrf.mxu1 }
 0x1a1   : > { %v1447_v43 = vadd.f32 %v1446_v61, %v1400_v57  ;;  %v1469_v30 = vmul.f32 %v1400_v57, %v1400_v57  ;;  %v1289_v47 = vadd.f32 %v1268_v13, %v1213_v8  ;;  %v1013_v26 = vadd.f32 %v994_v14, %v2379_v50  ;;  %v1347_v10 = vpop.f32.mrf.mxu0 }
 0x1a3   : > { %v1484_v52 = vadd.f32 %v1483_v6, %v1469_v30  ;;  %v1365_v18 = vadd.f32 %v1344_v60, %v1289_v47 }
 0x1a5   : > { %v1385_v1 = vadd.f32 %v2389_v46, %v1365_v18 }
 0x1a6   : > { %v1195_v9 = vpop.f32.mrf.mxu2 }
 0x1a7   : > { %v1401_v15 = vmax.f32 %v1385_v1, 0.0  ;;  %v1214_v19 = vadd.f32 %v1195_v9, %v1013_v26  ;;  %v1271_v56 = vpop.f32.mrf.mxu3 }
 0x1a8   : > { %v996_v35 = vpop.f32.mrf.mxu1 }
 0x1a9   : > { %v1772_v49 = vpack.c.bf16 %v1401_v15, %v1400_v57  ;;  %v1448_v5 = vadd.f32 %v1447_v43, %v1401_v15  ;;  %v1470_v11 = vmul.f32 %v1401_v15, %v1401_v15  ;;  %v1290_v42 = vadd.f32 %v1271_v56, %v1214_v19  ;;  %v1349_v17 = vpop.f32.mrf.mxu0 }
 0x1aa   : > { %v1014_v25 = vadd.f32 %v996_v35, %v2382_v45 }
 0x1ab   : > { %1784 = vst [vmem:[%s2398_s21 + $0x30] sm:$0xff] %v1772_v49   ;;  %v1485_v29 = vadd.f32 %v1484_v52, %v1470_v11  ;;  %v1366_v3 = vadd.f32 %v1347_v10, %v1290_v42 }
 0x1ad   : > { %v1386_v53 = vadd.f32 %v2389_v46, %v1366_v3 }
 0x1ae   : > { %v1197_v20 = vpop.f32.mrf.mxu2 }
 0x1af   : > { %v1402_v50 = vmax.f32 %v1386_v53, 0.0  ;;  %v1215_v48 = vadd.f32 %v1197_v20, %v1014_v25  ;;  %v1273_v2 = vpop.f32.mrf.mxu3 }
 0x1b1   : > { %v1449_v32 = vadd.f32 %v1448_v5, %v1402_v50  ;;  %v1471_v62 = vmul.f32 %v1402_v50, %v1402_v50  ;;  %v1291_v28 = vadd.f32 %v1273_v2, %v1215_v48 }
 0x1b3   : > { %v1486_v38 = vadd.f32 %v1485_v29, %v1471_v62  ;;  %v1367_v55 = vadd.f32 %v1349_v17, %v1291_v28 }
 0x1b5   : > { %v1387_v59 = vadd.f32 %v2389_v46, %v1367_v55 }
 0x1b7   : > { %v1403_v40 = vmax.f32 %v1387_v59, 0.0 }
 0x1b9   : > { %v1777_v58 = vpack.c.bf16 %v1403_v40, %v1402_v50  ;;  %v1450_v31 = vadd.f32 %v1449_v32, %v1403_v40  ;;  %v1472_v44 = vmul.f32 %v1403_v40, %v1403_v40 }
 0x1bb   : > { %1785 = vst [vmem:[%s2398_s21 + $0x38] sm:$0xff] %v1777_v58   ;;  %v1451_v45 = vrot.slane %v1450_v31, 4  ;;  %v1487_v24 = vadd.f32 %v1486_v38, %v1472_v44 }
 0x1bd   : > { %v1452_v39 = vadd.f32 %v1451_v45, %v1450_v31  ;;  %v1488_v37 = vrot.slane %v1487_v24, 4 }
 0x1bf   : > { %v1453_v41 = vrot.slane %v1452_v39, 2  ;;  %v1489_v51 = vadd.f32 %v1488_v37, %v1487_v24 }
 0x1c1   : > { %v1454_v63 = vadd.f32 %v1453_v41, %v1452_v39  ;;  %v1490_v27 = vrot.slane %v1489_v51, 2 }
 0x1c3   : > { %v1455_v0 = vrot.slane %v1454_v63, 1  ;;  %v1491_v33 = vadd.f32 %v1490_v27, %v1489_v51 }
 0x1c5   : > { %v1492_v21 = vrot.slane %v1491_v33, 1  ;;  %v1456_v46 = vadd.f32 %v1455_v0, %v1454_v63 }
 0x1c7   : > { %v1493_v34 = vadd.f32 %v1492_v21, %v1491_v33 }
 0x1c9   : > { %v1495_v22 = vsel %vm1494_vm8, %v1456_v46, %v1493_v34 }
 0x1ca   : > { %1496 = vst [vmem:[%s211_s26] sm:$0x3] %v1495_v22 }
 0x1cb PF: > { %s15_s15 = sadd.s32 1, %s1805_s15  }
 0x1cc   : > { %p12_p5 = scmp.ge.s32.totalorder %s15_s15, 6  }
 0x1ce   :  { %14 = sbr.rel (!%p12_p5) target bundleno = 1 (0x1), region = 82 }

// kernel: res_block.5
= control target key start
LH: loop header
LB: loop body
LE: loop exit
PB: predicated region body
PF: predicated region fallthrough
CT: control target
= control target key end

     0   :  { %vm614_vm0 = vcmask 1041408   ;;  %vm517_vm1 = vcmask 31744   ;;  %s1937_s4 = inlined_call_operand.vmem [shape: bf16[4,128], index: 4, kind: input, shape index: {}]   ;;  %s1938_s3 = inlined_call_operand.vmem [shape: bf16[512,4], index: 3, kind: input, shape index: {}]   ;;  %s1939_s1 = inlined_call_operand.vmem [shape: f32[1,128], index: 1, kind: input, shape index: {}]   ;;  %s1940_s2 = inlined_call_operand.vmem [shape: f32[1,128], index: 2, kind: input, shape index: {}]   ;;  %s1941_s5 = inlined_call_operand.vmem [shape: f32[1,128], index: 5, kind: input, shape index: {}]   ;;  %s1942_s0 = inlined_call_operand.vmem [shape: bf16[512,128], index: 0, kind: input, shape index: {}]   ;;  %s1943_s6 = inlined_call_operand.vmem [shape: f32[512,128], index: 6, kind: output, shape index: {}]  }
   0x1   :  { %v352_v0 = vld [vmem:[%s1937_s4] sm:$0x3]  ;;  %v1080_v6 = vld [vmem:[%s1938_s3 + $0x8] sm:$0xff]  ;;  %v1081_v10 = vld [vmem:[%s1938_s3 + $0x10] sm:$0xff] }
   0x2   :  { %v616_v1 = vsel %vm614_vm0, %v352_v0, 0  ;;  %v1079_v2 = vld [vmem:[%s1938_s3] sm:$0xff]  ;;  %v1088_v7 = vld [vmem:[%s1938_s3 + $0x48] sm:$0xff]  ;;  %v1089_v11 = vld [vmem:[%s1938_s3 + $0x50] sm:$0xff] }
   0x3   :  { %v1087_v3 = vld [vmem:[%s1938_s3 + $0x40] sm:$0xff]  ;;  %625 = vmatpush.bf16.msra.mxu0 %v616_v1  ;;  %1270 = vmatpush.bf16.msra.mxu1 %v616_v1  ;;  %v1096_v8 = vld [vmem:[%s1938_s3 + $0x88] sm:$0xff]  ;;  %v1097_v12 = vld [vmem:[%s1938_s3 + $0x90] sm:$0xff] }
   0x4   :  { %v1095_v4 = vld [vmem:[%s1938_s3 + $0x80] sm:$0xff]  ;;  %1271 = vmatpush.bf16.msra.mxu2 %v616_v1  ;;  %1272 = vmatpush.bf16.msra.mxu3 %v616_v1  ;;  %v1104_v9 = vld [vmem:[%s1938_s3 + $0xc8] sm:$0xff]  ;;  %v1105_v13 = vld [vmem:[%s1938_s3 + $0xd0] sm:$0xff] }
   0x5   :  { %v1103_v5 = vld [vmem:[%s1938_s3 + $0xc0] sm:$0xff]  ;;  %v1082_v14 = vld [vmem:[%s1938_s3 + $0x18] sm:$0xff]  ;;  %v1084_v22 = vld [vmem:[%s1938_s3 + $0x28] sm:$0xff] }
   0x6   :  { %1047 = vmatmul.msk.bf16.vlgmr.msra.gmra.mxu0 %vm517_vm1, %v1079_v2  ;;  %1055 = vmatmul.msk.bf16.vlgmr.msra.gmra.mxu1 %vm517_vm1, %v1087_v3  ;;  %v1090_v15 = vld [vmem:[%s1938_s3 + $0x58] sm:$0xff]  ;;  %v1083_v18 = vld [vmem:[%s1938_s3 + $0x20] sm:$0xff]  ;;  %v1092_v23 = vld [vmem:[%s1938_s3 + $0x68] sm:$0xff] }
   0x7   :  { %1063 = vmatmul.msk.bf16.vlgmr.msra.gmra.mxu2 %vm517_vm1, %v1095_v4  ;;  %1071 = vmatmul.msk.bf16.vlgmr.msra.gmra.mxu3 %vm517_vm1, %v1103_v5  ;;  %v1098_v16 = vld [vmem:[%s1938_s3 + $0x98] sm:$0xff]  ;;  %v1091_v19 = vld [vmem:[%s1938_s3 + $0x60] sm:$0xff]  ;;  %v1100_v24 = vld [vmem:[%s1938_s3 + $0xa8] sm:$0xff] }
   0x8   :  { %v1106_v17 = vld [vmem:[%s1938_s3 + $0xd8] sm:$0xff]  ;;  %v1099_v20 = vld [vmem:[%s1938_s3 + $0xa0] sm:$0xff]  ;;  %v1108_v25 = vld [vmem:[%s1938_s3 + $0xe8] sm:$0xff] }
   0x9   :  { %v1107_v21 = vld [vmem:[%s1938_s3 + $0xe0] sm:$0xff]  ;;  %v1085_v26 = vld [vmem:[%s1938_s3 + $0x30] sm:$0xff]  ;;  %v1086_v30 = vld [vmem:[%s1938_s3 + $0x38] sm:$0xff] }
   0xa   :  { %v1093_v27 = vld [vmem:[%s1938_s3 + $0x70] sm:$0xff]  ;;  %v1094_v31 = vld [vmem:[%s1938_s3 + $0x78] sm:$0xff]  ;;  %v1112_v34 = vld [vmem:[%s1942_s0] sm:$0xff]  }
   0xb   :  { %v1101_v28 = vld [vmem:[%s1938_s3 + $0xb0] sm:$0xff]  ;;  %v1102_v32 = vld [vmem:[%s1938_s3 + $0xb8] sm:$0xff]  ;;  %v1246_v35 = vld [vmem:[%s1942_s0 + $0x40] sm:$0xff]   ;;  %v1113_v36 = vunpack.c.l.bf16 %v1112_v34  ;;  %v1114_v49 = vunpack.c.h.bf16 %v1112_v34 }
   0xc   :  { %v1109_v29 = vld [vmem:[%s1938_s3 + $0xf0] sm:$0xff]  ;;  %v1110_v33 = vld [vmem:[%s1938_s3 + $0xf8] sm:$0xff]  ;;  %v1451_v37 = vld [vmem:[%s1939_s1] ss:$0 sm:$0xff]  ;;  %v1145_v38 = vunpack.c.l.bf16 %v1246_v35  ;;  %v1146_v50 = vunpack.c.h.bf16 %v1246_v35 }
   0xd   :  { %v156_v39 = vmul.f32 %v1451_v37, %v1113_v36  ;;  %v1457_v40 = vld [vmem:[%s1940_s2] ss:$0 sm:$0xff]  ;;  %v157_v59 = vmul.f32 %v1451_v37, %v1114_v49  ;;  %v1239_v61 = vld [vmem:[%s1942_s0 + $0x8] sm:$0xff]  }
   0xe   :  { %v172_v41 = vmul.f32 %v1451_v37, %v1145_v38  ;;  %v1254_v42 = vld [vmem:[%s1942_s0 + $0x80] sm:$0xff]   ;;  %v173_v60 = vmul.f32 %v1451_v37, %v1146_v50  ;;  %v1247_v62 = vld [vmem:[%s1942_s0 + $0x48] sm:$0xff]  }
   0xf   :  { %v1262_v43 = vld [vmem:[%s1942_s0 + $0xc0] sm:$0xff]   ;;  %v1177_v45 = vunpack.c.l.bf16 %v1254_v42  ;;  %v224_v47 = vadd.f32 %v1457_v40, %v156_v39  ;;  %v1178_v1 = vunpack.c.h.bf16 %v1254_v42  ;;  %v225_v5 = vadd.f32 %v1457_v40, %v157_v59 }
  0x10   :  { %v1469_v44 = vld [vmem:[%s1941_s5] ss:$0 sm:$0xff]  ;;  %v1209_v46 = vunpack.c.l.bf16 %v1262_v43  ;;  %v240_v48 = vadd.f32 %v1457_v40, %v172_v41  ;;  %v1210_v2 = vunpack.c.h.bf16 %v1262_v43  ;;  %v1150_v34 = vunpack.c.h.bf16 %v1247_v62 }
  0x11   :  { %v188_v55 = vmul.f32 %v1451_v37, %v1177_v45 }
  0x12   :  { %v204_v56 = vmul.f32 %v1451_v37, %v1209_v46 }
  0x13   :  { %v256_v63 = vadd.f32 %v1457_v40, %v188_v55 }
  0x14   :  { %v272_v0 = vadd.f32 %v1457_v40, %v204_v56 }
  0x16   :  { %1048 = vmatmul.msk.bf16.gmra.mxu0 %vm517_vm1, %v1080_v6  ;;  %1056 = vmatmul.msk.bf16.gmra.mxu1 %vm517_vm1, %v1088_v7  ;;  %v241_v6 = vadd.f32 %v1457_v40, %v173_v60  ;;  %v1117_v7 = vunpack.c.l.bf16 %v1239_v61 }
  0x17   :  { %1064 = vmatmul.msk.bf16.gmra.mxu2 %vm517_vm1, %v1096_v8  ;;  %1072 = vmatmul.msk.bf16.gmra.mxu3 %vm517_vm1, %v1104_v9  ;;  %v1149_v8 = vunpack.c.l.bf16 %v1247_v62 }
  0x26   :  { %1049 = vmatmul.msk.bf16.gmra.mxu0 %vm517_vm1, %v1081_v10  ;;  %1057 = vmatmul.msk.bf16.gmra.mxu1 %vm517_vm1, %v1089_v11 }
  0x27   :  { %1065 = vmatmul.msk.bf16.gmra.mxu2 %vm517_vm1, %v1097_v12  ;;  %1073 = vmatmul.msk.bf16.gmra.mxu3 %vm517_vm1, %v1105_v13 }
  0x36   :  { %1050 = vmatmul.msk.bf16.gmra.mxu0 %vm517_vm1, %v1082_v14  ;;  %1058 = vmatmul.msk.bf16.gmra.mxu1 %vm517_vm1, %v1090_v15 }
  0x37   :  { %1066 = vmatmul.msk.bf16.gmra.mxu2 %vm517_vm1, %v1098_v16  ;;  %1074 = vmatmul.msk.bf16.gmra.mxu3 %vm517_vm1, %v1106_v17  ;;  %v189_v17 = vmul.f32 %v1451_v37, %v1178_v1 }
  0x46   :  { %1051 = vmatmul.msk.bf16.gmra.mxu0 %vm517_vm1, %v1083_v18  ;;  %1059 = vmatmul.msk.bf16.gmra.mxu1 %vm517_vm1, %v1091_v19  ;;  %v205_v18 = vmul.f32 %v1451_v37, %v1210_v2 }
  0x47   :  { %1067 = vmatmul.msk.bf16.gmra.mxu2 %vm517_vm1, %v1099_v20  ;;  %1075 = vmatmul.msk.bf16.gmra.mxu3 %vm517_vm1, %v1107_v21  ;;  %v158_v21 = vmul.f32 %v1451_v37, %v1117_v7 }
  0x56   :  { %1052 = vmatmul.msk.bf16.gmra.mxu0 %vm517_vm1, %v1084_v22  ;;  %1060 = vmatmul.msk.bf16.gmra.mxu1 %vm517_vm1, %v1092_v23  ;;  %v174_v22 = vmul.f32 %v1451_v37, %v1149_v8  ;;  %v1255_v23 = vld [vmem:[%s1942_s0 + $0x88] sm:$0xff]  }
  0x57   :  { %1068 = vmatmul.msk.bf16.gmra.mxu2 %vm517_vm1, %v1100_v24  ;;  %1076 = vmatmul.msk.bf16.gmra.mxu3 %vm517_vm1, %v1108_v25  ;;  %v1263_v24 = vld [vmem:[%s1942_s0 + $0xc8] sm:$0xff]   ;;  %v257_v25 = vadd.f32 %v1457_v40, %v189_v17  ;;  %v1182_v56 = vunpack.c.h.bf16 %v1255_v23 }
  0x59   :  { %v191_v8 = vmul.f32 %v1451_v37, %v1182_v56 }
  0x66   :  { %1053 = vmatmul.msk.bf16.gmra.mxu0 %vm517_vm1, %v1085_v26  ;;  %1061 = vmatmul.msk.bf16.gmra.mxu1 %vm517_vm1, %v1093_v27  ;;  %v273_v26 = vadd.f32 %v1457_v40, %v205_v18  ;;  %v1181_v27 = vunpack.c.l.bf16 %v1255_v23 }
  0x67   :  { %1069 = vmatmul.msk.bf16.gmra.mxu2 %vm517_vm1, %v1101_v28  ;;  %1077 = vmatmul.msk.bf16.gmra.mxu3 %vm517_vm1, %v1109_v29  ;;  %v1213_v28 = vunpack.c.l.bf16 %v1263_v24 }
  0x68   :  { %v190_v46 = vmul.f32 %v1451_v37, %v1181_v27 }
  0x76   :  { %1054 = vmatmul.msk.bf16.gmra.mxu0 %vm517_vm1, %v1086_v30  ;;  %1062 = vmatmul.msk.bf16.gmra.mxu1 %vm517_vm1, %v1094_v31  ;;  %v226_v31 = vadd.f32 %v1457_v40, %v158_v21 }
  0x77   :  { %1070 = vmatmul.msk.bf16.gmra.mxu2 %vm517_vm1, %v1102_v32  ;;  %1078 = vmatmul.msk.bf16.gmra.mxu3 %vm517_vm1, %v1110_v33  ;;  %v242_v32 = vadd.f32 %v1457_v40, %v174_v22  ;;  %v1118_v33 = vunpack.c.h.bf16 %v1239_v61 }
  0x79   :  { %v159_v50 = vmul.f32 %v1451_v37, %v1118_v33 }
  0x7b   :  { %v227_v60 = vadd.f32 %v1457_v40, %v159_v50 }
  0x83   :  { %v627_v51 = vpop.f32.mrf.mxu0  ;;  %v667_v52 = vpop.f32.mrf.mxu1 }
  0x84   :  { %v628_v53 = vadd.f32 %v1469_v44, %v627_v51  ;;  %v668_v54 = vadd.f32 %v1469_v44, %v667_v52  ;;  %v175_v51 = vmul.f32 %v1451_v37, %v1150_v34  ;;  %v1240_v52 = vld [vmem:[%s1942_s0 + $0x10] sm:$0xff]  }
  0x85   :  { %v1121_v62 = vunpack.c.l.bf16 %v1240_v52 }
  0x86   :  { %v787_v57 = vadd.f32 %v628_v53, %v224_v47  ;;  %v803_v58 = vadd.f32 %v668_v54, %v240_v48  ;;  %v206_v47 = vmul.f32 %v1451_v37, %v1213_v28  ;;  %v1248_v53 = vld [vmem:[%s1942_s0 + $0x50] sm:$0xff]   ;;  %v258_v54 = vadd.f32 %v1457_v40, %v190_v46 }
  0x87   :  { %v243_v61 = vadd.f32 %v1457_v40, %v175_v51 }
  0x88   :  { %851 = vst [vmem:[%s1943_s6] sm:$0xff] %v787_v57  ;;  %v274_v55 = vadd.f32 %v1457_v40, %v206_v47  ;;  %v1214_v57 = vunpack.c.h.bf16 %v1263_v24  ;;  %v1122_v24 = vunpack.c.h.bf16 %v1240_v52 }
  0x89   :  { %867 = vst [vmem:[%s1943_s6 + $0x80] sm:$0xff] %v803_v58 }
  0x8a   :  { %v707_v3 = vpop.f32.mrf.mxu2  ;;  %v747_v4 = vpop.f32.mrf.mxu3 }
  0x8b   :  { %v708_v9 = vadd.f32 %v1469_v44, %v707_v3  ;;  %v748_v10 = vadd.f32 %v1469_v44, %v747_v4  ;;  %v629_v11 = vpop.f32.mrf.mxu0  ;;  %v669_v12 = vpop.f32.mrf.mxu1 }
  0x8c   :  { %v630_v13 = vadd.f32 %v1469_v44, %v629_v11  ;;  %v670_v14 = vadd.f32 %v1469_v44, %v669_v12  ;;  %v160_v12 = vmul.f32 %v1451_v37, %v1121_v62 }
  0x8d   :  { %v819_v15 = vadd.f32 %v708_v9, %v256_v63  ;;  %v835_v16 = vadd.f32 %v748_v10, %v272_v0  ;;  %v1153_v63 = vunpack.c.l.bf16 %v1248_v53  ;;  %v207_v9 = vmul.f32 %v1451_v37, %v1214_v57 }
  0x8e   :  { %v788_v19 = vadd.f32 %v630_v13, %v225_v5  ;;  %v804_v20 = vadd.f32 %v670_v14, %v241_v6  ;;  %v1256_v14 = vld [vmem:[%s1942_s0 + $0x90] sm:$0xff]   ;;  %v228_v22 = vadd.f32 %v1457_v40, %v160_v12 }
  0x8f   :  { %883 = vst [vmem:[%s1943_s6 + $0x100] sm:$0xff] %v819_v15  ;;  %v176_v13 = vmul.f32 %v1451_v37, %v1153_v63  ;;  %v1264_v15 = vld [vmem:[%s1942_s0 + $0xd0] sm:$0xff]   ;;  %v275_v17 = vadd.f32 %v1457_v40, %v207_v9  ;;  %v1185_v18 = vunpack.c.l.bf16 %v1256_v14  ;;  %v1186_v47 = vunpack.c.h.bf16 %v1256_v14 }
  0x90   :  { %899 = vst [vmem:[%s1943_s6 + $0x180] sm:$0xff] %v835_v16  ;;  %v259_v16 = vadd.f32 %v1457_v40, %v191_v8 }
  0x91   :  { %852 = vst [vmem:[%s1943_s6 + $0x8] sm:$0xff] %v788_v19  ;;  %v1217_v19 = vunpack.c.l.bf16 %v1264_v15  ;;  %v244_v23 = vadd.f32 %v1457_v40, %v176_v13  ;;  %v192_v34 = vmul.f32 %v1451_v37, %v1185_v18  ;;  %v193_v63 = vmul.f32 %v1451_v37, %v1186_v47 }
  0x92   :  { %868 = vst [vmem:[%s1943_s6 + $0x88] sm:$0xff] %v804_v20  ;;  %v709_v29 = vpop.f32.mrf.mxu2  ;;  %v749_v30 = vpop.f32.mrf.mxu3 }
  0x93   :  { %v710_v35 = vadd.f32 %v1469_v44, %v709_v29  ;;  %v750_v36 = vadd.f32 %v1469_v44, %v749_v30  ;;  %v632_v38 = vpop.f32.mrf.mxu0  ;;  %v672_v39 = vpop.f32.mrf.mxu1 }
  0x94   :  { %v633_v41 = vadd.f32 %v1469_v44, %v632_v38  ;;  %v673_v42 = vadd.f32 %v1469_v44, %v672_v39  ;;  %v161_v39 = vmul.f32 %v1451_v37, %v1122_v24 }
  0x95   :  { %v820_v43 = vadd.f32 %v710_v35, %v257_v25  ;;  %v836_v45 = vadd.f32 %v750_v36, %v273_v26  ;;  %v1154_v25 = vunpack.c.h.bf16 %v1248_v53  ;;  %v208_v35 = vmul.f32 %v1451_v37, %v1217_v19 }
  0x96   :  { %v789_v48 = vadd.f32 %v633_v41, %v226_v31  ;;  %v805_v49 = vadd.f32 %v673_v42, %v242_v32  ;;  %v1241_v42 = vld [vmem:[%s1942_s0 + $0x18] sm:$0xff]   ;;  %v229_v51 = vadd.f32 %v1457_v40, %v161_v39 }
  0x97   :  { %884 = vst [vmem:[%s1943_s6 + $0x108] sm:$0xff] %v820_v43  ;;  %v177_v41 = vmul.f32 %v1451_v37, %v1154_v25  ;;  %v1249_v43 = vld [vmem:[%s1942_s0 + $0x58] sm:$0xff]   ;;  %v276_v46 = vadd.f32 %v1457_v40, %v208_v35  ;;  %v1125_v53 = vunpack.c.l.bf16 %v1241_v42 }
  0x98   :  { %900 = vst [vmem:[%s1943_s6 + $0x188] sm:$0xff] %v836_v45  ;;  %v260_v45 = vadd.f32 %v1457_v40, %v192_v34 }
  0x99   :  { %853 = vst [vmem:[%s1943_s6 + $0x10] sm:$0xff] %v789_v48  ;;  %v1218_v48 = vunpack.c.h.bf16 %v1264_v15  ;;  %v245_v52 = vadd.f32 %v1457_v40, %v177_v41  ;;  %v1126_v15 = vunpack.c.h.bf16 %v1241_v42 }
  0x9a   :  { %869 = vst [vmem:[%s1943_s6 + $0x90] sm:$0xff] %v805_v49  ;;  %v712_v58 = vpop.f32.mrf.mxu2  ;;  %v752_v59 = vpop.f32.mrf.mxu3 }
  0x9b   :  { %v713_v0 = vadd.f32 %v1469_v44, %v712_v58  ;;  %v753_v1 = vadd.f32 %v1469_v44, %v752_v59  ;;  %v634_v2 = vpop.f32.mrf.mxu0  ;;  %v674_v3 = vpop.f32.mrf.mxu1 }
  0x9c   :  { %v635_v4 = vadd.f32 %v1469_v44, %v634_v2  ;;  %v675_v5 = vadd.f32 %v1469_v44, %v674_v3  ;;  %v162_v3 = vmul.f32 %v1451_v37, %v1125_v53 }
  0x9d   :  { %v821_v6 = vadd.f32 %v713_v0, %v258_v54  ;;  %v837_v7 = vadd.f32 %v753_v1, %v274_v55  ;;  %v1157_v54 = vunpack.c.l.bf16 %v1249_v43  ;;  %v209_v0 = vmul.f32 %v1451_v37, %v1218_v48 }
  0x9e   :  { %v790_v10 = vadd.f32 %v635_v4, %v227_v60  ;;  %v806_v11 = vadd.f32 %v675_v5, %v243_v61  ;;  %v1257_v5 = vld [vmem:[%s1942_s0 + $0x98] sm:$0xff]   ;;  %v230_v13 = vadd.f32 %v1457_v40, %v162_v3 }
  0x9f   :  { %885 = vst [vmem:[%s1943_s6 + $0x110] sm:$0xff] %v821_v6  ;;  %v178_v4 = vmul.f32 %v1451_v37, %v1157_v54  ;;  %v1265_v6 = vld [vmem:[%s1942_s0 + $0xd8] sm:$0xff]   ;;  %v277_v8 = vadd.f32 %v1457_v40, %v209_v0  ;;  %v1189_v9 = vunpack.c.l.bf16 %v1257_v5  ;;  %v1190_v35 = vunpack.c.h.bf16 %v1257_v5 }
  0xa0   :  { %901 = vst [vmem:[%s1943_s6 + $0x190] sm:$0xff] %v837_v7  ;;  %v261_v7 = vadd.f32 %v1457_v40, %v193_v63 }
  0xa1   :  { %854 = vst [vmem:[%s1943_s6 + $0x18] sm:$0xff] %v790_v10  ;;  %v1221_v10 = vunpack.c.l.bf16 %v1265_v6  ;;  %v246_v14 = vadd.f32 %v1457_v40, %v178_v4  ;;  %v194_v25 = vmul.f32 %v1451_v37, %v1189_v9  ;;  %v195_v54 = vmul.f32 %v1451_v37, %v1190_v35 }
  0xa2   :  { %870 = vst [vmem:[%s1943_s6 + $0x98] sm:$0xff] %v806_v11  ;;  %v714_v20 = vpop.f32.mrf.mxu2  ;;  %v754_v21 = vpop.f32.mrf.mxu3 }
  0xa3   :  { %v715_v26 = vadd.f32 %v1469_v44, %v714_v20  ;;  %v755_v27 = vadd.f32 %v1469_v44, %v754_v21  ;;  %v637_v28 = vpop.f32.mrf.mxu0  ;;  %v677_v29 = vpop.f32.mrf.mxu1 }
  0xa4   :  { %v638_v30 = vadd.f32 %v1469_v44, %v637_v28  ;;  %v678_v31 = vadd.f32 %v1469_v44, %v677_v29  ;;  %v163_v29 = vmul.f32 %v1451_v37, %v1126_v15 }
  0xa5   :  { %v822_v32 = vadd.f32 %v715_v26, %v259_v16  ;;  %v838_v33 = vadd.f32 %v755_v27, %v275_v17  ;;  %v1158_v16 = vunpack.c.h.bf16 %v1249_v43  ;;  %v210_v26 = vmul.f32 %v1451_v37, %v1221_v10 }
  0xa6   :  { %v791_v36 = vadd.f32 %v638_v30, %v228_v22  ;;  %v807_v38 = vadd.f32 %v678_v31, %v244_v23  ;;  %v1242_v31 = vld [vmem:[%s1942_s0 + $0x20] sm:$0xff]   ;;  %v231_v41 = vadd.f32 %v1457_v40, %v163_v29 }
  0xa7   :  { %886 = vst [vmem:[%s1943_s6 + $0x118] sm:$0xff] %v822_v32  ;;  %v179_v30 = vmul.f32 %v1451_v37, %v1158_v16  ;;  %v1250_v32 = vld [vmem:[%s1942_s0 + $0x60] sm:$0xff]   ;;  %v278_v34 = vadd.f32 %v1457_v40, %v210_v26  ;;  %v1129_v43 = vunpack.c.l.bf16 %v1242_v31 }
  0xa8   :  { %902 = vst [vmem:[%s1943_s6 + $0x198] sm:$0xff] %v838_v33  ;;  %v262_v33 = vadd.f32 %v1457_v40, %v194_v25 }
  0xa9   :  { %855 = vst [vmem:[%s1943_s6 + $0x20] sm:$0xff] %v791_v36  ;;  %v1222_v36 = vunpack.c.h.bf16 %v1265_v6  ;;  %v247_v42 = vadd.f32 %v1457_v40, %v179_v30  ;;  %v1130_v6 = vunpack.c.h.bf16 %v1242_v31 }
  0xaa   :  { %871 = vst [vmem:[%s1943_s6 + $0xa0] sm:$0xff] %v807_v38  ;;  %v717_v49 = vpop.f32.mrf.mxu2  ;;  %v757_v50 = vpop.f32.mrf.mxu3 }
  0xab   :  { %v718_v55 = vadd.f32 %v1469_v44, %v717_v49  ;;  %v758_v56 = vadd.f32 %v1469_v44, %v757_v50  ;;  %v639_v57 = vpop.f32.mrf.mxu0  ;;  %v679_v58 = vpop.f32.mrf.mxu1 }
  0xac   :  { %v640_v59 = vadd.f32 %v1469_v44, %v639_v57  ;;  %v680_v60 = vadd.f32 %v1469_v44, %v679_v58  ;;  %v164_v58 = vmul.f32 %v1451_v37, %v1129_v43 }
  0xad   :  { %v823_v61 = vadd.f32 %v718_v55, %v260_v45  ;;  %v839_v62 = vadd.f32 %v758_v56, %v276_v46  ;;  %v1161_v45 = vunpack.c.l.bf16 %v1250_v32  ;;  %v211_v55 = vmul.f32 %v1451_v37, %v1222_v36 }
  0xae   :  { %v792_v1 = vadd.f32 %v640_v59, %v229_v51  ;;  %v808_v2 = vadd.f32 %v680_v60, %v245_v52  ;;  %v1258_v60 = vld [vmem:[%s1942_s0 + $0xa0] sm:$0xff]   ;;  %v232_v4 = vadd.f32 %v1457_v40, %v164_v58 }
  0xaf   :  { %887 = vst [vmem:[%s1943_s6 + $0x120] sm:$0xff] %v823_v61  ;;  %v180_v59 = vmul.f32 %v1451_v37, %v1161_v45  ;;  %v1266_v61 = vld [vmem:[%s1942_s0 + $0xe0] sm:$0xff]   ;;  %v279_v63 = vadd.f32 %v1457_v40, %v211_v55  ;;  %v1193_v0 = vunpack.c.l.bf16 %v1258_v60  ;;  %v1194_v26 = vunpack.c.h.bf16 %v1258_v60 }
  0xb0   :  { %903 = vst [vmem:[%s1943_s6 + $0x1a0] sm:$0xff] %v839_v62  ;;  %v263_v62 = vadd.f32 %v1457_v40, %v195_v54 }
  0xb1   :  { %856 = vst [vmem:[%s1943_s6 + $0x28] sm:$0xff] %v792_v1  ;;  %v1225_v1 = vunpack.c.l.bf16 %v1266_v61  ;;  %v248_v5 = vadd.f32 %v1457_v40, %v180_v59  ;;  %v196_v16 = vmul.f32 %v1451_v37, %v1193_v0  ;;  %v197_v45 = vmul.f32 %v1451_v37, %v1194_v26 }
  0xb2   :  { %872 = vst [vmem:[%s1943_s6 + $0xa8] sm:$0xff] %v808_v2  ;;  %v719_v11 = vpop.f32.mrf.mxu2  ;;  %v759_v12 = vpop.f32.mrf.mxu3 }
  0xb3   :  { %v720_v17 = vadd.f32 %v1469_v44, %v719_v11  ;;  %v760_v18 = vadd.f32 %v1469_v44, %v759_v12  ;;  %v642_v19 = vpop.f32.mrf.mxu0  ;;  %v682_v20 = vpop.f32.mrf.mxu1 }
  0xb4   :  { %v643_v21 = vadd.f32 %v1469_v44, %v642_v19  ;;  %v683_v22 = vadd.f32 %v1469_v44, %v682_v20  ;;  %v165_v20 = vmul.f32 %v1451_v37, %v1130_v6 }
  0xb5   :  { %v824_v23 = vadd.f32 %v720_v17, %v261_v7  ;;  %v840_v24 = vadd.f32 %v760_v18, %v277_v8  ;;  %v1162_v7 = vunpack.c.h.bf16 %v1250_v32  ;;  %v212_v17 = vmul.f32 %v1451_v37, %v1225_v1 }
  0xb6   :  { %v793_v27 = vadd.f32 %v643_v21, %v230_v13  ;;  %v809_v28 = vadd.f32 %v683_v22, %v246_v14  ;;  %v1243_v22 = vld [vmem:[%s1942_s0 + $0x28] sm:$0xff]   ;;  %v233_v30 = vadd.f32 %v1457_v40, %v165_v20 }
  0xb7   :  { %888 = vst [vmem:[%s1943_s6 + $0x128] sm:$0xff] %v824_v23  ;;  %v181_v21 = vmul.f32 %v1451_v37, %v1162_v7  ;;  %v1251_v23 = vld [vmem:[%s1942_s0 + $0x68] sm:$0xff]   ;;  %v280_v25 = vadd.f32 %v1457_v40, %v212_v17  ;;  %v1133_v32 = vunpack.c.l.bf16 %v1243_v22 }
  0xb8   :  { %904 = vst [vmem:[%s1943_s6 + $0x1a8] sm:$0xff] %v840_v24  ;;  %v264_v24 = vadd.f32 %v1457_v40, %v196_v16 }
  0xb9   :  { %857 = vst [vmem:[%s1943_s6 + $0x30] sm:$0xff] %v793_v27  ;;  %v1226_v27 = vunpack.c.h.bf16 %v1266_v61  ;;  %v249_v31 = vadd.f32 %v1457_v40, %v181_v21  ;;  %v1134_v61 = vunpack.c.h.bf16 %v1243_v22 }
  0xba   :  { %873 = vst [vmem:[%s1943_s6 + $0xb0] sm:$0xff] %v809_v28  ;;  %v722_v38 = vpop.f32.mrf.mxu2  ;;  %v762_v39 = vpop.f32.mrf.mxu3 }
  0xbb   :  { %v723_v46 = vadd.f32 %v1469_v44, %v722_v38  ;;  %v763_v47 = vadd.f32 %v1469_v44, %v762_v39  ;;  %v644_v48 = vpop.f32.mrf.mxu0  ;;  %v684_v49 = vpop.f32.mrf.mxu1 }
  0xbc   :  { %v645_v50 = vadd.f32 %v1469_v44, %v644_v48  ;;  %v685_v51 = vadd.f32 %v1469_v44, %v684_v49  ;;  %v166_v49 = vmul.f32 %v1451_v37, %v1133_v32 }
  0xbd   :  { %v825_v52 = vadd.f32 %v723_v46, %v262_v33  ;;  %v841_v53 = vadd.f32 %v763_v47, %v278_v34  ;;  %v1165_v33 = vunpack.c.l.bf16 %v1251_v23  ;;  %v213_v46 = vmul.f32 %v1451_v37, %v1226_v27 }
  0xbe   :  { %v794_v56 = vadd.f32 %v645_v50, %v231_v41  ;;  %v810_v57 = vadd.f32 %v685_v51, %v247_v42  ;;  %v1259_v51 = vld [vmem:[%s1942_s0 + $0xa8] sm:$0xff]   ;;  %v234_v59 = vadd.f32 %v1457_v40, %v166_v49 }
  0xbf   :  { %889 = vst [vmem:[%s1943_s6 + $0x130] sm:$0xff] %v825_v52  ;;  %v182_v50 = vmul.f32 %v1451_v37, %v1165_v33  ;;  %v1267_v52 = vld [vmem:[%s1942_s0 + $0xe8] sm:$0xff]   ;;  %v281_v54 = vadd.f32 %v1457_v40, %v213_v46  ;;  %v1197_v55 = vunpack.c.l.bf16 %v1259_v51  ;;  %v1198_v17 = vunpack.c.h.bf16 %v1259_v51 }
  0xc0   :  { %905 = vst [vmem:[%s1943_s6 + $0x1b0] sm:$0xff] %v841_v53  ;;  %v265_v53 = vadd.f32 %v1457_v40, %v197_v45 }
  0xc1   :  { %858 = vst [vmem:[%s1943_s6 + $0x38] sm:$0xff] %v794_v56  ;;  %v1229_v56 = vunpack.c.l.bf16 %v1267_v52  ;;  %v250_v60 = vadd.f32 %v1457_v40, %v182_v50  ;;  %v198_v7 = vmul.f32 %v1451_v37, %v1197_v55  ;;  %v199_v33 = vmul.f32 %v1451_v37, %v1198_v17 }
  0xc2   :  { %874 = vst [vmem:[%s1943_s6 + $0xb8] sm:$0xff] %v810_v57  ;;  %v724_v2 = vpop.f32.mrf.mxu2  ;;  %v764_v3 = vpop.f32.mrf.mxu3 }
  0xc3   :  { %v725_v8 = vadd.f32 %v1469_v44, %v724_v2  ;;  %v765_v9 = vadd.f32 %v1469_v44, %v764_v3  ;;  %v647_v10 = vpop.f32.mrf.mxu0  ;;  %v687_v11 = vpop.f32.mrf.mxu1 }
  0xc4   :  { %v648_v12 = vadd.f32 %v1469_v44, %v647_v10  ;;  %v688_v13 = vadd.f32 %v1469_v44, %v687_v11  ;;  %v167_v11 = vmul.f32 %v1451_v37, %v1134_v61 }
  0xc5   :  { %v826_v14 = vadd.f32 %v725_v8, %v263_v62  ;;  %v842_v15 = vadd.f32 %v765_v9, %v279_v63  ;;  %v1166_v62 = vunpack.c.h.bf16 %v1251_v23  ;;  %v214_v8 = vmul.f32 %v1451_v37, %v1229_v56 }
  0xc6   :  { %v795_v18 = vadd.f32 %v648_v12, %v232_v4  ;;  %v811_v19 = vadd.f32 %v688_v13, %v248_v5  ;;  %v1244_v13 = vld [vmem:[%s1942_s0 + $0x30] sm:$0xff]   ;;  %v235_v21 = vadd.f32 %v1457_v40, %v167_v11 }
  0xc7   :  { %890 = vst [vmem:[%s1943_s6 + $0x138] sm:$0xff] %v826_v14  ;;  %v183_v12 = vmul.f32 %v1451_v37, %v1166_v62  ;;  %v1252_v14 = vld [vmem:[%s1942_s0 + $0x70] sm:$0xff]   ;;  %v282_v16 = vadd.f32 %v1457_v40, %v214_v8  ;;  %v1137_v23 = vunpack.c.l.bf16 %v1244_v13 }
  0xc8   :  { %906 = vst [vmem:[%s1943_s6 + $0x1b8] sm:$0xff] %v842_v15  ;;  %v266_v15 = vadd.f32 %v1457_v40, %v198_v7 }
  0xc9   :  { %859 = vst [vmem:[%s1943_s6 + $0x40] sm:$0xff] %v795_v18  ;;  %v1230_v18 = vunpack.c.h.bf16 %v1267_v52  ;;  %v251_v22 = vadd.f32 %v1457_v40, %v183_v12  ;;  %v1138_v52 = vunpack.c.h.bf16 %v1244_v13 }
  0xca   :  { %875 = vst [vmem:[%s1943_s6 + $0xc0] sm:$0xff] %v811_v19  ;;  %v727_v28 = vpop.f32.mrf.mxu2  ;;  %v767_v29 = vpop.f32.mrf.mxu3 }
  0xcb   :  { %v728_v34 = vadd.f32 %v1469_v44, %v727_v28  ;;  %v768_v35 = vadd.f32 %v1469_v44, %v767_v29  ;;  %v649_v36 = vpop.f32.mrf.mxu0  ;;  %v689_v38 = vpop.f32.mrf.mxu1 }
  0xcc   :  { %v650_v39 = vadd.f32 %v1469_v44, %v649_v36  ;;  %v690_v41 = vadd.f32 %v1469_v44, %v689_v38  ;;  %v168_v38 = vmul.f32 %v1451_v37, %v1137_v23 }
  0xcd   :  { %v827_v42 = vadd.f32 %v728_v34, %v264_v24  ;;  %v843_v43 = vadd.f32 %v768_v35, %v280_v25  ;;  %v1169_v24 = vunpack.c.l.bf16 %v1252_v14  ;;  %v215_v34 = vmul.f32 %v1451_v37, %v1230_v18 }
  0xce   :  { %v796_v47 = vadd.f32 %v650_v39, %v233_v30  ;;  %v812_v48 = vadd.f32 %v690_v41, %v249_v31  ;;  %v1260_v41 = vld [vmem:[%s1942_s0 + $0xb0] sm:$0xff]   ;;  %v236_v50 = vadd.f32 %v1457_v40, %v168_v38 }
  0xcf   :  { %891 = vst [vmem:[%s1943_s6 + $0x140] sm:$0xff] %v827_v42  ;;  %v184_v39 = vmul.f32 %v1451_v37, %v1169_v24  ;;  %v1268_v42 = vld [vmem:[%s1942_s0 + $0xf0] sm:$0xff]   ;;  %v283_v45 = vadd.f32 %v1457_v40, %v215_v34  ;;  %v1201_v46 = vunpack.c.l.bf16 %v1260_v41  ;;  %v1202_v8 = vunpack.c.h.bf16 %v1260_v41 }
  0xd0   :  { %907 = vst [vmem:[%s1943_s6 + $0x1c0] sm:$0xff] %v843_v43  ;;  %v267_v43 = vadd.f32 %v1457_v40, %v199_v33 }
  0xd1   :  { %860 = vst [vmem:[%s1943_s6 + $0x48] sm:$0xff] %v796_v47  ;;  %v1233_v47 = vunpack.c.l.bf16 %v1268_v42  ;;  %v252_v51 = vadd.f32 %v1457_v40, %v184_v39  ;;  %v200_v62 = vmul.f32 %v1451_v37, %v1201_v46  ;;  %v201_v24 = vmul.f32 %v1451_v37, %v1202_v8 }
  0xd2   :  { %876 = vst [vmem:[%s1943_s6 + $0xc8] sm:$0xff] %v812_v48  ;;  %v729_v57 = vpop.f32.mrf.mxu2  ;;  %v769_v58 = vpop.f32.mrf.mxu3 }
  0xd3   :  { %v730_v63 = vadd.f32 %v1469_v44, %v729_v57  ;;  %v770_v0 = vadd.f32 %v1469_v44, %v769_v58  ;;  %v652_v1 = vpop.f32.mrf.mxu0  ;;  %v692_v2 = vpop.f32.mrf.mxu1 }
  0xd4   :  { %v653_v3 = vadd.f32 %v1469_v44, %v652_v1  ;;  %v693_v4 = vadd.f32 %v1469_v44, %v692_v2  ;;  %v169_v2 = vmul.f32 %v1451_v37, %v1138_v52 }
  0xd5   :  { %v828_v5 = vadd.f32 %v730_v63, %v265_v53  ;;  %v844_v6 = vadd.f32 %v770_v0, %v281_v54  ;;  %v1170_v53 = vunpack.c.h.bf16 %v1252_v14  ;;  %v216_v63 = vmul.f32 %v1451_v37, %v1233_v47 }
  0xd6   :  { %v797_v9 = vadd.f32 %v653_v3, %v234_v59  ;;  %v813_v10 = vadd.f32 %v693_v4, %v250_v60  ;;  %v1245_v4 = vld [vmem:[%s1942_s0 + $0x38] sm:$0xff]   ;;  %v237_v12 = vadd.f32 %v1457_v40, %v169_v2 }
  0xd7   :  { %892 = vst [vmem:[%s1943_s6 + $0x148] sm:$0xff] %v828_v5  ;;  %v185_v3 = vmul.f32 %v1451_v37, %v1170_v53  ;;  %v1253_v5 = vld [vmem:[%s1942_s0 + $0x78] sm:$0xff]   ;;  %v284_v7 = vadd.f32 %v1457_v40, %v216_v63  ;;  %v1141_v14 = vunpack.c.l.bf16 %v1245_v4 }
  0xd8   :  { %908 = vst [vmem:[%s1943_s6 + $0x1c8] sm:$0xff] %v844_v6  ;;  %v268_v6 = vadd.f32 %v1457_v40, %v200_v62 }
  0xd9   :  { %861 = vst [vmem:[%s1943_s6 + $0x50] sm:$0xff] %v797_v9  ;;  %v1234_v9 = vunpack.c.h.bf16 %v1268_v42  ;;  %v253_v13 = vadd.f32 %v1457_v40, %v185_v3  ;;  %v1142_v42 = vunpack.c.h.bf16 %v1245_v4 }
  0xda   :  { %877 = vst [vmem:[%s1943_s6 + $0xd0] sm:$0xff] %v813_v10  ;;  %v732_v19 = vpop.f32.mrf.mxu2  ;;  %v772_v20 = vpop.f32.mrf.mxu3 }
  0xdb   :  { %v733_v25 = vadd.f32 %v1469_v44, %v732_v19  ;;  %v773_v26 = vadd.f32 %v1469_v44, %v772_v20  ;;  %v654_v27 = vpop.f32.mrf.mxu0  ;;  %v694_v28 = vpop.f32.mrf.mxu1 }
  0xdc   :  { %v655_v29 = vadd.f32 %v1469_v44, %v654_v27  ;;  %v695_v30 = vadd.f32 %v1469_v44, %v694_v28  ;;  %v170_v28 = vmul.f32 %v1451_v37, %v1141_v14 }
  0xdd   :  { %v829_v31 = vadd.f32 %v733_v25, %v266_v15  ;;  %v845_v32 = vadd.f32 %v773_v26, %v282_v16  ;;  %v1173_v15 = vunpack.c.l.bf16 %v1253_v5  ;;  %v217_v25 = vmul.f32 %v1451_v37, %v1234_v9 }
  0xde   :  { %v798_v35 = vadd.f32 %v655_v29, %v235_v21  ;;  %v814_v36 = vadd.f32 %v695_v30, %v251_v22  ;;  %v1261_v30 = vld [vmem:[%s1942_s0 + $0xb8] sm:$0xff]   ;;  %v238_v39 = vadd.f32 %v1457_v40, %v170_v28 }
  0xdf   :  { %893 = vst [vmem:[%s1943_s6 + $0x150] sm:$0xff] %v829_v31  ;;  %v186_v29 = vmul.f32 %v1451_v37, %v1173_v15  ;;  %v1269_v31 = vld [vmem:[%s1942_s0 + $0xf8] sm:$0xff]   ;;  %v285_v33 = vadd.f32 %v1457_v40, %v217_v25  ;;  %v1205_v34 = vunpack.c.l.bf16 %v1261_v30 }
  0xe0   :  { %909 = vst [vmem:[%s1943_s6 + $0x1d0] sm:$0xff] %v845_v32  ;;  %v269_v32 = vadd.f32 %v1457_v40, %v201_v24  ;;  %v1238_v62 = vunpack.c.h.bf16 %v1269_v31 }
  0xe1   :  { %862 = vst [vmem:[%s1943_s6 + $0x58] sm:$0xff] %v798_v35  ;;  %v1237_v35 = vunpack.c.l.bf16 %v1269_v31  ;;  %v254_v41 = vadd.f32 %v1457_v40, %v186_v29  ;;  %v202_v53 = vmul.f32 %v1451_v37, %v1205_v34 }
  0xe2   :  { %878 = vst [vmem:[%s1943_s6 + $0xd8] sm:$0xff] %v814_v36  ;;  %v734_v48 = vpop.f32.mrf.mxu2  ;;  %v774_v49 = vpop.f32.mrf.mxu3 }
  0xe3   :  { %v735_v54 = vadd.f32 %v1469_v44, %v734_v48  ;;  %v775_v55 = vadd.f32 %v1469_v44, %v774_v49  ;;  %v657_v56 = vpop.f32.mrf.mxu0  ;;  %v697_v57 = vpop.f32.mrf.mxu1 }
  0xe4   :  { %v658_v58 = vadd.f32 %v1469_v44, %v657_v56  ;;  %v698_v59 = vadd.f32 %v1469_v44, %v697_v57  ;;  %v171_v57 = vmul.f32 %v1451_v37, %v1142_v42 }
  0xe5   :  { %v830_v60 = vadd.f32 %v735_v54, %v267_v43  ;;  %v846_v61 = vadd.f32 %v775_v55, %v283_v45  ;;  %v1174_v43 = vunpack.c.h.bf16 %v1253_v5  ;;  %v218_v54 = vmul.f32 %v1451_v37, %v1237_v35 }
  0xe6   :  { %v799_v0 = vadd.f32 %v658_v58, %v236_v50  ;;  %v815_v1 = vadd.f32 %v698_v59, %v252_v51  ;;  %v270_v59 = vadd.f32 %v1457_v40, %v202_v53 }
  0xe7   :  { %894 = vst [vmem:[%s1943_s6 + $0x158] sm:$0xff] %v830_v60  ;;  %v187_v58 = vmul.f32 %v1451_v37, %v1174_v43  ;;  %v286_v60 = vadd.f32 %v1457_v40, %v218_v54 }
  0xe8   :  { %910 = vst [vmem:[%s1943_s6 + $0x1d8] sm:$0xff] %v846_v61  ;;  %v1206_v61 = vunpack.c.h.bf16 %v1261_v30 }
  0xe9   :  { %863 = vst [vmem:[%s1943_s6 + $0x60] sm:$0xff] %v799_v0  ;;  %v255_v2 = vadd.f32 %v1457_v40, %v187_v58 }
  0xea   :  { %879 = vst [vmem:[%s1943_s6 + $0xe0] sm:$0xff] %v815_v1  ;;  %v737_v10 = vpop.f32.mrf.mxu2  ;;  %v777_v11 = vpop.f32.mrf.mxu3  ;;  %v239_v1 = vadd.f32 %v1457_v40, %v171_v57 }
  0xeb   :  { %v738_v16 = vadd.f32 %v1469_v44, %v737_v10  ;;  %v778_v17 = vadd.f32 %v1469_v44, %v777_v11  ;;  %v659_v18 = vpop.f32.mrf.mxu0  ;;  %v699_v19 = vpop.f32.mrf.mxu1  ;;  %v203_v11 = vmul.f32 %v1451_v37, %v1206_v61 }
  0xec   :  { %v660_v20 = vadd.f32 %v1469_v44, %v659_v18  ;;  %v700_v21 = vadd.f32 %v1469_v44, %v699_v19 }
  0xed   :  { %v831_v22 = vadd.f32 %v738_v16, %v268_v6  ;;  %v847_v23 = vadd.f32 %v778_v17, %v284_v7  ;;  %v271_v15 = vadd.f32 %v1457_v40, %v203_v11 }
  0xee   :  { %v800_v26 = vadd.f32 %v660_v20, %v237_v12  ;;  %v816_v27 = vadd.f32 %v700_v21, %v253_v13  ;;  %v219_v12 = vmul.f32 %v1451_v37, %v1238_v62 }
  0xef   :  { %895 = vst [vmem:[%s1943_s6 + $0x160] sm:$0xff] %v831_v22 }
  0xf0   :  { %911 = vst [vmem:[%s1943_s6 + $0x1e0] sm:$0xff] %v847_v23  ;;  %v287_v16 = vadd.f32 %v1457_v40, %v219_v12 }
  0xf1   :  { %864 = vst [vmem:[%s1943_s6 + $0x68] sm:$0xff] %v800_v26 }
  0xf2   :  { %880 = vst [vmem:[%s1943_s6 + $0xe8] sm:$0xff] %v816_v27  ;;  %v739_v36 = vpop.f32.mrf.mxu2  ;;  %v779_v38 = vpop.f32.mrf.mxu3 }
  0xf3   :  { %v740_v45 = vadd.f32 %v1469_v44, %v739_v36  ;;  %v780_v46 = vadd.f32 %v1469_v44, %v779_v38  ;;  %v662_v47 = vpop.f32.mrf.mxu0  ;;  %v702_v48 = vpop.f32.mrf.mxu1 }
  0xf4   :  { %v663_v49 = vadd.f32 %v1469_v44, %v662_v47  ;;  %v703_v50 = vadd.f32 %v1469_v44, %v702_v48 }
  0xf5   :  { %v832_v51 = vadd.f32 %v740_v45, %v269_v32  ;;  %v848_v52 = vadd.f32 %v780_v46, %v285_v33 }
  0xf6   :  { %v801_v55 = vadd.f32 %v663_v49, %v238_v39  ;;  %v817_v56 = vadd.f32 %v703_v50, %v254_v41 }
  0xf7   :  { %896 = vst [vmem:[%s1943_s6 + $0x168] sm:$0xff] %v832_v51 }
  0xf8   :  { %912 = vst [vmem:[%s1943_s6 + $0x1e8] sm:$0xff] %v848_v52 }
  0xf9   :  { %865 = vst [vmem:[%s1943_s6 + $0x70] sm:$0xff] %v801_v55 }
  0xfa   :  { %881 = vst [vmem:[%s1943_s6 + $0xf0] sm:$0xff] %v817_v56  ;;  %v742_v63 = vpop.f32.mrf.mxu2  ;;  %v782_v0 = vpop.f32.mrf.mxu3 }
  0xfb   :  { %v743_v3 = vadd.f32 %v1469_v44, %v742_v63  ;;  %v783_v4 = vadd.f32 %v1469_v44, %v782_v0  ;;  %v664_v5 = vpop.f32.mrf.mxu0  ;;  %v704_v6 = vpop.f32.mrf.mxu1 }
  0xfc   :  { %v665_v7 = vadd.f32 %v1469_v44, %v664_v5  ;;  %v705_v8 = vadd.f32 %v1469_v44, %v704_v6 }
  0xfd   :  { %v833_v9 = vadd.f32 %v743_v3, %v270_v59  ;;  %v849_v10 = vadd.f32 %v783_v4, %v286_v60 }
  0xfe   :  { %v802_v13 = vadd.f32 %v665_v7, %v239_v1  ;;  %v818_v14 = vadd.f32 %v705_v8, %v255_v2 }
  0xff   :  { %897 = vst [vmem:[%s1943_s6 + $0x170] sm:$0xff] %v833_v9 }
 0x100   :  { %913 = vst [vmem:[%s1943_s6 + $0x1f0] sm:$0xff] %v849_v10 }
 0x101   :  { %866 = vst [vmem:[%s1943_s6 + $0x78] sm:$0xff] %v802_v13 }
 0x102   :  { %882 = vst [vmem:[%s1943_s6 + $0xf8] sm:$0xff] %v818_v14  ;;  %v744_v37 = vpop.f32.mrf.mxu2  ;;  %v784_v17 = vpop.f32.mrf.mxu3 }
 0x103   :  { %v745_v18 = vadd.f32 %v1469_v44, %v744_v37  ;;  %v785_v19 = vadd.f32 %v1469_v44, %v784_v17 }
 0x105   :  { %v834_v20 = vadd.f32 %v745_v18, %v271_v15  ;;  %v850_v21 = vadd.f32 %v785_v19, %v287_v16 }
 0x107   :  { %898 = vst [vmem:[%s1943_s6 + $0x178] sm:$0xff] %v834_v20 }
 0x108   :  { %914 = vst [vmem:[%s1943_s6 + $0x1f8] sm:$0xff] %v850_v21 }

// kernel: res_block.4
= control target key start
LH: loop header
LB: loop body
LE: loop exit
PB: predicated region body
PF: predicated region fallthrough
CT: control target
= control target key end

     0   :  { %s3229_s21 = smov 0   ;;  %s4136_s0 = inlined_call_operand.vmem [shape: bf16[4,10,18,128], index: 0, kind: input, shape index: {}]   ;;  %s4137_s1 = inlined_call_operand.vmem [shape: bf16[9,128,128], index: 1, kind: input, shape index: {}]   ;;  %s4138_s2 = inlined_call_operand.vmem [shape: f32[1,128], index: 2, kind: input, shape index: {}]   ;;  %s4139_s3 = inlined_call_operand.vmem [shape: f32[1,128], index: 3, kind: input, shape index: {}]   ;;  %s4140_s4 = inlined_call_operand.vmem [shape: f32[1,128], index: 4, kind: input, shape index: {}]   ;;  %s4141_s5 = inlined_call_operand.vmem [shape: bf16[32,16,128], index: 5, kind: output, shape index: {0}]   ;;  %s4142_s6 = inlined_call_operand.vmem [shape: f32[4,2,128], index: 6, kind: output, shape index: {1}]  }
   0x1 LB: > { %s3235_s22 = sadd.s32 4294967295, %s3191_s21   ;;  %p2506_p0 = scmp.ge.s32.totalorder %s3191_s21, 1  ;;  %s3191_s21 = sphi %s3229_s21, %s17_s21  }
   0x2   : > { %p215_p1 = scmp.lt.s32.totalorder %s3191_s21, 5 }
   0x4   : > { %p216_p2 = pnand %p2506_p0, %p215_p1 }
   0x5   : > { %p296_p3 = scmp.lt.s32.totalorder (!%p216_p2), %s3235_s22, 0  ;;  %s297_s23 = ssub.s32 (!%p216_p2), 0, %s3235_s22 }
   0x6   : > { %219 = sbr.rel (%p216_p2) target bundleno = 623 (0x26f), region = 40  ;;  %s2512_s24 = smin.u32 (!%p216_p2), %s3235_s22, %s297_s23 }
   0x7   : > { %s299_s25 = sand.u32 (!%p216_p2), 1, %s2512_s24   ;;  %p250_p5 = scmp.lt.s32.totalorder (!%p216_p2), %s3235_s22, 3 }
   0x8   : > { %s300_s26 = ssub.s32 (!%p216_p2), 0, %s299_s25 }
   0xb   : > { %v309_v0 = vlaneseq  ;;  %s4148_s26 = smov (!%p296_p3, %s300_s26), %s299_s25  ;;  %v3193_v7 = vmov 0.0   ;;  %v2962_v24 = vld [vmem:[%s4137_s1 + $0xf8] sm:$0xff]  ;;  %v2961_v25 = vld [vmem:[%s4137_s1 + $0xf0] sm:$0xff]  ;;  %v2960_v26 = vld [vmem:[%s4137_s1 + $0xe8] sm:$0xff]  ;;  %vm1781_vm12 = vcmask 1042432   ;;  %vm1782_vm13 = vcmask 1046532  }
   0xc   : > { %p2514_p4 = scmp.lt.s32.totalorder %s4148_s26, 0  ;;  %s306_s27 = sadd.s32 2, %s4148_s26  ;;  %810 = vmatpush.bf16.msra.mxu0 %v2962_v24  ;;  %3090 = vmatpush.bf16.msra.mxu1 %v2962_v24  ;;  %v2959_v27 = vld [vmem:[%s4137_s1 + $0xe0] sm:$0xff]  ;;  %v2958_v28 = vld [vmem:[%s4137_s1 + $0xd8] sm:$0xff]  ;;  %v2957_v30 = vld [vmem:[%s4137_s1 + $0xd0] sm:$0xff] }
   0xd   : > { %v3242_v1 = vshrl.u32 %v309_v0, 7  ;;  %v316_v3 = vand.u32 127, %v309_v0  ;;  %3091 = vmatpush.bf16.msra.mxu2 %v2962_v24  ;;  %3092 = vmatpush.bf16.msra.mxu3 %v2962_v24  ;;  %s3291_s17 = scalar_select %p250_p5, %s3235_s22, 3  ;;  %v2956_v31 = vld [vmem:[%s4137_s1 + $0xc8] sm:$0xff]  ;;  %v2955_v33 = vld [vmem:[%s4137_s1 + $0xc0] sm:$0xff]  ;;  %v2954_v35 = vld [vmem:[%s4137_s1 + $0x38] sm:$0xff] }
   0xe   : > { %s4150_s27 = smov (!%p2514_p4, %s306_s27), %s4148_s26  ;;  %v2970_v36 = vld [vmem:[%s4137_s1 + $0x1b8] sm:$0xff]  ;;  %v2953_v47 = vld [vmem:[%s4137_s1 + $0x30] sm:$0xff]  ;;  %v3340_v50 = vld [vmem:[%s4139_s3] ss:$0 sm:$0xff]  ;;  %vm1098_vm15 = vsmask.f32 3328 }
   0xf   : > { %3148 = vset.pattern.permute.xlu2 %v3242_v1  ;;  %3136 = vset.pattern.permute.xlu1 %v3242_v1  ;;  %v3248_v2 = vadd.s32 8, %v3242_v1  ;;  %s2515_s28 = sshll.u32 %s4150_s27, 3  ;;  %vm323_vm0 = vcmp.ge.s32.totalorder %v316_v3, 1  ;;  %vm326_vm7 = vcmp.le.s32.totalorder %v316_v3, 16  ;;  %v3261_v23 = vadd.s32 16, %v3242_v1  ;;  %s3114_s20 = smul.u32 120, %s3291_s17  ;;  %vm3493_vm14 = vmor %vm1781_vm12, %vm1782_vm13 }
  0x10   : > { %3124 = vset.pattern.permute.xlu0 %v3242_v1  ;;  %v312_v4 = vstv %s2515_s28  ;;  %811 = vmatpush.bf16.msra.mxu0 %v2961_v25  ;;  %v2978_v37 = vld [vmem:[%s4137_s1 + $0x78] sm:$0xff]  ;;  %v2969_v48 = vld [vmem:[%s4137_s1 + $0x1b0] sm:$0xff]  ;;  %v3345_v52 = vld [vmem:[%s4140_s4] ss:$0 sm:$0xff]  ;;  %s2511_s29 = sshll.u32 %s3291_s17, 1 }
  0x11   : > { %v313_v5 = vadd.s32 %v312_v4, %v3242_v1  ;;  %v314_v6 = vadd.s32 %v312_v4, %v3248_v2  ;;  %3093 = vmatpush.bf16.msra.mxu1 %v2961_v25  ;;  %3094 = vmatpush.bf16.msra.mxu2 %v2961_v25  ;;  %s3305_s27 = scalar_lea.vmem %s4136_s0, %s3114_s20  ;;  %v2977_v49 = vld [vmem:[%s4137_s1 + $0x70] sm:$0xff]  ;;  %v2952_v0 = vld [vmem:[%s4137_s1 + $0x28] sm:$0xff]  ;;  %v2967_v24 = vld [vmem:[%s4137_s1 + $0x1a0] sm:$0xff]  ;;  %s265_s8 = scalar_lea.vmem %s4142_s6, %s2511_s29 }
  0x12   : > { %3095 = vmatpush.bf16.msra.mxu3 %v2961_v25  ;;  %v3081_v34 = vld [vmem:[%s3305_s27 + $0x48] sm:$0xff]   ;;  %v3082_v38 = vld [vmem:[%s3305_s27 + $0x60] sm:$0xff]   ;;  %v287_v54 = vld [vmem:[%s3305_s27 + $0x54] sm:$0xff]  }
  0x13   : > { %vm317_vm1 = vcmp.ge.s32.totalorder %v313_v5, 1  ;;  %vm318_vm2 = vcmp.ge.s32.totalorder %v314_v6, 1  ;;  %vm319_vm3 = vcmp.le.s32.totalorder %v313_v5, 16  ;;  %vm320_vm4 = vcmp.le.s32.totalorder %v314_v6, 16  ;;  %v3319_v39 = vld [vmem:[%s3305_s27] sm:$0xff]   ;;  %v269_v57 = vld [vmem:[%s3305_s27 + $0xc] sm:$0xff]  }
  0x14   : > { %vm321_vm5 = vmand %vm317_vm1, %vm319_vm3  ;;  %812 = vmatpush.bf16.msra.mxu0 %v2960_v26  ;;  %v3033_v40 = vunpack.c.l.bf16 %v3081_v34  ;;  %v3322_v41 = vld [vmem:[%s3305_s27 + $0x3c] sm:$0xff]   ;;  %v3037_v43 = vunpack.c.l.bf16 %v3082_v38  ;;  %v3034_v44 = vunpack.c.h.bf16 %v3081_v34  ;;  %v3022_v46 = vunpack.c.h.bf16 %v3319_v39  ;;  %v3353_v58 = vld [vmem:[%s3305_s27 + $0x24] sm:$0xff]  }
  0x15   : > { %vm322_vm6 = vmand %vm318_vm2, %vm320_vm4  ;;  %3096 = vmatpush.bf16.msra.mxu1 %v2960_v26  ;;  %3097 = vmatpush.bf16.msra.mxu2 %v2960_v26  ;;  %v3038_v51 = vunpack.c.h.bf16 %v3082_v38  ;;  %v344_v59 = vunpack.c.l.bf16 %v3322_v41  ;;  %v350_v6 = vunpack.c.l.bf16 %v287_v54  ;;  %vm2410_vm2 = vcmask 1040384  }
  0x16   : > { %vm324_vm8 = vmand %vm321_vm5, %vm323_vm0  ;;  %3098 = vmatpush.bf16.msra.mxu3 %v2960_v26  ;;  %v3349_v55 = vmul.f32 %v3340_v50, %v3033_v40  ;;  %v3357_v60 = vmul.f32 %v3340_v50, %v3037_v43  ;;  %v3360_v61 = vmul.f32 %v3340_v50, %v3034_v44  ;;  %v364_v63 = vmul.f32 %v3340_v50, %v3022_v46  ;;  %v2950_v44 = vld [vmem:[%s4137_s1 + $0x18] sm:$0xff] }
  0x17   : > { %vm325_vm9 = vmand %vm322_vm6, %vm323_vm0  ;;  %v3374_v3 = vmul.f32 %v3340_v50, %v3038_v51  ;;  %v2974_v46 = vld [vmem:[%s4137_s1 + $0x58] sm:$0xff]  ;;  %vm1099_vm0 = vsmask.f32 7440 }
  0x18   : > { %vm327_vm10 = vmand %vm324_vm8, %vm326_vm7  ;;  %813 = vmatpush.bf16.msra.mxu0 %v2959_v27 }
  0x19   : > { %vm328_vm11 = vmand %vm325_vm9, %vm326_vm7  ;;  %v2516_v8 = vsel %vm327_vm10, 1.0, %v3193_v7  ;;  %3099 = vmatpush.bf16.msra.mxu1 %v2959_v27  ;;  %3100 = vmatpush.bf16.msra.mxu2 %v2959_v27 }
  0x1a   : > { %v3252_v9 = vsel %vm328_vm11, 1.0, %v3193_v7  ;;  %v512_v10 = vperm.slane %v2516_v8, 6  ;;  %v493_v11 = vperm.slane %v2516_v8, 5  ;;  %v531_v12 = vperm.slane %v2516_v8, 7  ;;  %3101 = vmatpush.bf16.msra.mxu3 %v2959_v27  ;;  %vm3610_vm1 = vmor %vm1098_vm15, %vm1099_vm0 }
  0x1b   : > { %v550_v13 = vperm.slane %v3252_v9, 0  ;;  %v417_v14 = vperm.slane %v2516_v8, 1  ;;  %v455_v15 = vperm.slane %v2516_v8, 3  ;;  %v398_v19 = vperm.slane %v2516_v8, 0 }
  0x1c   : > { %v3125_v16 = vpack.i.bf16 %v531_v12, %v493_v11  ;;  %v474_v20 = vperm.slane %v2516_v8, 4  ;;  %v436_v22 = vperm.slane %v2516_v8, 2  ;;  %814 = vmatpush.bf16.msra.mxu0 %v2958_v28  ;;  %v339_v27 = vunpack.c.h.bf16 %v3353_v58 }
  0x1d   : > { %v3149_v17 = vpack.i.bf16 %v550_v13, %v512_v10  ;;  %v3137_v18 = vpack.i.bf16 %v417_v14, %v455_v15  ;;  %3102 = vmatpush.bf16.msra.mxu1 %v2958_v28  ;;  %3103 = vmatpush.bf16.msra.mxu2 %v2958_v28 }
  0x1e   : > { %3126 = vperm.xlu0 %3124, %v3125_v16   ;;  %v3166_v21 = vpack.i.bf16 %v398_v19, %v474_v20  ;;  %3104 = vmatpush.bf16.msra.mxu3 %v2958_v28  ;;  %v2975_v28 = vld [vmem:[%s4137_s1 + $0x60] sm:$0xff]  ;;  %v373_v51 = vmul.f32 %v3340_v50, %v339_v27 }
  0x1f   : > { %3150 = vperm.xlu2 %3148, %v3149_v17   ;;  %3138 = vperm.xlu1 %3136, %v3137_v18  }
  0x20   : > { %815 = vmatpush.bf16.msra.mxu0 %v2957_v30 }
  0x21   : > { %3105 = vmatpush.bf16.msra.mxu1 %v2957_v30  ;;  %3106 = vmatpush.bf16.msra.mxu2 %v2957_v30 }
  0x22   : > { %3107 = vmatpush.bf16.msra.mxu3 %v2957_v30 }
  0x24   : > { %816 = vmatpush.bf16.msra.mxu0 %v2956_v31 }
  0x25   : > { %3108 = vmatpush.bf16.msra.mxu1 %v2956_v31  ;;  %3109 = vmatpush.bf16.msra.mxu2 %v2956_v31 }
  0x26   : > { %3130 = vset.pattern.permute.xlu0 %v3248_v2  ;;  %3110 = vmatpush.bf16.msra.mxu3 %v2956_v31 }
  0x27   : > { %3154 = vset.pattern.permute.xlu2 %v3248_v2  ;;  %3142 = vset.pattern.permute.xlu1 %v3248_v2 }
  0x28   : > { %817 = vmatpush.bf16.msra.mxu0 %v2955_v33 }
  0x29   : > { %3111 = vmatpush.bf16.msra.mxu1 %v2955_v33  ;;  %3112 = vmatpush.bf16.msra.mxu2 %v2955_v33 }
  0x2a   : > { %3113 = vmatpush.bf16.msra.mxu3 %v2955_v33 }
  0x2d   : > { %913 = vmatpush.bf16.msrb.mxu1 %v2954_v35  ;;  %1033 = vmatpush.bf16.msrb.mxu2 %v2970_v36 }
  0x2e   : > { %3132 = vperm.xlu0 %3130, %v3125_v16   ;;  %1438 = vmatpush.bf16.msrb.mxu3 %v2978_v37  ;;  %v3382_v16 = vperm.slane %v3252_v9, 1  ;;  %v384_v9 = vmul.f32 %v3340_v50, %v350_v6  ;;  %v2949_v6 = vld [vmem:[%s4137_s1 + $0x10] sm:$0xff] }
  0x2f   : > { %3156 = vperm.xlu2 %3154, %v3149_v17   ;;  %3144 = vperm.xlu1 %3142, %v3137_v18   ;;  %v3385_v17 = vld [vmem:[%s3305_s27 + $0x30] sm:$0xff]  }
  0x30   : > { %v3030_v37 = vunpack.c.h.bf16 %v3385_v17 }
  0x31   : > { %914 = vmatpush.bf16.msrb.mxu1 %v2953_v47  ;;  %1034 = vmatpush.bf16.msrb.mxu2 %v2969_v48 }
  0x32   : > { %1439 = vmatpush.bf16.msrb.mxu3 %v2977_v49 }
  0x35   : > { %915 = vmatpush.bf16.msrb.mxu1 %v2952_v0 }
  0x36   : > { %3171 = vset.pattern.permute.xlu0 %v3242_v1 }
  0x37   : > { %3160 = vset.pattern.permute.xlu1 %v3242_v1  ;;  %3167 = vperm.xlu2 %3154, %v3166_v21  }
  0x3e   : > { %441 = vperm.xlu0 %3171, %v436_v22  }
  0x3f   : > { %3173 = vset.pattern.permute.xlu2 %v3261_v23  ;;  %3162 = vperm.xlu1 %3160, %v3166_v21   ;;  %v333_v21 = vunpack.c.h.bf16 %v269_v57 }
  0x41   : > { %v367_v43 = vmul.f32 %v3340_v50, %v333_v21 }
  0x46   : > { %3175 = vset.pattern.permute.xlu0 %v3261_v23 }
  0x47   : > { %415 = vperm.xlu2 %3173, %v398_v19   ;;  %3172 = vset.pattern.permute.xlu1 %v3248_v2  ;;  %v345_v19 = vunpack.c.h.bf16 %v3322_v41 }
  0x49   : > { %v379_v40 = vmul.f32 %v3340_v50, %v345_v19 }
  0x4e   : > { %472 = vperm.xlu0 %3175, %v455_v15   ;;  %v268_v15 = vld [vmem:[%s3305_s27 + $0x8] sm:$0x1] }
  0x4f   : > { %453 = vperm.xlu2 %3173, %v436_v22   ;;  %447 = vperm.xlu1 %3172, %v436_v22   ;;  %v2951_v22 = vld [vmem:[%s4137_s1 + $0x20] sm:$0xff]  ;;  %v331_v33 = vunpack.c.l.bf16 %v268_v15 }
  0x50   : > { %916 = vmatpush.bf16.msrb.mxu1 %v2951_v22 }
  0x54   : > { %917 = vmatpush.bf16.msrb.mxu1 %v2950_v44 }
  0x56   : > { %3176 = vset.pattern.permute.xlu0 %v3242_v1  ;;  %v2968_v1 = vld [vmem:[%s4137_s1 + $0x1a8] sm:$0xff] }
  0x57   : > { %510 = vperm.xlu2 %3173, %v493_v11   ;;  %3174 = vset.pattern.permute.xlu1 %v3261_v23  ;;  %v338_v11 = vunpack.c.l.bf16 %v3353_v58 }
  0x58   : > { %1035 = vmatpush.bf16.msrb.mxu2 %v2968_v1  ;;  %v2986_v1 = vld [vmem:[%s4137_s1 + $0x138] sm:$0xff]  ;;  %918 = vmatpush.bf16.msrb.mxu1 %v2949_v6 }
  0x59   : > { %v372_v31 = vmul.f32 %v3340_v50, %v338_v11  ;;  %1572 = vmatpush.bf16.msrb.mxu0 %v2986_v1 }
  0x5c   : > { %1036 = vmatpush.bf16.msrb.mxu2 %v2967_v24 }
  0x5e   : > { %574 = vperm.xlu0 %3176, %v3382_v16  }
  0x5f   : > { %548 = vperm.xlu2 %3173, %v531_v12   ;;  %434 = vperm.xlu1 %3174, %v417_v14   ;;  %v378_v14 = vmul.f32 %v3340_v50, %v344_v59 }
  0x66   : > { %3179 = vset.pattern.permute.xlu0 %v3261_v23 }
  0x67   : > { %567 = vperm.xlu2 %3173, %v550_v13   ;;  %491 = vperm.xlu1 %3174, %v474_v20   ;;  %v351_v20 = vunpack.c.h.bf16 %v287_v54 }
  0x69   : > { %v385_v41 = vmul.f32 %v3340_v50, %v351_v20 }
  0x6f   : > { %529 = vperm.xlu1 %3174, %v512_v10   ;;  %v332_v10 = vunpack.c.l.bf16 %v269_v57  ;;  %v365_v57 = vmul.f32 %v3340_v50, %v331_v33  ;;  %v376_v33 = vmul.f32 %v3340_v50, %v3030_v37 }
  0x71   : > { %v366_v30 = vmul.f32 %v3340_v50, %v332_v10 }
  0x77   : > { %3177 = vset.pattern.permute.xlu1 %v3248_v2  ;;  %v2976_v2 = vld [vmem:[%s4137_s1 + $0x68] sm:$0xff] }
  0x78   : > { %1440 = vmatpush.bf16.msrb.mxu3 %v2976_v2 }
  0x79   : > { %v3284_v29 = vpop.permute.xlu2 %3150 }
  0x7a   : > { %v3153_v7 = vunpack.i.h.bf16 %v3284_v29  ;;  %v3152_v12 = vunpack.i.l.bf16 %v3284_v29 }
  0x7c   : > { %v3407_v34 = vmul.f32 %v3345_v52, %v3153_v7  ;;  %v3410_v35 = vmul.f32 %v3345_v52, %v3152_v12  ;;  %1441 = vmatpush.bf16.msrb.mxu3 %v2975_v28  ;;  %v2965_v7 = vld [vmem:[%s4137_s1 + $0x190] sm:$0xff] }
  0x7e   : > { %v639_v1 = vadd.f32 %v3410_v35, %v3349_v55  ;;  %v2983_v55 = vld [vmem:[%s4137_s1 + $0x120] sm:$0xff]  ;;  %v3029_v35 = vunpack.c.l.bf16 %v3385_v17 }
  0x7f   : > { %580 = vperm.xlu1 %3177, %v3382_v16  }
  0x80   : > { %1442 = vmatpush.bf16.msrb.mxu3 %v2974_v46 }
  0x87   : > { %3178 = vset.pattern.permute.xlu1 %v3261_v23 }
  0x89   : > { %v3297_v32 = vpop.permute.xlu2 %3156 }
  0x8a   : > { %v3159_v47 = vunpack.i.h.bf16 %v3297_v32 }
  0x8f   : > { %586 = vperm.xlu1 %3178, %v3382_v16   ;;  %v3021_v16 = vunpack.c.l.bf16 %v3319_v39  ;;  %v2982_v39 = vld [vmem:[%s4137_s1 + $0x118] sm:$0xff] }
  0x90   : > { %v3127_v53 = vpop.permute.xlu0 %3126 }
  0x91   : > { %v3324_v42 = vpop.permute.xlu2 %3167  ;;  %v3139_v56 = vpop.permute.xlu1 %3138  ;;  %v3129_v4 = vunpack.i.h.bf16 %v3127_v53  ;;  %v3128_v5 = vunpack.i.l.bf16 %v3127_v53  ;;  %v3158_v53 = vunpack.i.l.bf16 %v3297_v32 }
  0x92   : > { %v3170_v45 = vunpack.i.h.bf16 %v3324_v42  ;;  %v3141_v8 = vunpack.i.h.bf16 %v3139_v56  ;;  %v3140_v13 = vunpack.i.l.bf16 %v3139_v56  ;;  %v3169_v21 = vunpack.i.l.bf16 %v3324_v42  ;;  %v2948_v42 = vld [vmem:[%s4137_s1 + $0x8] sm:$0xff] }
  0x93   : > { %v612_v25 = vmul.f32 %v3345_v52, %v3129_v4  ;;  %v606_v26 = vmul.f32 %v3345_v52, %v3128_v5  ;;  %919 = vmatpush.bf16.msrb.mxu1 %v2948_v42 }
  0x94   : > { %v592_v62 = vmul.f32 %v3345_v52, %v3170_v45  ;;  %v594_v29 = vmul.f32 %v3345_v52, %v3141_v8  ;;  %v600_v36 = vmul.f32 %v3345_v52, %v3140_v13  ;;  %v2966_v45 = vld [vmem:[%s4137_s1 + $0x198] sm:$0xff]  ;;  %v2973_v8 = vld [vmem:[%s4137_s1 + $0x50] sm:$0xff] }
  0x95   : > { %v636_v48 = vadd.f32 %v606_v26, %v378_v14  ;;  %v642_v49 = vadd.f32 %v612_v25, %v384_v9  ;;  %1037 = vmatpush.bf16.msrb.mxu2 %v2966_v45  ;;  %v2985_v25 = vld [vmem:[%s4137_s1 + $0x130] sm:$0xff]  ;;  %1443 = vmatpush.bf16.msrb.mxu3 %v2973_v8  ;;  %v3549_v8 = vpack.c.bf16 %v639_v1, %v639_v1 }
  0x96   : > { %v622_v18 = vadd.f32 %v592_v62, %v364_v63  ;;  %v624_v54 = vadd.f32 %v594_v29, %v366_v30  ;;  %v630_v58 = vadd.f32 %v600_v36, %v372_v31  ;;  %v2964_v29 = vld [vmem:[%s4137_s1 + $0x188] sm:$0xff]  ;;  %v616_v31 = vmul.f32 %v3345_v52, %v3159_v47  ;;  %1573 = vmatpush.bf16.msrb.mxu0 %v2985_v25  ;;  %v3079_v25 = vld [vmem:[%s3305_s27 + $0x18] sm:$0xff]  }
  0x97   : > { %v3446_v10 = vpack.c.bf16 %v636_v48, %v636_v48  ;;  %v3448_v11 = vpack.c.bf16 %v642_v49, %v642_v49  ;;  %v2972_v30 = vld [vmem:[%s4137_s1 + $0x48] sm:$0xff] }
  0x98   : > { %v3414_v38 = vpack.c.bf16 %v622_v18, %v622_v18  ;;  %v3452_v14 = vpack.c.bf16 %v624_v54, %v624_v54  ;;  %v3457_v20 = vpack.c.bf16 %v630_v58, %v630_v58  ;;  %v2984_v49 = vld [vmem:[%s4137_s1 + $0x128] sm:$0xff]  ;;  %v2963_v58 = vld [vmem:[%s4137_s1 + $0x180] sm:$0xff] }
  0x99   : > { %1038 = vmatpush.bf16.msrb.mxu2 %v2965_v7  ;;  %v738_v37 = vunpack.c.l.b16 %v3446_v10  ;;  %v742_v47 = vunpack.c.l.b16 %v3448_v11  ;;  %1444 = vmatpush.bf16.msrb.mxu3 %v2972_v30  ;;  %v740_v30 = vunpack.c.l.b16 %v3549_v8 }
  0x9a   : > { %v1786_v32 = vrot.slane %v3414_v38, 5  ;;  %v730_v54 = vunpack.c.l.b16 %v3452_v14  ;;  %1574 = vmatpush.bf16.msrb.mxu0 %v2984_v49 }
  0x9c   : > { %v1788_v28 = vrot.slane %v1786_v32, 4 }
  0x9d   : > { %1039 = vmatpush.bf16.msrb.mxu2 %v2964_v29 }
  0x9e   : > { %1575 = vmatpush.bf16.msrb.mxu0 %v2983_v55  ;;  %v3026_v55 = vunpack.c.h.bf16 %v3079_v25 }
  0xa0   : > { %v3133_v56 = vpop.permute.xlu0 %3132 }
  0xa1   : > { %v3135_v59 = vunpack.i.h.bf16 %v3133_v56  ;;  %v3134_v62 = vunpack.i.l.bf16 %v3133_v56  ;;  %v3145_v63 = vpop.permute.xlu1 %3144  ;;  %v416_v0 = vpop.permute.xlu2 %415  ;;  %v734_v56 = vunpack.c.l.b16 %v3457_v20  ;;  %1040 = vmatpush.bf16.msrb.mxu2 %v2963_v58 }
  0xa2   : > { %v3147_v2 = vunpack.i.h.bf16 %v3145_v63  ;;  %v3146_v4 = vunpack.i.l.bf16 %v3145_v63  ;;  %v593_v5 = vmul.f32 %v3345_v52, %v416_v0  ;;  %1576 = vmatpush.bf16.msrb.mxu0 %v2982_v39  ;;  %v2979_v39 = vld [vmem:[%s4137_s1 + $0x100] sm:$0xff] }
  0xa3   : > { %v613_v12 = vmul.f32 %v3345_v52, %v3135_v59  ;;  %v607_v13 = vmul.f32 %v3345_v52, %v3134_v62 }
  0xa4   : > { %v595_v15 = vmul.f32 %v3345_v52, %v3147_v2  ;;  %v601_v18 = vmul.f32 %v3345_v52, %v3146_v4  ;;  %v623_v19 = vadd.f32 %v593_v5, %v365_v57  ;;  %v2947_v57 = vld [vmem:[%s4137_s1] sm:$0xff]  ;;  %v645_v4 = vadd.f32 %v3407_v34, %v3357_v60 }
  0xa5   : > { %v637_v22 = vadd.f32 %v607_v13, %v379_v40  ;;  %v643_v24 = vadd.f32 %v613_v12, %v385_v41  ;;  %v610_v41 = vmul.f32 %v3345_v52, %v3158_v53  ;;  %v2971_v2 = vld [vmem:[%s4137_s1 + $0x40] sm:$0xff]  ;;  %920 = vmatpush.bf16.msrb.mxu1 %v2947_v57  ;;  %v646_v34 = vadd.f32 %v616_v31, %v3374_v3 }
  0xa6   : > { %v625_v9 = vadd.f32 %v595_v15, %v367_v43  ;;  %v631_v26 = vadd.f32 %v601_v18, %v373_v51  ;;  %v3463_v27 = vpack.c.bf16 %v623_v19, %v623_v19  ;;  %v604_v51 = vmul.f32 %v3345_v52, %v3169_v21  ;;  %1445 = vmatpush.bf16.msrb.mxu3 %v2971_v2 }
  0xa7   : > { %v3481_v36 = vpack.c.bf16 %v637_v22, %v637_v22  ;;  %v3483_v40 = vpack.c.bf16 %v643_v24, %v643_v24  ;;  %v640_v60 = vadd.f32 %v610_v41, %v3360_v61  ;;  %v3551_v17 = vpack.c.bf16 %v645_v4, %v645_v4 }
  0xa8   : > { %v3486_v43 = vpack.c.bf16 %v625_v9, %v625_v9  ;;  %v3488_v44 = vpack.c.bf16 %v631_v26, %v631_v26  ;;  %v1789_v45 = vrot.slane %v3463_v27, 5  ;;  %v634_v7 = vadd.f32 %v604_v51, %v376_v33  ;;  %v2980_v51 = vld [vmem:[%s4137_s1 + $0x108] sm:$0xff] }
  0xa9   : > { %v739_v46 = vunpack.c.l.b16 %v3481_v36  ;;  %v743_v48 = vunpack.c.l.b16 %v3483_v40  ;;  %v363_v3 = vmul.f32 %v3340_v50, %v3021_v16  ;;  %v375_v15 = vmul.f32 %v3340_v50, %v3029_v35 }
  0xaa   : > { %v3507_v53 = vsel %vm3493_vm14, %v1788_v28, %v1789_v45  ;;  %v731_v59 = vunpack.c.l.b16 %v3486_v43  ;;  %v735_v62 = vunpack.c.l.b16 %v3488_v44  ;;  %v3555_v18 = vpack.c.bf16 %v640_v60, %v640_v60  ;;  %v2981_v28 = vld [vmem:[%s4137_s1 + $0x110] sm:$0xff] }
  0xab   : > { %v3519_v63 = vpack.c.b16 %v739_v46, %v738_v37  ;;  %v3521_v0 = vpack.c.b16 %v743_v48, %v742_v47  ;;  %v3557_v19 = vpack.c.bf16 %v646_v34, %v646_v34  ;;  %v3559_v21 = vpack.c.bf16 %v634_v7, %v634_v7  ;;  %1577 = vmatpush.bf16.msrb.mxu0 %v2981_v28 }
  0xac   : > { %v3531_v5 = vpack.c.b16 %v731_v59, %v730_v54  ;;  %v3533_v6 = vpack.c.b16 %v735_v62, %v734_v56  ;;  %v1111_v9 = vshll.u32 %v3414_v38, 16  ;;  %v1115_v26 = vshrl.u32 %v3414_v38, 16  ;;  %v3002_v56 = vld [vmem:[%s4137_s1 + $0xb8] sm:$0xff] }
  0xad   : > { %838 = vmatmul.bf16.vlgmr.msra.gmra.mxu2 %v3519_v63  ;;  %848 = vmatmul.bf16.vlgmr.msra.gmra.mxu3 %v3521_v0  ;;  %v744_v31 = vunpack.c.l.b16 %v3551_v17  ;;  %v3025_v33 = vunpack.c.l.bf16 %v3079_v25  ;;  %v737_v41 = vunpack.c.l.b16 %v3559_v21  ;;  %v741_v45 = vunpack.c.l.b16 %v3555_v18  ;;  %v3010_v25 = vld [vmem:[%s4137_s1 + $0x178] sm:$0xff] }
  0xae   : > { %818 = vmatmul.bf16.vlgmr.msra.gmra.mxu0 %v3531_v5  ;;  %828 = vmatmul.bf16.vlgmr.msra.gmra.mxu1 %v3533_v6  ;;  %v745_v37 = vunpack.c.l.b16 %v3557_v19  ;;  %v1113_v48 = vrot.slane %v1111_v9, 5  ;;  %v1117_v49 = vrot.slane %v1115_v26, 4  ;;  %v1121_v35 = vshll.u32 %v3463_v27, 16  ;;  %v2994_v9 = vld [vmem:[%s4137_s1 + $0x1f8] sm:$0xff]  ;;  %v454_v26 = vpop.permute.xlu2 %453 }
  0xaf   : > { %v3585_v57 = vpack.c.b16 %v741_v45, %v740_v30  ;;  %v369_v2 = vmul.f32 %v3340_v50, %v3025_v33  ;;  %1951 = vmatpush.bf16.msra.mxu2 %v3002_v56  ;;  %1578 = vmatpush.bf16.msrb.mxu0 %v2980_v51  ;;  %v1129_v51 = vshll.u32 %v3452_v14, 16 }
  0xb0   : > { %v3587_v58 = vpack.c.b16 %v745_v37, %v744_v31  ;;  %v442_v1 = vpop.permute.xlu0 %441  ;;  %v1118_v16 = vor.u32 %v1117_v49, %v1113_v48  ;;  %v1123_v27 = vrot.slane %v1121_v35, 5  ;;  %2085 = vmatpush.bf16.msra.mxu3 %v3010_v25  ;;  %1706 = vmatpush.bf16.msra.mxu1 %v2994_v9  ;;  %v1126_v49 = vshrl.u32 %v3452_v14, 16  ;;  %v274_v35 = vld [vmem:[%s3305_s27 + $0x20] sm:$0x1] }
  0xb1   : > { %v3163_v12 = vpop.permute.xlu1 %3162  ;;  %v597_v60 = vmul.f32 %v3345_v52, %v442_v1  ;;  %v3001_v1 = vld [vmem:[%s4137_s1 + $0xb0] sm:$0xff] }
  0xb2   : > { %v3165_v61 = vunpack.i.h.bf16 %v3163_v12  ;;  %v3164_v13 = vunpack.i.l.bf16 %v3163_v12 }
  0xb3   : > { %1579 = vmatpush.bf16.msrb.mxu0 %v2979_v39  ;;  %v1131_v39 = vrot.slane %v1129_v51, 5  ;;  %1952 = vmatpush.bf16.msra.mxu2 %v3001_v1  ;;  %v1793_v51 = vrot.slane %v3486_v43, 5  ;;  %v277_v1 = vld [vmem:[%s3305_s27 + $0x2c] sm:$0x1] }
  0xb4   : > { %v591_v22 = vmul.f32 %v3345_v52, %v3165_v61  ;;  %v603_v24 = vmul.f32 %v3345_v52, %v3164_v13  ;;  %v370_v61 = vmul.f32 %v3340_v50, %v3026_v55  ;;  %v627_v13 = vadd.f32 %v597_v60, %v369_v2  ;;  %v3009_v55 = vld [vmem:[%s4137_s1 + $0x170] sm:$0xff] }
  0xb5   : > { %2086 = vmatpush.bf16.msra.mxu3 %v3009_v55 }
  0xb6   : > { %v621_v42 = vadd.f32 %v591_v22, %v363_v3  ;;  %v633_v29 = vadd.f32 %v603_v24, %v375_v15  ;;  %v1119_v22 = vrot.slane %v1118_v16, 4  ;;  %v2993_v16 = vld [vmem:[%s4137_s1 + $0x1f0] sm:$0xff] }
  0xb7   : > { %1707 = vmatpush.bf16.msra.mxu1 %v2993_v16 }
  0xb8   : > { %v3574_v46 = vpack.c.bf16 %v621_v42, %v621_v42  ;;  %v3576_v47 = vpack.c.bf16 %v633_v29, %v633_v29  ;;  %v3614_v29 = vpack.c.bf16 %v627_v13, %v627_v13  ;;  %v1124_v31 = vsel %vm3610_vm1, %v1119_v22, %v1123_v27 }
  0xb9   : > { %v1359_v37 = vunpack.c.l.b16 %v1124_v31  ;;  %v1135_v27 = vshll.u32 %v3486_v43, 16  ;;  %v1139_v13 = vshrl.u32 %v3486_v43, 16  ;;  %v3017_v31 = vld [vmem:[%s4137_s1 + $0x230] sm:$0xff] }
  0xba   : > { %v736_v54 = vunpack.c.l.b16 %v3576_v47  ;;  %v1102_v59 = vshrl.u32 %v3574_v46, 16  ;;  %v1105_v62 = vshll.u32 %v3574_v46, 16  ;;  %v861_v56 = vunpack.c.l.b16 %v3574_v46 }
  0xbc   : > { %v3592_v4 = vpack.c.b16 %v737_v41, %v736_v54  ;;  %v1104_v34 = vrot.slane %v1102_v59, 4  ;;  %v1107_v7 = vrot.slane %v1105_v62, 5  ;;  %v732_v41 = vunpack.c.l.b16 %v3614_v29  ;;  %v271_v59 = vld [vmem:[%s3305_s27 + $0x14] sm:$0x1]  ;;  %v3018_v62 = vld [vmem:[%s4137_s1 + $0x238] sm:$0xff] }
  0xbd   : > { %843 = vmatmul.bf16.gmra.mxu2 %v3585_v57  ;;  %853 = vmatmul.bf16.gmra.mxu3 %v3587_v58 }
  0xbe   : > { %833 = vmatmul.bf16.gmra.mxu1 %v3592_v4  ;;  %v1108_v12 = vor.u32 %v1107_v7, %v1104_v34  ;;  %v334_v34 = vunpack.c.l.bf16 %v271_v59  ;;  %v1128_v7 = vrot.slane %v1126_v49, 4  ;;  %2219 = vmatpush.bf16.msra.mxu0 %v3018_v62  ;;  %v2992_v49 = vld [vmem:[%s4137_s1 + $0x1e8] sm:$0xff]  ;;  %v2790_v59 = vrot.slane %v3574_v46, 9 }
  0xbf   : > { %1708 = vmatpush.bf16.msra.mxu1 %v2992_v49 }
  0xc0   : > { %v1109_v15 = vrot.slane %v1108_v12, 4  ;;  %v283_v12 = vld [vmem:[%s3305_s27 + $0x44] sm:$0x1]  ;;  %v1132_v25 = vor.u32 %v1131_v39, %v1128_v7  ;;  %v1787_v43 = vsel %vm3493_vm14, %v2790_v59, %v1786_v32 }
  0xc1   : > { %v448_v3 = vpop.permute.xlu1 %447  ;;  %v346_v22 = vunpack.c.l.bf16 %v283_v12  ;;  %v1871_v46 = vunpack.c.l.b16 %v1787_v43  ;;  %v340_v12 = vunpack.c.l.bf16 %v277_v1 }
  0xc2   : > { %v598_v24 = vmul.f32 %v3345_v52, %v448_v3  ;;  %v1114_v30 = vsel %vm3610_vm1, %v1109_v15, %v1113_v48  ;;  %v862_v48 = vunpack.c.l.b16 %v3414_v38  ;;  %v511_v3 = vpop.permute.xlu2 %510  ;;  %v337_v15 = vunpack.c.l.bf16 %v274_v35  ;;  %2220 = vmatpush.bf16.msra.mxu0 %v3017_v31 }
  0xc3   : > { %v1358_v45 = vunpack.c.l.b16 %v1114_v30  ;;  %v1141_v30 = vrot.slane %v1139_v13, 4  ;;  %v380_v62 = vmul.f32 %v3340_v50, %v346_v22  ;;  %v1133_v16 = vrot.slane %v1132_v25, 4 }
  0xc4   : > { %v628_v28 = vadd.f32 %v598_v24, %v370_v61  ;;  %v863_v61 = vpack.c.b16 %v862_v48, %v861_v56  ;;  %v368_v24 = vmul.f32 %v3340_v50, %v334_v34  ;;  %v599_v56 = vmul.f32 %v3345_v52, %v454_v26  ;;  %v289_v48 = vld [vmem:[%s3305_s27 + $0x5c] sm:$0x1] }
  0xc5   : > { %v1374_v60 = vpack.c.b16 %v1359_v37, %v1358_v45  ;;  %v3008_v45 = vld [vmem:[%s4137_s1 + $0x168] sm:$0xff]  ;;  %v608_v35 = vmul.f32 %v3345_v52, %v511_v3  ;;  %v1872_v26 = vunpack.c.l.b16 %v3507_v53  ;;  %v352_v34 = vunpack.c.l.bf16 %v289_v48 }
  0xc6   : > { %v3620_v33 = vpack.c.bf16 %v628_v28, %v628_v28  ;;  %v1137_v28 = vrot.slane %v1135_v27, 5  ;;  %2087 = vmatpush.bf16.msra.mxu3 %v3008_v45  ;;  %v1150_v53 = vshrl.u32 %v3614_v29, 16  ;;  %v374_v49 = vmul.f32 %v3340_v50, %v340_v12  ;;  %v3016_v12 = vld [vmem:[%s4137_s1 + $0x228] sm:$0xff] }
  0xc7   : > { %v638_v32 = vadd.f32 %v608_v35, %v380_v62  ;;  %v386_v45 = vmul.f32 %v3340_v50, %v352_v34  ;;  %2221 = vmatpush.bf16.msra.mxu0 %v3016_v12 }
  0xc8   : > { %v733_v54 = vunpack.c.l.b16 %v3620_v33  ;;  %v1138_v27 = vsel %vm3610_vm1, %v1133_v16, %v1137_v28  ;;  %v1159_v3 = vshll.u32 %v3620_v33, 16  ;;  %v1163_v38 = vshrl.u32 %v3620_v33, 16 }
  0xc9   : > { %v3701_v1 = vpack.c.bf16 %v638_v32, %v638_v32  ;;  %v1152_v35 = vrot.slane %v1150_v53, 4 }
  0xca   : > { %v3635_v2 = vpack.c.b16 %v733_v54, %v732_v41  ;;  %v3000_v41 = vld [vmem:[%s4137_s1 + $0xa8] sm:$0xff]  ;;  %v371_v54 = vmul.f32 %v3340_v50, %v337_v15  ;;  %v549_v13 = vpop.permute.xlu2 %548  ;;  %v473_v15 = vpop.permute.xlu0 %472  ;;  %v3695_v59 = vrot.slane %v1159_v3, 5 }
  0xcb   : > { %1953 = vmatpush.bf16.msra.mxu2 %v3000_v41  ;;  %v2791_v41 = vrot.slane %v3452_v14, 9  ;;  %v1360_v14 = vunpack.c.l.b16 %v1138_v27 }
  0xcc   : > { %823 = vmatmul.bf16.gmra.mxu0 %v3635_v2  ;;  %v629_v39 = vadd.f32 %v599_v56, %v371_v54  ;;  %v602_v54 = vmul.f32 %v3345_v52, %v473_v15  ;;  %v1165_v56 = vrot.slane %v1163_v38, 4  ;;  %v2795_v15 = vrot.slane %v3446_v10, 9 }
  0xcd   : > { %1041 = vmatmul.bf16.vlgmr.msrb.gmra.mxu2 %v3635_v2  ;;  %1446 = vmatmul.bf16.vlgmr.msrb.gmra.mxu3 %v1374_v60  ;;  %v1142_v60 = vor.u32 %v1141_v30, %v1137_v28  ;;  %v1153_v30 = vshll.u32 %v3614_v29, 16  ;;  %v3699_v62 = vsel %vm3493_vm14, %v2791_v41, %v1793_v51  ;;  %v1177_v41 = vshll.u32 %v3457_v20, 16 }
  0xce   : > { %921 = vmatmul.bf16.vlgmr.msrb.gmra.mxu1 %v863_v61  ;;  %v1795_v61 = vrot.slane %v1793_v51, 4  ;;  %v659_v16 = vpack.c.bf16 %v629_v39, %v629_v39  ;;  %v1824_v51 = vrot.slane %v3701_v1, 5  ;;  %v2999_v39 = vld [vmem:[%s4137_s1 + $0xa0] sm:$0xff] }
  0xcf   : > { %v1143_v25 = vrot.slane %v1142_v60, 4  ;;  %v1155_v60 = vrot.slane %v1153_v30, 5  ;;  %1954 = vmatpush.bf16.msra.mxu2 %v2999_v39  ;;  %v1187_v39 = vshrl.u32 %v3488_v44, 16 }
  0xd1   : > { %v435_v9 = vpop.permute.xlu1 %434  ;;  %v1156_v27 = vor.u32 %v1155_v60, %v1152_v35 }
  0xd2   : > { %v596_v37 = vmul.f32 %v3345_v52, %v435_v9  ;;  %v3681_v9 = vpack.c.b16 %v1872_v26, %v1871_v46  ;;  %v632_v26 = vadd.f32 %v602_v54, %v374_v49  ;;  %v1166_v46 = vor.u32 %v1165_v56, %v3695_v59 }
  0xd3   : > { %v1157_v49 = vrot.slane %v1156_v27, 4  ;;  %v2793_v54 = vrot.slane %v3457_v20, 9 }
  0xd4   : > { %v626_v55 = vadd.f32 %v596_v37, %v368_v24  ;;  %v614_v37 = vmul.f32 %v3345_v52, %v549_v13  ;;  %v2991_v13 = vld [vmem:[%s4137_s1 + $0x1e0] sm:$0xff]  ;;  %v3723_v38 = vpack.c.bf16 %v632_v26, %v632_v26  ;;  %v1167_v53 = vrot.slane %v1166_v46, 4 }
  0xd5   : > { %1709 = vmatpush.bf16.msra.mxu1 %v2991_v13  ;;  %v1800_v26 = vrot.slane %v3620_v33, 5  ;;  %v1162_v12 = vsel %vm3610_vm1, %v1157_v49, %v3695_v59  ;;  %v1189_v49 = vrot.slane %v1187_v39, 4 }
  0xd6   : > { %v656_v7 = vpack.c.bf16 %v626_v55, %v626_v55  ;;  %v644_v43 = vadd.f32 %v614_v37, %v386_v45  ;;  %v1183_v45 = vshll.u32 %v3488_v44, 16 }
  0xd7   : > { %v1802_v33 = vrot.slane %v1800_v26, 4 }
  0xd8   : > { %v1145_v22 = vshll.u32 %v656_v7, 16  ;;  %v1796_v24 = vrot.slane %v656_v7, 5  ;;  %v1169_v7 = vshll.u32 %v659_v16, 16  ;;  %v3721_v3 = vpack.c.bf16 %v644_v43, %v644_v43 }
  0xd9   : > { %v2792_v43 = vrot.slane %v3614_v29, 9 }
  0xda   : > { %v1147_v31 = vrot.slane %v1145_v22, 5  ;;  %v3686_v28 = vsel %vm3493_vm14, %v1795_v61, %v1796_v24  ;;  %v1821_v61 = vrot.slane %v3481_v36, 5  ;;  %v1174_v22 = vshrl.u32 %v3457_v20, 16 }
  0xdb   : > { %v1171_v32 = vrot.slane %v1169_v7, 5  ;;  %v1801_v29 = vsel %vm3493_vm14, %v2792_v43, %v1800_v26  ;;  %v3006_v43 = vld [vmem:[%s4137_s1 + $0x158] sm:$0xff] }
  0xdc   : > { %v1148_v48 = vsel %vm3610_vm1, %v1143_v25, %v1147_v31  ;;  %v1823_v24 = vrot.slane %v1821_v61, 4  ;;  %v1807_v25 = vrot.slane %v3488_v44, 5  ;;  %v1822_v30 = vsel %vm3493_vm14, %v2795_v15, %v1821_v61  ;;  %v280_v15 = vld [vmem:[%s3305_s27 + $0x38] sm:$0x1] }
  0xdd   : > { %1046 = vmatmul.bf16.gmra.mxu2 %v3533_v6  ;;  %v1361_v55 = vunpack.c.l.b16 %v1148_v48  ;;  %v1803_v31 = vrot.slane %v659_v16, 5  ;;  %v1835_v48 = vrot.slane %v3483_v40, 5  ;;  %v1881_v35 = vunpack.c.l.b16 %v1822_v30 }
  0xde   : > { %926 = vmatmul.bf16.gmra.mxu1 %v3531_v5  ;;  %v3007_v5 = vld [vmem:[%s4137_s1 + $0x160] sm:$0xff]  ;;  %v1825_v37 = vsel %vm3493_vm14, %v1823_v24, %v1824_v51  ;;  %v2797_v16 = vrot.slane %v3448_v11, 9  ;;  %v1172_v60 = vsel %vm3610_vm1, %v1167_v53, %v1171_v32  ;;  %v1808_v20 = vsel %vm3493_vm14, %v2793_v54, %v1807_v25 }
  0xdf   : > { %v1375_v34 = vpack.c.b16 %v1361_v55, %v1360_v14  ;;  %2088 = vmatpush.bf16.msra.mxu3 %v3007_v5  ;;  %v1882_v56 = vunpack.c.l.b16 %v1825_v37  ;;  %v1838_v14 = vrot.slane %v3721_v3, 5  ;;  %v1810_v55 = vrot.slane %v3723_v38, 5 }
  0xe0   : > { %v1836_v46 = vsel %vm3493_vm14, %v2797_v16, %v1835_v48  ;;  %v1837_v51 = vrot.slane %v1835_v48, 4  ;;  %v1363_v5 = vunpack.c.l.b16 %v1172_v60  ;;  %v1877_v27 = vunpack.c.l.b16 %v1808_v20 }
  0xe1   : > { %1451 = vmatmul.bf16.gmra.mxu3 %v1375_v34  ;;  %1580 = vmatmul.bf16.vlgmr.msrb.gmra.mxu0 %v1375_v34  ;;  %v1809_v34 = vrot.slane %v1807_v25, 4  ;;  %v3744_v7 = vpack.c.b16 %v1882_v56, %v1881_v35  ;;  %v1804_v24 = vsel %vm3493_vm14, %v1802_v33, %v1803_v31  ;;  %v1885_v59 = vunpack.c.l.b16 %v1836_v46  ;;  %v492_v35 = vpop.permute.xlu1 %491 }
  0xe2   : > { %v1839_v13 = vsel %vm3493_vm14, %v1837_v51, %v1838_v14  ;;  %v1362_v44 = vunpack.c.l.b16 %v1162_v12  ;;  %v1875_v25 = vunpack.c.l.b16 %v1801_v29  ;;  %v1876_v30 = vunpack.c.l.b16 %v1804_v24 }
  0xe3   : > { %v1811_v61 = vsel %vm3493_vm14, %v1809_v34, %v1810_v55  ;;  %v1886_v53 = vunpack.c.l.b16 %v1839_v13  ;;  %v1185_v37 = vrot.slane %v1183_v45, 5  ;;  %v343_v48 = vunpack.c.l.bf16 %v280_v15  ;;  %v3015_v45 = vld [vmem:[%s4137_s1 + $0x220] sm:$0xff]  ;;  %2089 = vmatpush.bf16.msra.mxu3 %v3006_v43 }
  0xe4   : > { %v1878_v32 = vunpack.c.l.b16 %v1811_v61  ;;  %v3767_v14 = vpack.c.b16 %v1363_v5, %v1362_v44  ;;  %v3769_v31 = vpack.c.b16 %v1876_v30, %v1875_v25  ;;  %v1193_v55 = vshll.u32 %v3723_v38, 16  ;;  %2222 = vmatpush.bf16.msra.mxu0 %v3015_v45 }
  0xe5   : > { %v3764_v56 = vpack.c.b16 %v1886_v53, %v1885_v59  ;;  %v1176_v16 = vrot.slane %v1174_v22, 4  ;;  %v1179_v60 = vrot.slane %v1177_v41, 5  ;;  %v1190_v38 = vor.u32 %v1189_v49, %v1185_v37  ;;  %v2990_v22 = vld [vmem:[%s4137_s1 + $0x1d8] sm:$0xff] }
  0xe6   : > { %v3762_v54 = vpack.c.b16 %v1878_v32, %v1877_v27  ;;  %v377_v41 = vmul.f32 %v3340_v50, %v343_v48  ;;  %v605_v26 = vmul.f32 %v3345_v52, %v492_v35  ;;  %v1195_v20 = vrot.slane %v1193_v55, 5  ;;  %1710 = vmatpush.bf16.msra.mxu1 %v2990_v22 }
  0xe7   : > { %v1180_v34 = vor.u32 %v1179_v60, %v1176_v16  ;;  %v1191_v46 = vrot.slane %v1190_v38, 4  ;;  %v1207_v29 = vshll.u32 %v3559_v21, 16  ;;  %v1198_v5 = vshrl.u32 %v3576_v47, 16 }
  0xe8   : > { %v635_v51 = vadd.f32 %v605_v26, %v377_v41  ;;  %v1201_v61 = vshll.u32 %v3576_v47, 16  ;;  %v1211_v27 = vshrl.u32 %v3559_v21, 16  ;;  %v1873_v24 = vunpack.c.l.b16 %v3699_v62 }
  0xe9   : > { %v1181_v12 = vrot.slane %v1180_v34, 4  ;;  %v1196_v39 = vsel %vm3610_vm1, %v1191_v46, %v1195_v20  ;;  %v1874_v32 = vunpack.c.l.b16 %v3686_v28  ;;  %v2794_v44 = vrot.slane %v3576_v47, 9  ;;  %v3014_v47 = vld [vmem:[%s4137_s1 + $0x218] sm:$0xff]  ;;  %v3005_v28 = vld [vmem:[%s4137_s1 + $0x150] sm:$0xff] }
  0xea   : > { %v665_v13 = vpack.c.bf16 %v635_v51, %v635_v51  ;;  %v1365_v15 = vunpack.c.l.b16 %v1196_v39  ;;  %v1814_v25 = vrot.slane %v3559_v21, 5  ;;  %v1200_v30 = vrot.slane %v1198_v5, 4  ;;  %v2997_v21 = vld [vmem:[%s4137_s1 + $0x90] sm:$0xff]  ;;  %2223 = vmatpush.bf16.msra.mxu0 %v3014_v47  ;;  %2090 = vmatpush.bf16.msra.mxu3 %v3005_v28  ;;  %v3004_v28 = vld [vmem:[%s4137_s1 + $0x148] sm:$0xff] }
  0xeb   : > { %v1186_v33 = vsel %vm3610_vm1, %v1181_v12, %v1185_v37  ;;  %v3799_v53 = vpack.c.b16 %v1874_v32, %v1873_v24  ;;  %v1203_v37 = vrot.slane %v1201_v61, 5  ;;  %v1209_v49 = vrot.slane %v1207_v29, 5  ;;  %v2989_v61 = vld [vmem:[%s4137_s1 + $0x1d0] sm:$0xff] }
  0xec   : > { %v1364_v59 = vunpack.c.l.b16 %v1186_v33  ;;  %v1213_v48 = vrot.slane %v1211_v27, 4  ;;  %v1817_v55 = vrot.slane %v665_v13, 5  ;;  %v1217_v62 = vshll.u32 %v665_v13, 16  ;;  %v286_v27 = vld [vmem:[%s3305_s27 + $0x50] sm:$0x1]  ;;  %1711 = vmatpush.bf16.msra.mxu1 %v2989_v61 }
  0xed   : > { %1051 = vmatmul.bf16.gmra.mxu2 %v3592_v4  ;;  %v1816_v16 = vrot.slane %v1814_v25, 4  ;;  %v1204_v60 = vor.u32 %v1203_v37, %v1200_v30  ;;  %v1235_v46 = vshrl.u32 %v3481_v36, 16  ;;  %v1231_v12 = vshll.u32 %v3481_v36, 16  ;;  %v3013_v30 = vld [vmem:[%s4137_s1 + $0x210] sm:$0xff] }
  0xee   : > { %931 = vmatmul.bf16.gmra.mxu1 %v3635_v2  ;;  %v2998_v2 = vld [vmem:[%s4137_s1 + $0x98] sm:$0xff]  ;;  %v3804_v35 = vpack.c.b16 %v1365_v15, %v1364_v59  ;;  %v1214_v45 = vor.u32 %v1213_v48, %v1209_v49  ;;  %v1219_v43 = vrot.slane %v1217_v62, 5  ;;  %v1222_v29 = vshrl.u32 %v3446_v10, 16  ;;  %2224 = vmatpush.bf16.msra.mxu0 %v3013_v30 }
  0xef   : > { %1955 = vmatpush.bf16.msra.mxu2 %v2998_v2  ;;  %v1818_v2 = vsel %vm3493_vm14, %v1816_v16, %v1817_v55  ;;  %v1205_v41 = vrot.slane %v1204_v60, 4  ;;  %v1225_v33 = vshll.u32 %v3446_v10, 16  ;;  %v1237_v5 = vrot.slane %v1235_v46, 4  ;;  %v2996_v55 = vld [vmem:[%s4137_s1 + $0x88] sm:$0xff]  ;;  %2091 = vmatpush.bf16.msra.mxu3 %v3004_v28 }
  0xf0   : > { %v1880_v22 = vunpack.c.l.b16 %v1818_v2  ;;  %v1215_v26 = vrot.slane %v1214_v45, 4  ;;  %v1233_v15 = vrot.slane %v1231_v12, 5  ;;  %v1241_v24 = vshll.u32 %v3701_v1, 16  ;;  %v3012_v12 = vld [vmem:[%s4137_s1 + $0x208] sm:$0xff] }
  0xf1   : > { %1456 = vmatmul.bf16.gmra.mxu3 %v3767_v14  ;;  %1585 = vmatmul.bf16.gmra.mxu0 %v3767_v14  ;;  %v1210_v51 = vsel %vm3610_vm1, %v1205_v41, %v1209_v49  ;;  %v349_v32 = vunpack.c.l.bf16 %v286_v27  ;;  %v1224_v59 = vrot.slane %v1222_v29, 4  ;;  %v1227_v10 = vrot.slane %v1225_v33, 5  ;;  %v293_v33 = vld [vmem:[%s3305_s27 + $0x6c] sm:$0xff]  }
  0xf2   : > { %v1220_v34 = vsel %vm3610_vm1, %v1215_v26, %v1219_v43  ;;  %v1366_v13 = vunpack.c.l.b16 %v1210_v51  ;;  %v1243_v37 = vrot.slane %v1241_v24, 5  ;;  %v1259_v16 = vshrl.u32 %v3555_v18, 16  ;;  %v2988_v43 = vld [vmem:[%s4137_s1 + $0x1c8] sm:$0xff]  ;;  %2225 = vmatpush.bf16.msra.mxu0 %v3012_v12  ;;  %v575_v24 = vpop.permute.xlu0 %574 }
  0xf3   : > { %1956 = vmatpush.bf16.msra.mxu2 %v2997_v21  ;;  %v1367_v39 = vunpack.c.l.b16 %v1220_v34  ;;  %v383_v1 = vmul.f32 %v3340_v50, %v349_v32  ;;  %v1228_v49 = vor.u32 %v1227_v10, %v1224_v59  ;;  %v1255_v2 = vshll.u32 %v3555_v18, 16  ;;  %1712 = vmatpush.bf16.msra.mxu1 %v2988_v43  ;;  %v3885_v10 = vld [vmem:[%s4139_s3] ss:$0 sm:$0xff] }
  0xf4   : > { %v1261_v26 = vrot.slane %v1259_v16, 4  ;;  %v356_v61 = vunpack.c.l.bf16 %v293_v33  ;;  %v357_v27 = vunpack.c.h.bf16 %v293_v33  ;;  %v1273_v28 = vshll.u32 %v3448_v11, 16 }
  0xf5   : > { %v3838_v36 = vpack.c.b16 %v1367_v39, %v1366_v13  ;;  %v1229_v47 = vrot.slane %v1228_v49, 4  ;;  %v1257_v51 = vrot.slane %v1255_v2, 5  ;;  %v1283_v49 = vshrl.u32 %v3483_v40, 16 }
  0xf7   : > { %1957 = vmatpush.bf16.msra.mxu2 %v2996_v55  ;;  %v1234_v50 = vsel %vm3610_vm1, %v1229_v47, %v1233_v15  ;;  %v1262_v29 = vor.u32 %v1261_v26, %v1257_v51  ;;  %v1285_v2 = vrot.slane %v1283_v49, 4  ;;  %v1297_v49 = vshll.u32 %v3551_v17, 16 }
  0xfd   : > { %1056 = vmatmul.bf16.gmra.mxu2 %v3519_v63 }
  0xfe   : > { %936 = vmatmul.bf16.gmra.mxu1 %v3533_v6  ;;  %v1815_v6 = vsel %vm3493_vm14, %v2794_v44, %v1814_v25  ;;  %v1238_v44 = vor.u32 %v1237_v5, %v1233_v15  ;;  %v530_v25 = vpop.permute.xlu1 %529  ;;  %v1263_v15 = vrot.slane %v1262_v29, 4 }
  0xff   : > { %v1879_v38 = vunpack.c.l.b16 %v1815_v6  ;;  %v1249_v6 = vshll.u32 %v3549_v8, 16 }
 0x100   : > { %v1239_v48 = vrot.slane %v1238_v44, 4  ;;  %v390_v44 = vmul.f32 %v3885_v10, %v356_v61 }
 0x101   : > { %1461 = vmatmul.bf16.gmra.mxu3 %v3804_v35  ;;  %1590 = vmatmul.bf16.gmra.mxu0 %v3804_v35  ;;  %v3821_v20 = vpack.c.b16 %v1880_v22, %v1879_v38  ;;  %v1368_v38 = vunpack.c.l.b16 %v1234_v50  ;;  %v1251_v41 = vrot.slane %v1249_v6, 5  ;;  %v1279_v50 = vshll.u32 %v3483_v40, 16 }
 0x102   : > { %v1244_v21 = vsel %vm3610_vm1, %v1239_v48, %v1243_v37  ;;  %v391_v37 = vmul.f32 %v3885_v10, %v357_v27  ;;  %v3003_v48 = vld [vmem:[%s4137_s1 + $0x140] sm:$0xff] }
 0x103   : > { %v1369_v60 = vunpack.c.l.b16 %v1244_v21  ;;  %v1270_v21 = vshrl.u32 %v3448_v11, 16  ;;  %2092 = vmatpush.bf16.msra.mxu3 %v3003_v48  ;;  %v1289_v11 = vshll.u32 %v3721_v3, 16  ;;  %v1281_v26 = vrot.slane %v1279_v50, 5  ;;  %v3011_v3 = vld [vmem:[%s4137_s1 + $0x200] sm:$0xff] }
 0x104   : > { %2226 = vmatpush.bf16.msra.mxu0 %v3011_v3  ;;  %v1307_v48 = vshrl.u32 %v3557_v19, 16 }
 0x105   : > { %v3868_v34 = vpack.c.b16 %v1369_v60, %v1368_v38  ;;  %v2987_v60 = vld [vmem:[%s4137_s1 + $0x1c0] sm:$0xff]  ;;  %v1286_v12 = vor.u32 %v1285_v2, %v1281_v26 }
 0x106   : > { %v581_v32 = vpop.permute.xlu1 %580  ;;  %1713 = vmatpush.bf16.msra.mxu1 %v2987_v60 }
 0x10d   : > { %1061 = vmatmul.bf16.gmra.mxu2 %v3585_v57 }
 0x10e   : > { %941 = vmatmul.bf16.gmra.mxu1 %v3592_v4  ;;  %v611_v4 = vmul.f32 %v3345_v52, %v530_v25  ;;  %v1246_v52 = vshrl.u32 %v3549_v8, 16  ;;  %v3891_v25 = vld [vmem:[%s4140_s4] ss:$0 sm:$0xff] }
 0x10f   : > { %v618_v30 = vmul.f32 %v3891_v25, %v575_v24 }
 0x110   : > { %v641_v62 = vadd.f32 %v611_v4, %v383_v1  ;;  %v1248_v22 = vrot.slane %v1246_v52, 4  ;;  %v619_v1 = vmul.f32 %v3891_v25, %v581_v32 }
 0x111   : > { %1466 = vmatmul.bf16.gmra.mxu3 %v3838_v36  ;;  %1595 = vmatmul.bf16.gmra.mxu0 %v3838_v36  ;;  %v648_v6 = vadd.f32 %v618_v30, %v390_v44 }
 0x112   : > { %v3860_v45 = vpack.c.bf16 %v641_v62, %v641_v62  ;;  %v1252_v39 = vor.u32 %v1251_v41, %v1248_v22  ;;  %v292_v62 = vld [vmem:[%s3305_s27 + $0x68] sm:$0x1]  ;;  %v649_v16 = vadd.f32 %v619_v1, %v391_v37  ;;  %v1275_v41 = vrot.slane %v1273_v28, 5 }
 0x113   : > { %v355_v43 = vunpack.c.l.bf16 %v292_v62  ;;  %v1303_v28 = vshll.u32 %v3557_v19, 16 }
 0x114   : > { %v1265_v46 = vshll.u32 %v3860_v45, 16  ;;  %v1253_v13 = vrot.slane %v1252_v39, 4  ;;  %v1291_v39 = vrot.slane %v1289_v11, 5 }
 0x115   : > { %v389_v29 = vmul.f32 %v3885_v10, %v355_v43 }
 0x116   : > { %v1267_v5 = vrot.slane %v1265_v46, 5  ;;  %v1258_v4 = vsel %vm3610_vm1, %v1253_v13, %v1257_v51  ;;  %v568_v46 = vpop.permute.xlu2 %567  ;;  %v3922_v51 = vpack.c.bf16 %v648_v6, %v648_v6  ;;  %v1287_v13 = vrot.slane %v1286_v12, 4 }
 0x117   : > { %v1370_v52 = vunpack.c.l.b16 %v1258_v4  ;;  %v617_v33 = vmul.f32 %v3891_v25, %v568_v46  ;;  %v1294_v4 = vshrl.u32 %v3551_v17, 16  ;;  %v1299_v6 = vrot.slane %v1297_v49, 5 }
 0x118   : > { %v1268_v59 = vsel %vm3610_vm1, %v1263_v15, %v1267_v5  ;;  %v981_v61 = vunpack.c.l.b16 %v3922_v51  ;;  %v1292_v44 = vsel %vm3610_vm1, %v1287_v13, %v1291_v39 }
 0x119   : > { %v1371_v55 = vunpack.c.l.b16 %v1268_v59  ;;  %v647_v15 = vadd.f32 %v617_v33, %v389_v29 }
 0x11b   : > { %v3913_v38 = vpack.c.b16 %v1371_v55, %v1370_v52  ;;  %v1373_v55 = vunpack.c.l.b16 %v1292_v44  ;;  %v3946_v62 = vpack.c.bf16 %v647_v15, %v647_v15  ;;  %v1296_v52 = vrot.slane %v1294_v4, 4 }
 0x11d   : > { %1066 = vmatmul.bf16.gmra.mxu2 %v3521_v0  ;;  %v1313_v2 = vshll.u32 %v3946_v62, 16 }
 0x11e   : > { %946 = vmatmul.bf16.gmra.mxu1 %v3519_v63  ;;  %v2995_v63 = vld [vmem:[%s4137_s1 + $0x80] sm:$0xff] }
 0x11f   : > { %1958 = vmatpush.bf16.msra.mxu2 %v2995_v63  ;;  %v1315_v46 = vrot.slane %v1313_v2, 5 }
 0x121   : > { %1471 = vmatmul.bf16.gmra.mxu3 %v3868_v34  ;;  %1600 = vmatmul.bf16.gmra.mxu0 %v3868_v34 }
 0x12b   : > { %v3903_v47 = vpop.f32.mrf.mxu1  ;;  %v819_v37 = vpop.f32.mrf.mxu0 }
 0x12d   : > { %1071 = vmatmul.bf16.gmra.mxu2 %v3587_v58  ;;  %v1272_v58 = vrot.slane %v1270_v21, 4 }
 0x12e   : > { %951 = vmatmul.bf16.gmra.mxu1 %v3585_v57  ;;  %v3924_v57 = vpack.c.bf16 %v649_v16, %v649_v16  ;;  %v1309_v16 = vrot.slane %v1307_v48, 4 }
 0x12f   : > { %v1276_v63 = vor.u32 %v1275_v41, %v1272_v58  ;;  %v1305_v58 = vrot.slane %v1303_v28, 5  ;;  %v1300_v41 = vor.u32 %v1299_v6, %v1296_v52 }
 0x130   : > { %v3916_v22 = vpop.f32.mrf.mxu2  ;;  %v3918_v40 = vpop.f32.mrf.mxu3  ;;  %v982_v27 = vunpack.c.l.b16 %v3924_v57 }
 0x131   : > { %1476 = vmatmul.bf16.gmra.mxu3 %v3913_v38  ;;  %1605 = vmatmul.bf16.gmra.mxu0 %v3913_v38  ;;  %v1277_v59 = vrot.slane %v1276_v63, 4 }
 0x132   : > { %v983_v30 = vpack.c.b16 %v982_v27, %v981_v61 }
 0x133   : > { %v3931_v5 = vpop.f32.mrf.mxu1  ;;  %v1282_v1 = vsel %vm3610_vm1, %v1277_v59, %v1281_v26  ;;  %v1310_v26 = vor.u32 %v1309_v16, %v1305_v58  ;;  %v821_v12 = vpop.f32.mrf.mxu0 }
 0x134   : > { %v1372_v50 = vunpack.c.l.b16 %v1282_v1 }
 0x135   : > { %v1311_v39 = vrot.slane %v1310_v26, 4 }
 0x136   : > { %v3952_v60 = vpack.c.b16 %v1373_v55, %v1372_v50 }
 0x137   : > { %v1316_v63 = vsel %vm3610_vm1, %v1311_v39, %v1315_v46 }
 0x138   : > { %v3935_v24 = vpop.f32.mrf.mxu2  ;;  %v3937_v32 = vpop.f32.mrf.mxu3  ;;  %v1521_v27 = vunpack.c.l.b16 %v1316_v63 }
 0x13b   : > { %v3948_v21 = vpop.f32.mrf.mxu1 }
 0x13d   : > { %1076 = vmatmul.bf16.gmra.mxu2 %v983_v30 }
 0x13e   : > { %956 = vmatmul.bf16.gmra.mxu1 %v3521_v0  ;;  %v1301_v0 = vrot.slane %v1300_v41, 4 }
 0x140   : > { %v3955_v43 = vpop.f32.mrf.mxu2  ;;  %v3957_v11 = vpop.f32.mrf.mxu3  ;;  %v1306_v61 = vsel %vm3610_vm1, %v1301_v0, %v1305_v58 }
 0x141   : > { %1481 = vmatmul.bf16.gmra.mxu3 %v3952_v60  ;;  %1610 = vmatmul.bf16.gmra.mxu0 %v3952_v60  ;;  %v1520_v44 = vunpack.c.l.b16 %v1306_v61 }
 0x143   : > { %v3961_v3 = vpop.f32.mrf.mxu1  ;;  %v3973_v30 = vpack.c.b16 %v1521_v27, %v1520_v44 }
 0x148   : > { %v3963_v29 = vpop.f32.mrf.mxu2  ;;  %v3965_v33 = vpop.f32.mrf.mxu3 }
 0x149   : > { %v824_v13 = vpop.f32.mrf.mxu0 }
 0x14b   : > { %v922_v15 = vpop.f32.mrf.mxu1 }
 0x14c   : > { %v923_v59 = vadd.f32 %v922_v15, %v819_v37 }
 0x14d   : > { %1959 = vmatmul.bf16.vlgmr.msra.gmra.mxu2 %v3681_v9 }
 0x14e   : > { %1714 = vmatmul.bf16.vlgmr.msra.gmra.mxu1 %v3767_v14 }
 0x150   : > { %v1042_v1 = vpop.f32.mrf.mxu2  ;;  %v1447_v49 = vpop.f32.mrf.mxu3 }
 0x151   : > { %v1082_v4 = vadd.f32 %v1042_v1, %v923_v59  ;;  %1615 = vmatmul.bf16.gmra.mxu0 %v3973_v30  ;;  %2093 = vmatmul.bf16.vlgmr.msra.gmra.mxu3 %v3799_v53  ;;  %v826_v50 = vpop.f32.mrf.mxu0 }
 0x153   : > { %v1487_v48 = vadd.f32 %v1447_v49, %v1082_v4  ;;  %v924_v55 = vpop.f32.mrf.mxu1 }
 0x154   : > { %v925_v28 = vadd.f32 %v924_v55, %v821_v12 }
 0x158   : > { %v1044_v52 = vpop.f32.mrf.mxu2  ;;  %v1449_v6 = vpop.f32.mrf.mxu3 }
 0x159   : > { %v1083_v37 = vadd.f32 %v1044_v52, %v925_v28 }
 0x15b   : > { %v1488_v9 = vadd.f32 %v1449_v6, %v1083_v37  ;;  %v927_v16 = vpop.f32.mrf.mxu1 }
 0x15c   : > { %v928_v2 = vadd.f32 %v927_v16, %v824_v13 }
 0x15d   : > { %1964 = vmatmul.bf16.gmra.mxu2 %v3799_v53 }
 0x15e   : > { %v1581_v14 = vpop.f32.mrf.mxu0  ;;  %1719 = vmatmul.bf16.gmra.mxu1 %v3804_v35 }
 0x15f   : > { %v3978_v58 = vadd.f32 %v1581_v14, %v1487_v48 }
 0x160   : > { %v1047_v41 = vpop.f32.mrf.mxu2 }
 0x161   : > { %v1084_v26 = vadd.f32 %v1047_v41, %v928_v2  ;;  %2098 = vmatmul.bf16.gmra.mxu3 %v3769_v31  ;;  %2227 = vmatmul.bf16.vlgmr.msra.gmra.mxu0 %v3769_v31 }
 0x163   : > { %v929_v46 = vpop.f32.mrf.mxu1 }
 0x164   : > { %v1452_v12 = vpop.f32.mrf.mxu3  ;;  %v930_v0 = vadd.f32 %v929_v46, %v826_v50 }
 0x165   : > { %v1489_v39 = vadd.f32 %v1452_v12, %v1084_v26 }
 0x166   : > { %v1583_v63 = vpop.f32.mrf.mxu0 }
 0x167   : > { %v3983_v61 = vadd.f32 %v1583_v63, %v1488_v9 }
 0x168   : > { %v1049_v27 = vpop.f32.mrf.mxu2 }
 0x169   : > { %v1085_v53 = vadd.f32 %v1049_v27, %v930_v0 }
 0x16b   : > { %v932_v13 = vpop.f32.mrf.mxu1 }
 0x16c   : > { %v1454_v15 = vpop.f32.mrf.mxu3  ;;  %v933_v59 = vadd.f32 %v932_v13, %v3903_v47 }
 0x16d   : > { %v1490_v35 = vadd.f32 %v1454_v15, %v1085_v53  ;;  %1969 = vmatmul.bf16.gmra.mxu2 %v3769_v31 }
 0x16e   : > { %v1586_v44 = vpop.f32.mrf.mxu0  ;;  %1724 = vmatmul.bf16.gmra.mxu1 %v3838_v36 }
 0x16f   : > { %v3987_v1 = vadd.f32 %v1586_v44, %v1489_v39  ;;  %v1831_v44 = vrot.slane %v3860_v45, 5 }
 0x170   : > { %v1052_v4 = vpop.f32.mrf.mxu2 }
 0x171   : > { %v1086_v49 = vadd.f32 %v1052_v4, %v933_v59  ;;  %2103 = vmatmul.bf16.gmra.mxu3 %v3762_v54  ;;  %2232 = vmatmul.bf16.gmra.mxu0 %v3762_v54 }
 0x173   : > { %v934_v48 = vpop.f32.mrf.mxu1 }
 0x174   : > { %v1457_v55 = vpop.f32.mrf.mxu3  ;;  %v935_v28 = vadd.f32 %v934_v48, %v3931_v5 }
 0x175   : > { %v1491_v50 = vadd.f32 %v1457_v55, %v1086_v49 }
 0x176   : > { %v1588_v47 = vpop.f32.mrf.mxu0 }
 0x177   : > { %v3993_v52 = vadd.f32 %v1588_v47, %v1490_v35 }
 0x178   : > { %v1054_v31 = vpop.f32.mrf.mxu2 }
 0x179   : > { %v1087_v37 = vadd.f32 %v1054_v31, %v935_v28 }
 0x17b   : > { %v937_v6 = vpop.f32.mrf.mxu1 }
 0x17c   : > { %v1459_v9 = vpop.f32.mrf.mxu3  ;;  %v938_v36 = vadd.f32 %v937_v6, %v3948_v21  ;;  %v295_v6 = vld [vmem:[%s3305_s27 + $0x74] sm:$0x1]  ;;  %s2508_s27 = sshll.u32 %s3235_s22, 3 }
 0x17d   : > { %v1492_v16 = vadd.f32 %v1459_v9, %v1087_v37  ;;  %1974 = vmatmul.bf16.gmra.mxu2 %v3762_v54  ;;  %p256_p6 = scmp.lt.s32.totalorder %s2508_s27, 31 }
 0x17e   : > { %v1591_v2 = vpop.f32.mrf.mxu0  ;;  %1729 = vmatmul.bf16.gmra.mxu1 %v3868_v34 }
 0x17f   : > { %v3997_v14 = vadd.f32 %v1591_v2, %v1491_v50  ;;  %v358_v2 = vunpack.c.l.bf16 %v295_v6  ;;  %s4152_s27 = smov (!%p256_p6, %s2508_s27), 31 }
 0x180   : > { %v1057_v41 = vpop.f32.mrf.mxu2  ;;  %s2946_s22 = sshll.u32 %s4152_s27, 3 }
 0x181   : > { %v1088_v5 = vadd.f32 %v1057_v41, %v938_v36  ;;  %2108 = vmatmul.bf16.gmra.mxu3 %v3821_v20  ;;  %2237 = vmatmul.bf16.gmra.mxu0 %v3821_v20  ;;  %v587_v41 = vpop.permute.xlu1 %586  ;;  %s4092_s28 = scalar_lea.vmem %s4141_s5, %s2946_s22 }
 0x183   : > { %v939_v26 = vpop.f32.mrf.mxu1 }
 0x184   : > { %v1462_v46 = vpop.f32.mrf.mxu3  ;;  %v940_v12 = vadd.f32 %v939_v26, %v3961_v3 }
 0x185   : > { %v1493_v0 = vadd.f32 %v1462_v46, %v1088_v5 }
 0x186   : > { %v1593_v21 = vpop.f32.mrf.mxu0 }
 0x187   : > { %v4003_v39 = vadd.f32 %v1593_v21, %v1492_v16  ;;  %v392_v21 = vmul.f32 %v3885_v10, %v358_v2 }
 0x188   : > { %v1059_v54 = vpop.f32.mrf.mxu2 }
 0x189   : > { %v1089_v63 = vadd.f32 %v1059_v54, %v940_v12  ;;  %v620_v54 = vmul.f32 %v3891_v25, %v587_v41  ;;  %v1842_v41 = vrot.slane %v3557_v19, 5 }
 0x18b   : > { %v942_v27 = vpop.f32.mrf.mxu1 }
 0x18c   : > { %v1464_v53 = vpop.f32.mrf.mxu3  ;;  %v943_v15 = vadd.f32 %v942_v27, %v3916_v22  ;;  %v2796_v22 = vrot.slane %v3549_v8, 9  ;;  %v1318_v27 = vshrl.u32 %v3922_v51, 16 }
 0x18d   : > { %v1494_v13 = vadd.f32 %v1464_v53, %v1089_v63  ;;  %1979 = vmatmul.bf16.gmra.mxu2 %v3821_v20  ;;  %v1828_v20 = vrot.slane %v3555_v18, 5 }
 0x18e   : > { %v1596_v34 = vpop.f32.mrf.mxu0  ;;  %1734 = vmatmul.bf16.gmra.mxu1 %v3913_v38 }
 0x18f   : > { %v4007_v59 = vadd.f32 %v1596_v34, %v1493_v0  ;;  %v1830_v28 = vrot.slane %v1828_v20, 4  ;;  %v1829_v45 = vsel %vm3493_vm14, %v2796_v22, %v1828_v20  ;;  %v650_v34 = vadd.f32 %v620_v54, %v392_v21 }
 0x190   : > { %v1062_v35 = vpop.f32.mrf.mxu2  ;;  %v1883_v8 = vunpack.c.l.b16 %v1829_v45 }
 0x191   : > { %v1090_v3 = vadd.f32 %v1062_v35, %v943_v15  ;;  %2113 = vmatmul.bf16.gmra.mxu3 %v3744_v7  ;;  %2242 = vmatmul.bf16.gmra.mxu0 %v3744_v7  ;;  %v1832_v31 = vsel %vm3493_vm14, %v1830_v28, %v1831_v44  ;;  %v1320_v44 = vrot.slane %v1318_v27, 4  ;;  %v4037_v20 = vpack.c.bf16 %v650_v34, %v650_v34 }
 0x192   : > { %v1884_v9 = vunpack.c.l.b16 %v1832_v31 }
 0x193   : > { %v944_v4 = vpop.f32.mrf.mxu1 }
 0x194   : > { %v1467_v49 = vpop.f32.mrf.mxu3  ;;  %v945_v38 = vadd.f32 %v944_v4, %v3935_v24  ;;  %v1893_v46 = vpack.c.b16 %v1884_v9, %v1883_v8  ;;  %v1845_v8 = vrot.slane %v3946_v62, 5 }
 0x195   : > { %v1495_v48 = vadd.f32 %v1467_v49, %v1090_v3 }
 0x196   : > { %v1598_v55 = vpop.f32.mrf.mxu0 }
 0x197   : > { %v4016_v50 = vadd.f32 %v1598_v55, %v1494_v13  ;;  %v1327_v13 = vshll.u32 %v3924_v57, 16 }
 0x198   : > { %v1064_v47 = vpop.f32.mrf.mxu2 }
 0x199   : > { %v1091_v37 = vadd.f32 %v1064_v47, %v945_v38  ;;  %v1337_v38 = vshll.u32 %v4037_v20, 16 }
 0x19b   : > { %v947_v18 = vpop.f32.mrf.mxu1 }
 0x19c   : > { %v1469_v36 = vpop.f32.mrf.mxu3  ;;  %v948_v5 = vadd.f32 %v947_v18, %v3955_v43  ;;  %v1321_v43 = vshll.u32 %v3922_v51, 16  ;;  %v1339_v18 = vrot.slane %v1337_v38, 5 }
 0x19d   : > { %v1496_v16 = vadd.f32 %v1469_v36, %v1091_v37  ;;  %1984 = vmatmul.bf16.gmra.mxu2 %v3744_v7 }
 0x19e   : > { %v1601_v24 = vpop.f32.mrf.mxu0  ;;  %1739 = vmatmul.bf16.gmra.mxu1 %v3952_v60  ;;  %v1331_v60 = vshrl.u32 %v3924_v57, 16  ;;  %v1323_v4 = vrot.slane %v1321_v43, 5 }
 0x19f   : > { %v4025_v26 = vadd.f32 %v1601_v24, %v1495_v48  ;;  %v1329_v48 = vrot.slane %v1327_v13, 5 }
 0x1a0   : > { %v1067_v12 = vpop.f32.mrf.mxu2  ;;  %v1333_v49 = vrot.slane %v1331_v60, 4  ;;  %v1324_v31 = vor.u32 %v1323_v4, %v1320_v44 }
 0x1a1   : > { %v1092_v0 = vadd.f32 %v1067_v12, %v948_v5  ;;  %2118 = vmatmul.bf16.gmra.mxu3 %v1893_v46  ;;  %2247 = vmatmul.bf16.gmra.mxu0 %v1893_v46  ;;  %v2798_v12 = vrot.slane %v3551_v17, 9 }
 0x1a2   : > { %v1334_v37 = vor.u32 %v1333_v49, %v1329_v48  ;;  %v1325_v36 = vrot.slane %v1324_v31, 4  ;;  %v1852_v49 = vrot.slane %v4037_v20, 5 }
 0x1a3   : > { %v949_v7 = vpop.f32.mrf.mxu1 }
 0x1a4   : > { %v1472_v63 = vpop.f32.mrf.mxu3  ;;  %v950_v35 = vadd.f32 %v949_v7, %v3963_v29 }
 0x1a5   : > { %v1497_v53 = vadd.f32 %v1472_v63, %v1092_v0  ;;  %v1844_v0 = vrot.slane %v1842_v41, 4 }
 0x1a6   : > { %v1603_v15 = vpop.f32.mrf.mxu0 }
 0x1a7   : > { %v4035_v3 = vadd.f32 %v1603_v15, %v1496_v16  ;;  %v1335_v16 = vrot.slane %v1334_v37, 4  ;;  %v1846_v7 = vsel %vm3493_vm14, %v1844_v0, %v1845_v8 }
 0x1a8   : > { %v1069_v10 = vpop.f32.mrf.mxu2  ;;  %v2034_v43 = vunpack.c.l.b16 %v1846_v7 }
 0x1a9   : > { %v1093_v25 = vadd.f32 %v1069_v10, %v950_v35 }
 0x1ab   : > { %v952_v55 = vpop.f32.mrf.mxu1 }
 0x1ac   : > { %v1474_v22 = vpop.f32.mrf.mxu3  ;;  %v953_v29 = vadd.f32 %v952_v55, %v3918_v40 }
 0x1ad   : > { %v1498_v28 = vadd.f32 %v1474_v22, %v1093_v25  ;;  %1989 = vmatmul.bf16.gmra.mxu2 %v1893_v46  ;;  %v1340_v46 = vsel %vm3610_vm1, %v1335_v16, %v1339_v18  ;;  %v1849_v25 = vrot.slane %v3924_v57, 5 }
 0x1ae   : > { %v1606_v47 = vpop.f32.mrf.mxu0  ;;  %1744 = vmatmul.bf16.gmra.mxu1 %v3973_v30  ;;  %v1330_v30 = vsel %vm3610_vm1, %v1325_v36, %v1329_v48  ;;  %v1655_v27 = vunpack.c.l.b16 %v1340_v46 }
 0x1af   : > { %v4041_v45 = vadd.f32 %v1606_v47, %v1497_v53  ;;  %v1654_v63 = vunpack.c.l.b16 %v1330_v30  ;;  %v1843_v53 = vsel %vm3493_vm14, %v2798_v12, %v1842_v41  ;;  %v1851_v22 = vrot.slane %v1849_v25, 4 }
 0x1b0   : > { %v1072_v6 = vpop.f32.mrf.mxu2 }
 0x1b1   : > { %v1094_v9 = vadd.f32 %v1072_v6, %v953_v29  ;;  %2123 = vmatmul.bf16.gmra.mxu3 %v3764_v56  ;;  %2252 = vmatmul.bf16.gmra.mxu0 %v3764_v56  ;;  %v1656_v17 = vpack.c.b16 %v1655_v27, %v1654_v63  ;;  %v1853_v37 = vsel %vm3493_vm14, %v1851_v22, %v1852_v49 }
 0x1b2   : > { %v2168_v6 = vunpack.c.l.b16 %v1853_v37 }
 0x1b3   : > { %v954_v2 = vpop.f32.mrf.mxu1 }
 0x1b4   : > { %v1477_v24 = vpop.f32.mrf.mxu3  ;;  %v955_v21 = vadd.f32 %v954_v2, %v3937_v32  ;;  %v2033_v32 = vunpack.c.l.b16 %v1843_v53 }
 0x1b5   : > { %v1499_v40 = vadd.f32 %v1477_v24, %v1094_v9 }
 0x1b6   : > { %v1608_v5 = vpop.f32.mrf.mxu0  ;;  %v2035_v10 = vpack.c.b16 %v2034_v43, %v2033_v32 }
 0x1b7   : > { %v4054_v54 = vadd.f32 %v1608_v5, %v1498_v28 }
 0x1b8   : > { %v1074_v62 = vpop.f32.mrf.mxu2 }
 0x1b9   : > { %v1095_v19 = vadd.f32 %v1074_v62, %v955_v21 }
 0x1bb   : > { %v957_v42 = vpop.f32.mrf.mxu1 }
 0x1bc   : > { %v1479_v13 = vpop.f32.mrf.mxu3  ;;  %v958_v15 = vadd.f32 %v957_v42, %v3957_v11 }
 0x1bd   : > { %v1500_v60 = vadd.f32 %v1479_v13, %v1095_v19  ;;  %1994 = vmatmul.bf16.gmra.mxu2 %v3764_v56  ;;  %v2799_v56 = vrot.slane %v3922_v51, 9  ;;  %v4084_v19 = vld [vmem:[%s4138_s2] ss:$0 sm:$0xff] }
 0x1be   : > { %v1611_v34 = vpop.f32.mrf.mxu0  ;;  %1749 = vmatmul.bf16.gmra.mxu1 %v1656_v17 }
 0x1bf   : > { %v4062_v35 = vadd.f32 %v1611_v34, %v1499_v40  ;;  %v1850_v57 = vsel %vm3493_vm14, %v2799_v56, %v1849_v25 }
 0x1c0   : > { %v1077_v44 = vpop.f32.mrf.mxu2  ;;  %v2167_v20 = vunpack.c.l.b16 %v1850_v57 }
 0x1c1   : > { %v1096_v4 = vadd.f32 %v1077_v44, %v958_v15  ;;  %2128 = vmatmul.bf16.gmra.mxu3 %v2035_v10  ;;  %2257 = vmatmul.bf16.gmra.mxu0 %v2035_v10 }
 0x1c3   : > { %v959_v48 = vpop.f32.mrf.mxu1 }
 0x1c4   : > { %v1482_v55 = vpop.f32.mrf.mxu3  ;;  %v960_v11 = vadd.f32 %v959_v48, %v3965_v33  ;;  %v2169_v33 = vpack.c.b16 %v2168_v6, %v2167_v20 }
 0x1c5   : > { %v1501_v28 = vadd.f32 %v1482_v55, %v1096_v4 }
 0x1c6   : > { %v1613_v38 = vpop.f32.mrf.mxu0 }
 0x1c7   : > { %v4068_v47 = vadd.f32 %v1613_v38, %v1500_v60 }
 0x1c8   : > { %v1079_v31 = vpop.f32.mrf.mxu2 }
 0x1c9   : > { %v1097_v29 = vadd.f32 %v1079_v31, %v960_v11 }
 0x1cb   : > { %v1715_v9 = vpop.f32.mrf.mxu1 }
 0x1cc   : > { %v1484_v18 = vpop.f32.mrf.mxu3  ;;  %v1755_v23 = vadd.f32 %v1715_v9, %v3978_v58 }
 0x1cd   : > { %v1502_v51 = vadd.f32 %v1484_v18, %v1097_v29 }
 0x1ce   : > { %v1616_v36 = vpop.f32.mrf.mxu0 }
 0x1cf   : > { %v4074_v16 = vadd.f32 %v1616_v36, %v1501_v28 }
 0x1d0   : > { %v1960_v8 = vpop.f32.mrf.mxu2 }
 0x1d1   : > { %2262 = vmatmul.bf16.gmra.mxu0 %v2169_v33  ;;  %v2000_v30 = vadd.f32 %v1960_v8, %v1755_v23 }
 0x1d3   : > { %v1717_v2 = vpop.f32.mrf.mxu1 }
 0x1d4   : > { %v2094_v24 = vpop.f32.mrf.mxu3  ;;  %v1756_v62 = vadd.f32 %v1717_v2, %v3983_v61 }
 0x1d5   : > { %v2134_v0 = vadd.f32 %v2094_v24, %v2000_v30 }
 0x1d6   : > { %v1618_v41 = vpop.f32.mrf.mxu0 }
 0x1d7   : > { %v4076_v40 = vadd.f32 %v1618_v41, %v1502_v51 }
 0x1d8   : > { %v1962_v5 = vpop.f32.mrf.mxu2 }
 0x1d9   : > { %v2001_v27 = vadd.f32 %v1962_v5, %v1756_v62 }
 0x1db   : > { %v1720_v46 = vpop.f32.mrf.mxu1 }
 0x1dc   : > { %v2096_v12 = vpop.f32.mrf.mxu3  ;;  %v1757_v60 = vadd.f32 %v1720_v46, %v3987_v1 }
 0x1dd   : > { %v2135_v42 = vadd.f32 %v2096_v12, %v2001_v27 }
 0x1de   : > { %v2228_v21 = vpop.f32.mrf.mxu0 }
 0x1df   : > { %v2268_v7 = vadd.f32 %v2228_v21, %v2134_v0 }
 0x1e0   : > { %v1965_v63 = vpop.f32.mrf.mxu2 }
 0x1e1   : > { %v2288_v58 = vadd.f32 %v4084_v19, %v2268_v7  ;;  %v2002_v34 = vadd.f32 %v1965_v63, %v1757_v60 }
 0x1e3   : > { %v1722_v53 = vpop.f32.mrf.mxu1  ;;  %v2304_v61 = vmax.f32 %v2288_v58, 0.0 }
 0x1e4   : > { %v2099_v43 = vpop.f32.mrf.mxu3  ;;  %v1758_v22 = vadd.f32 %v1722_v53, %v3993_v52 }
 0x1e5   : > { %v2373_v44 = vmul.f32 %v2304_v61, %v2304_v61  ;;  %v2136_v49 = vadd.f32 %v2099_v43, %v2002_v34 }
 0x1e6   : > { %v2230_v13 = vpop.f32.mrf.mxu0 }
 0x1e7   : > { %v2269_v17 = vadd.f32 %v2230_v13, %v2135_v42 }
 0x1e8   : > { %v1967_v32 = vpop.f32.mrf.mxu2 }
 0x1e9   : > { %v2289_v15 = vadd.f32 %v4084_v19, %v2269_v17  ;;  %v2003_v31 = vadd.f32 %v1967_v32, %v1758_v22 }
 0x1eb   : > { %v2305_v10 = vmax.f32 %v2289_v15, 0.0  ;;  %v1725_v25 = vpop.f32.mrf.mxu1 }
 0x1ec   : > { %v2101_v4 = vpop.f32.mrf.mxu3  ;;  %v1759_v36 = vadd.f32 %v1725_v25, %v3997_v14 }
 0x1ed   : > { %v3042_v48 = vpack.c.bf16 %v2305_v10, %v2304_v61  ;;  %v2352_v1 = vadd.f32 %v2305_v10, %v2304_v61  ;;  %v2374_v55 = vmul.f32 %v2305_v10, %v2305_v10  ;;  %v2137_v6 = vadd.f32 %v2101_v4, %v2003_v31 }
 0x1ee   : > { %v2233_v56 = vpop.f32.mrf.mxu0 }
 0x1ef   : > { %3043 = vst [vmem:[%s4092_s28] sm:$0xff] %v3042_v48   ;;  %v2389_v28 = vadd.f32 %v2374_v55, %v2373_v44  ;;  %v2270_v38 = vadd.f32 %v2233_v56, %v2136_v49 }
 0x1f0   : > { %v1970_v11 = vpop.f32.mrf.mxu2 }
 0x1f1   : > { %v2290_v57 = vadd.f32 %v4084_v19, %v2270_v38  ;;  %v2004_v2 = vadd.f32 %v1970_v11, %v1759_v36 }
 0x1f3   : > { %v2306_v37 = vmax.f32 %v2290_v57, 0.0  ;;  %v1727_v29 = vpop.f32.mrf.mxu1 }
 0x1f4   : > { %v2104_v20 = vpop.f32.mrf.mxu3  ;;  %v1760_v62 = vadd.f32 %v1727_v29, %v4003_v39 }
 0x1f5   : > { %v2353_v9 = vadd.f32 %v2352_v1, %v2306_v37  ;;  %v2375_v18 = vmul.f32 %v2306_v37, %v2306_v37  ;;  %v2138_v30 = vadd.f32 %v2104_v20, %v2004_v2 }
 0x1f6   : > { %v2235_v51 = vpop.f32.mrf.mxu0 }
 0x1f7   : > { %v2390_v33 = vadd.f32 %v2389_v28, %v2375_v18  ;;  %v2271_v8 = vadd.f32 %v2235_v51, %v2137_v6 }
 0x1f8   : > { %v1972_v52 = vpop.f32.mrf.mxu2 }
 0x1f9   : > { %v2291_v24 = vadd.f32 %v4084_v19, %v2271_v8  ;;  %v2005_v27 = vadd.f32 %v1972_v52, %v1760_v62 }
 0x1fb   : > { %v2307_v41 = vmax.f32 %v2291_v24, 0.0  ;;  %v1730_v23 = vpop.f32.mrf.mxu1 }
 0x1fc   : > { %v2106_v5 = vpop.f32.mrf.mxu3  ;;  %v1761_v32 = vadd.f32 %v1730_v23, %v4007_v59 }
 0x1fd   : > { %v3047_v46 = vpack.c.bf16 %v2307_v41, %v2306_v37  ;;  %v2354_v12 = vadd.f32 %v2353_v9, %v2307_v41  ;;  %v2376_v0 = vmul.f32 %v2307_v41, %v2307_v41  ;;  %v2139_v13 = vadd.f32 %v2106_v5, %v2005_v27 }
 0x1fe   : > { %v2238_v21 = vpop.f32.mrf.mxu0 }
 0x1ff   : > { %3083 = vst [vmem:[%s4092_s28 + $0x8] sm:$0xff] %v3047_v46   ;;  %v2391_v7 = vadd.f32 %v2390_v33, %v2376_v0  ;;  %v2272_v63 = vadd.f32 %v2238_v21, %v2138_v30 }
 0x200   : > { %v1975_v14 = vpop.f32.mrf.mxu2 }
 0x201   : > { %v2292_v58 = vadd.f32 %v4084_v19, %v2272_v63  ;;  %v2006_v10 = vadd.f32 %v1975_v14, %v1761_v32 }
 0x203   : > { %v2308_v53 = vmax.f32 %v2292_v58, 0.0  ;;  %v1732_v43 = vpop.f32.mrf.mxu1 }
 0x204   : > { %v2109_v42 = vpop.f32.mrf.mxu3  ;;  %v1762_v28 = vadd.f32 %v1732_v43, %v4016_v50 }
 0x205   : > { %v2355_v60 = vadd.f32 %v2354_v12, %v2308_v53  ;;  %v2377_v17 = vmul.f32 %v2308_v53, %v2308_v53  ;;  %v2140_v48 = vadd.f32 %v2109_v42, %v2006_v10 }
 0x206   : > { %v2240_v61 = vpop.f32.mrf.mxu0 }
 0x207   : > { %v2392_v34 = vadd.f32 %v2391_v7, %v2377_v17  ;;  %v2273_v15 = vadd.f32 %v2240_v61, %v2139_v13 }
 0x208   : > { %v1977_v39 = vpop.f32.mrf.mxu2 }
 0x209   : > { %v2293_v44 = vadd.f32 %v4084_v19, %v2273_v15  ;;  %v2007_v31 = vadd.f32 %v1977_v39, %v1762_v28 }
 0x20b   : > { %v2309_v25 = vmax.f32 %v2293_v44, 0.0  ;;  %v1735_v4 = vpop.f32.mrf.mxu1 }
 0x20c   : > { %v2111_v49 = vpop.f32.mrf.mxu3  ;;  %v1763_v36 = vadd.f32 %v1735_v4, %v4025_v26 }
 0x20d   : > { %v3052_v1 = vpack.c.bf16 %v2309_v25, %v2308_v53  ;;  %v2356_v55 = vadd.f32 %v2355_v60, %v2309_v25  ;;  %v2378_v56 = vmul.f32 %v2309_v25, %v2309_v25  ;;  %v2141_v6 = vadd.f32 %v2111_v49, %v2007_v31 }
 0x20e   : > { %v2243_v22 = vpop.f32.mrf.mxu0 }
 0x20f   : > { %3084 = vst [vmem:[%s4092_s28 + $0x10] sm:$0xff] %v3052_v1   ;;  %v2393_v38 = vadd.f32 %v2392_v34, %v2378_v56  ;;  %v2274_v11 = vadd.f32 %v2243_v22, %v2140_v48 }
 0x210   : > { %v1980_v59 = vpop.f32.mrf.mxu2 }
 0x211   : > { %v2294_v57 = vadd.f32 %v4084_v19, %v2274_v11  ;;  %v2008_v52 = vadd.f32 %v1980_v59, %v1763_v36 }
 0x213   : > { %v2310_v37 = vmax.f32 %v2294_v57, 0.0  ;;  %v1737_v29 = vpop.f32.mrf.mxu1 }
 0x214   : > { %v2114_v20 = vpop.f32.mrf.mxu3  ;;  %v1764_v21 = vadd.f32 %v1737_v29, %v4035_v3 }
 0x215   : > { %v2357_v9 = vadd.f32 %v2356_v55, %v2310_v37  ;;  %v2379_v18 = vmul.f32 %v2310_v37, %v2310_v37  ;;  %v2142_v5 = vadd.f32 %v2114_v20, %v2008_v52 }
 0x216   : > { %v2245_v51 = vpop.f32.mrf.mxu0 }
 0x217   : > { %v2394_v33 = vadd.f32 %v2393_v38, %v2379_v18  ;;  %v2275_v8 = vadd.f32 %v2245_v51, %v2141_v6 }
 0x218   : > { %v1982_v50 = vpop.f32.mrf.mxu2 }
 0x219   : > { %v2295_v2 = vadd.f32 %v4084_v19, %v2275_v8  ;;  %v2009_v63 = vadd.f32 %v1982_v50, %v1764_v21 }
 0x21b   : > { %v2311_v24 = vmax.f32 %v2295_v2, 0.0  ;;  %v1740_v41 = vpop.f32.mrf.mxu1 }
 0x21c   : > { %v2116_v23 = vpop.f32.mrf.mxu3  ;;  %v1765_v17 = vadd.f32 %v1740_v41, %v4041_v45 }
 0x21d   : > { %v3057_v30 = vpack.c.bf16 %v2311_v24, %v2310_v37  ;;  %v2358_v46 = vadd.f32 %v2357_v9, %v2311_v24  ;;  %v2380_v12 = vmul.f32 %v2311_v24, %v2311_v24  ;;  %v2143_v43 = vadd.f32 %v2116_v23, %v2009_v63 }
 0x21e   : > { %v2248_v0 = vpop.f32.mrf.mxu0 }
 0x21f   : > { %3085 = vst [vmem:[%s4092_s28 + $0x18] sm:$0xff] %v3057_v30   ;;  %v2395_v62 = vadd.f32 %v2394_v33, %v2380_v12  ;;  %v2276_v7 = vadd.f32 %v2248_v0, %v2142_v5 }
 0x220   : > { %v1985_v26 = vpop.f32.mrf.mxu2 }
 0x221   : > { %v2296_v14 = vadd.f32 %v4084_v19, %v2276_v7  ;;  %v2010_v34 = vadd.f32 %v1985_v26, %v1765_v17 }
 0x223   : > { %v2312_v27 = vmax.f32 %v2296_v14, 0.0  ;;  %v1742_v58 = vpop.f32.mrf.mxu1 }
 0x224   : > { %v2119_v53 = vpop.f32.mrf.mxu3  ;;  %v1766_v55 = vadd.f32 %v1742_v58, %v4054_v54 }
 0x225   : > { %v2359_v42 = vadd.f32 %v2358_v46, %v2312_v27  ;;  %v2381_v13 = vmul.f32 %v2312_v27, %v2312_v27  ;;  %v2144_v44 = vadd.f32 %v2119_v53, %v2010_v34 }
 0x226   : > { %v2250_v60 = vpop.f32.mrf.mxu0 }
 0x227   : > { %v2396_v61 = vadd.f32 %v2395_v62, %v2381_v13  ;;  %v2277_v32 = vadd.f32 %v2250_v60, %v2143_v43 }
 0x228   : > { %v1987_v3 = vpop.f32.mrf.mxu2 }
 0x229   : > { %v2297_v15 = vadd.f32 %v4084_v19, %v2277_v32  ;;  %v2011_v28 = vadd.f32 %v1987_v3, %v1766_v55 }
 0x22b   : > { %v2313_v39 = vmax.f32 %v2297_v15, 0.0  ;;  %v1745_v48 = vpop.f32.mrf.mxu1 }
 0x22c   : > { %v2121_v10 = vpop.f32.mrf.mxu3  ;;  %v1767_v20 = vadd.f32 %v1745_v48, %v4062_v35 }
 0x22d   : > { %v3062_v25 = vpack.c.bf16 %v2313_v39, %v2312_v27  ;;  %v2360_v4 = vadd.f32 %v2359_v42, %v2313_v39  ;;  %v2382_v49 = vmul.f32 %v2313_v39, %v2313_v39  ;;  %v2145_v31 = vadd.f32 %v2121_v10, %v2011_v28 }
 0x22e   : > { %v2253_v1 = vpop.f32.mrf.mxu0 }
 0x22f   : > { %3086 = vst [vmem:[%s4092_s28 + $0x20] sm:$0xff] %v3062_v25   ;;  %v2397_v56 = vadd.f32 %v2396_v61, %v2382_v49  ;;  %v2278_v22 = vadd.f32 %v2253_v1, %v2144_v44 }
 0x230   : > { %v1990_v45 = vpop.f32.mrf.mxu2 }
 0x231   : > { %v2298_v38 = vadd.f32 %v4084_v19, %v2278_v22  ;;  %v2012_v54 = vadd.f32 %v1990_v45, %v1767_v20 }
 0x233   : > { %v2314_v11 = vmax.f32 %v2298_v38, 0.0  ;;  %v1747_v18 = vpop.f32.mrf.mxu1 }
 0x234   : > { %v2124_v59 = vpop.f32.mrf.mxu3  ;;  %v1768_v23 = vadd.f32 %v1747_v18, %v4068_v47 }
 0x235   : > { %v2361_v57 = vadd.f32 %v2360_v4, %v2314_v11  ;;  %v2383_v37 = vmul.f32 %v2314_v11, %v2314_v11  ;;  %v2146_v8 = vadd.f32 %v2124_v59, %v2012_v54 }
 0x236   : > { %v2255_v29 = vpop.f32.mrf.mxu0 }
 0x237   : > { %v2398_v6 = vadd.f32 %v2397_v56, %v2383_v37  ;;  %v2279_v9 = vadd.f32 %v2255_v29, %v2145_v31 }
 0x238   : > { %v1992_v36 = vpop.f32.mrf.mxu2 }
 0x239   : > { %v2299_v51 = vadd.f32 %v4084_v19, %v2279_v9  ;;  %v2013_v35 = vadd.f32 %v1992_v36, %v1768_v23 }
 0x23b   : > { %v2315_v33 = vmax.f32 %v2299_v51, 0.0  ;;  %v1750_v12 = vpop.f32.mrf.mxu1 }
 0x23c   : > { %v2126_v24 = vpop.f32.mrf.mxu3  ;;  %v1769_v14 = vadd.f32 %v1750_v12, %v4074_v16 }
 0x23d   : > { %v3067_v50 = vpack.c.bf16 %v2315_v33, %v2314_v11  ;;  %v2362_v52 = vadd.f32 %v2361_v57, %v2315_v33  ;;  %v2384_v2 = vmul.f32 %v2315_v33, %v2315_v33  ;;  %v2147_v62 = vadd.f32 %v2126_v24, %v2013_v35 }
 0x23e   : > { %v2258_v41 = vpop.f32.mrf.mxu0 }
 0x23f   : > { %3087 = vst [vmem:[%s4092_s28 + $0x28] sm:$0xff] %v3067_v50   ;;  %v2399_v5 = vadd.f32 %v2398_v6, %v2384_v2  ;;  %v2280_v30 = vadd.f32 %v2258_v41, %v2146_v8 }
 0x240   : > { %v1995_v21 = vpop.f32.mrf.mxu2 }
 0x241   : > { %v2300_v46 = vadd.f32 %v4084_v19, %v2280_v30  ;;  %v2014_v47 = vadd.f32 %v1995_v21, %v1769_v14 }
 0x243   : > { %v2316_v0 = vmax.f32 %v2300_v46, 0.0  ;;  %v1752_v13 = vpop.f32.mrf.mxu1 }
 0x244   : > { %v2129_v53 = vpop.f32.mrf.mxu3  ;;  %v1770_v15 = vadd.f32 %v1752_v13, %v4076_v40 }
 0x245   : > { %v2363_v7 = vadd.f32 %v2362_v52, %v2316_v0  ;;  %v2385_v26 = vmul.f32 %v2316_v0, %v2316_v0  ;;  %v2148_v60 = vadd.f32 %v2129_v53, %v2014_v47 }
 0x246   : > { %v2260_v63 = vpop.f32.mrf.mxu0 }
 0x247   : > { %v2400_v27 = vadd.f32 %v2399_v5, %v2385_v26  ;;  %v2281_v58 = vadd.f32 %v2260_v63, %v2147_v62 }
 0x248   : > { %v1997_v3 = vpop.f32.mrf.mxu2 }
 0x249   : > { %v2301_v43 = vadd.f32 %v4084_v19, %v2281_v58  ;;  %v2015_v16 = vadd.f32 %v1997_v3, %v1770_v15 }
 0x24b   : > { %v2317_v42 = vmax.f32 %v2301_v43, 0.0 }
 0x24c   : > { %v2131_v25 = vpop.f32.mrf.mxu3 }
 0x24d   : > { %v3072_v17 = vpack.c.bf16 %v2317_v42, %v2316_v0  ;;  %v2364_v61 = vadd.f32 %v2363_v7, %v2317_v42  ;;  %v2386_v32 = vmul.f32 %v2317_v42, %v2317_v42  ;;  %v2149_v49 = vadd.f32 %v2131_v25, %v2015_v16 }
 0x24e   : > { %v2263_v34 = vpop.f32.mrf.mxu0 }
 0x24f   : > { %3088 = vst [vmem:[%s4092_s28 + $0x30] sm:$0xff] %v3072_v17   ;;  %v2401_v39 = vadd.f32 %v2400_v27, %v2386_v32  ;;  %v2282_v10 = vadd.f32 %v2263_v34, %v2148_v60 }
 0x251   : > { %v2302_v44 = vadd.f32 %v4084_v19, %v2282_v10 }
 0x253   : > { %v2318_v4 = vmax.f32 %v2302_v44, 0.0 }
 0x255   : > { %v2365_v48 = vadd.f32 %v2364_v61, %v2318_v4  ;;  %v2387_v1 = vmul.f32 %v2318_v4, %v2318_v4 }
 0x256   : > { %v2265_v55 = vpop.f32.mrf.mxu0 }
 0x257   : > { %v2402_v56 = vadd.f32 %v2401_v39, %v2387_v1  ;;  %v2283_v22 = vadd.f32 %v2265_v55, %v2149_v49 }
 0x259   : > { %v2303_v45 = vadd.f32 %v4084_v19, %v2283_v22 }
 0x25b   : > { %v2319_v28 = vmax.f32 %v2303_v45, 0.0 }
 0x25d   : > { %v3077_v40 = vpack.c.bf16 %v2319_v28, %v2318_v4  ;;  %v2366_v38 = vadd.f32 %v2365_v48, %v2319_v28  ;;  %v2388_v11 = vmul.f32 %v2319_v28, %v2319_v28 }
 0x25f   : > { %3089 = vst [vmem:[%s4092_s28 + $0x38] sm:$0xff] %v3077_v40   ;;  %v2367_v59 = vrot.slane %v2366_v38, 4  ;;  %v2403_v31 = vadd.f32 %v2402_v56, %v2388_v11 }
 0x261   : > { %v2368_v57 = vadd.f32 %v2367_v59, %v2366_v38  ;;  %v2404_v37 = vrot.slane %v2403_v31, 4 }
 0x263   : > { %v2369_v29 = vrot.slane %v2368_v57, 2  ;;  %v2405_v20 = vadd.f32 %v2404_v37, %v2403_v31 }
 0x265   : > { %v2370_v6 = vadd.f32 %v2369_v29, %v2368_v57  ;;  %v2406_v9 = vrot.slane %v2405_v20, 2 }
 0x267   : > { %v2371_v18 = vrot.slane %v2370_v6, 1  ;;  %v2407_v54 = vadd.f32 %v2406_v9, %v2405_v20 }
 0x269   : > { %v2408_v51 = vrot.slane %v2407_v54, 1  ;;  %v2372_v19 = vadd.f32 %v2371_v18, %v2370_v6 }
 0x26b   : > { %v2409_v36 = vadd.f32 %v2408_v51, %v2407_v54 }
 0x26d   : > { %v2411_v33 = vsel %vm2410_vm2, %v2372_v19, %v2409_v36 }
 0x26e   : > { %2412 = vst [vmem:[%s265_s8] sm:$0x3] %v2411_v33 }
 0x26f PF: > { %s17_s21 = sadd.s32 1, %s3191_s21  }
 0x270   : > { %p14_p7 = scmp.ge.s32.totalorder %s17_s21, 6  }
 0x272   :  { %16 = sbr.rel (!%p14_p7) target bundleno = 1 (0x1), region = 90 }

</bundles_post_ra>
